<compile_context>
chip_gen: v7x
topology: tpu7x:2x2x1
jax: 0.10.0
libtpu: 0.0.40
codegen_flags: <defaults>
</compile_context>

<pallas_src>
import math

import jax
import jax.numpy as jnp
from jax.experimental import pallas as pl
from jax.experimental.pallas import tpu as pltpu

HIDDEN = 512  # fixed by the PyTorch module


# ----------------------------------------------------------------------------
# Pallas kernel: full 3-layer PFNN forward for one batch tile.
#   x_ref    : (TB, D_in)            float32
#   p_ref    : (TB, 1)               float32  -- phase
#   w{1,2,3} : (4*in, out[_pad])     bfloat16 -- 4 control-point networks
#                                                stacked along the K dim.
#   bmat_ref : (8, o1+o2+o3_pad)     float32  -- biases of all layers, one row
#                                                per network (rows 4..7 zero).
#   y_ref    : (TB, out_pad)         float32
# ----------------------------------------------------------------------------
def pfnn_kernel(x_ref, p_ref, w1_ref, w2_ref, w3_ref, bmat_ref, y_ref):
    x = x_ref[...]                                   # (TB, D_in) f32

    # ---- Catmull-Rom spline blend coefficient per control-point network ----
    p = p_ref[...]                                   # (TB, 1) f32
    coeff = p * (4.0 / (2.0 * math.pi))
    fl = jnp.floor(coeff)
    mu = coeff - fl                                  # == coeff % 1.0
    k1 = fl.astype(jnp.int32)
    k0 = jnp.bitwise_and(k1 - 1, 3)                  # (k1 - 1) mod 4
    k2 = jnp.bitwise_and(k1 + 1, 3)
    k3 = jnp.bitwise_and(k1 + 2, 3)
    k1 = jnp.bitwise_and(k1, 3)
    mu2 = mu * mu
    mu3 = mu2 * mu
    ca = -0.5 * mu + mu2 - 0.5 * mu3                 # coefficient of net k0
    cb = 1.0 - 2.5 * mu2 + 1.5 * mu3                 # coefficient of net k1
    cc = 0.5 * mu + 2.0 * mu2 - 1.5 * mu3            # coefficient of net k2
    cd = -0.5 * mu2 + 0.5 * mu3                      # coefficient of net k3
    zero = jnp.zeros_like(mu)
    bcols = []                                       # per-network (TB, 1) f32
    for j in range(4):
        bj = (jnp.where(k0 == j, ca, zero) + jnp.where(k1 == j, cb, zero)
              + jnp.where(k2 == j, cc, zero) + jnp.where(k3 == j, cd, zero))
        bcols.append(bj)

    # ---- All three layers' blended biases in one small f32 dot ----
    blend8 = jnp.concatenate(bcols + [zero] * 4, axis=1)        # (TB, 8)
    bias_all = jnp.dot(blend8, bmat_ref[...],
                       preferred_element_type=jnp.float32)      # (TB, o1+o2+o3)
    o1 = w1_ref.shape[1]
    o2 = w2_ref.shape[1]

    def blended_matmul(act_f32, w_ref):
        # Blend folded into K: (TB, 4*in) bf16 @ (4*in, out) bf16 -> f32 acc.
        xcat = jnp.concatenate([bcols[j] * act_f32 for j in range(4)], axis=1)
        return jnp.dot(xcat.astype(jnp.bfloat16), w_ref[...],
                       preferred_element_type=jnp.float32)

    # Layer 1: blend, dropout (eval-mode identity), relu
    h1 = jnp.maximum(blended_matmul(x, w1_ref) + bias_all[:, :o1], 0.0)
    # Layer 2: blend, relu
    h2 = jnp.maximum(blended_matmul(h1, w2_ref) + bias_all[:, o1:o1 + o2], 0.0)
    # Layer 3: blend -> lane-dense (padded) output
    y_ref[...] = blended_matmul(h2, w3_ref) + bias_all[:, o1 + o2:]


# ----------------------------------------------------------------------------
# Parameter setup / one-time pre-packing, wrapper.
# ----------------------------------------------------------------------------
def init_params(key, input_dims, output_dims):
    """Deterministic synthetic params, PyTorch layout: weight (out, in), bias (out,)."""
    dims = [(input_dims, HIDDEN), (HIDDEN, HIDDEN), (HIDDEN, output_dims)]
    params = []  # params[layer][network] = (weight_oi, bias)
    for (din, dout) in dims:
        layer = []
        for _ in range(4):
            key, kw, kb = jax.random.split(key, 3)
            bound = 1.0 / math.sqrt(din)
            w = jax.random.uniform(kw, (dout, din), jnp.float32, -bound, bound)
            b = jax.random.uniform(kb, (dout,), jnp.float32, -bound, bound)
            layer.append((w, b))
        params.append(layer)
    return params


def prepack_params(params, weight_dtype=jnp.bfloat16):
    """One-time packing into kernel layout (hoisted out of the forward pass).

    Returns dict with:
      w1,w2,w3 : (4*in, out[_pad]) weight_dtype -- networks stacked along K.
      bmat     : (8, o1+o2+o3_pad) float32      -- bias row per network,
                                                   rows 4..7 zero (K=8 pad).
      w_vec    : flattened f32 params in PyTorch iteration order.
    """
    output_dims = params[2][0][0].shape[0]
    out_pad = -(-output_dims // 128) * 128   # lane-dense final store

    def stack_layer(layer, pad_to=None):
        ws, bs = [], []
        for (w_oi, b) in layer:                  # w_oi: (out, in)
            w = jnp.transpose(w_oi)              # (in, out)
            if pad_to is not None and w.shape[1] < pad_to:
                pad = pad_to - w.shape[1]
                w = jnp.pad(w, ((0, 0), (0, pad)))
                b = jnp.pad(b, (0, pad))
            ws.append(w)
            bs.append(b[None, :])
        W = jnp.concatenate(ws, axis=0).astype(weight_dtype)      # (4*in, out)
        Bm = jnp.concatenate(bs, axis=0).astype(jnp.float32)      # (4, out)
        return W, Bm

    w1, bm1 = stack_layer(params[0])
    w2, bm2 = stack_layer(params[1])
    w3, bm3 = stack_layer(params[2], pad_to=out_pad)
    bmat = jnp.concatenate([bm1, bm2, bm3], axis=1)               # (4, total)
    bmat = jnp.concatenate([bmat, jnp.zeros_like(bmat)], axis=0)  # (8, total)

    # w output: flattened params in PyTorch iteration order
    # (layer 0 of all 4 nets, then layer 1, then layer 2; weight then bias).
    flat = []
    for layer in params:
        for wgt, bias in layer:
            flat.append(wgt.reshape(-1))
            flat.append(bias.reshape(-1))
    w_vec = jnp.concatenate(flat, axis=0)

    return dict(w1=w1, w2=w2, w3=w3, bmat=bmat, w_vec=w_vec,
                output_dims=output_dims, out_pad=out_pad)


def pfnn_forward(x, p, packed, *, batch_tile=None):
    B, input_dims = x.shape
    out_pad = packed["out_pad"]
    output_dims = packed["output_dims"]

    # Batch tile: 256 rows matches the v6e/v7x MXU height; small batches are
    # rounded up to a multiple of 8 sublanes and run as a single tile.
    if batch_tile is None:
        batch_tile = 256 if B >= 256 else -(-B // 8) * 8
    tb = batch_tile
    B_pad = -(-B // tb) * tb
    if B_pad != B:
        x = jnp.pad(x, ((0, B_pad - B), (0, 0)))
        p = jnp.pad(p, ((0, B_pad - B), (0, 0)))

    w1, w2, w3, bmat = packed["w1"], packed["w2"], packed["w3"], packed["bmat"]

    flops = 2 * B_pad * (w1.shape[0] * w1.shape[1]
                         + w2.shape[0] * w2.shape[1]
                         + w3.shape[0] * w3.shape[1])
    bytes_accessed = (2 * (w1.size + w2.size + w3.size) + 4 * bmat.size
                      + 4 * x.size + 4 * p.size + 4 * B_pad * out_pad)

    y_pad = pl.pallas_call(
        pfnn_kernel,
        out_shape=jax.ShapeDtypeStruct((B_pad, out_pad), jnp.float32),
        grid=(B_pad // tb,),
        in_specs=[
            pl.BlockSpec((tb, input_dims), lambda i: (i, 0)),   # x (per tile)
            pl.BlockSpec((tb, 1), lambda i: (i, 0)),            # p (per tile)
            pl.BlockSpec(w1.shape, lambda i: (0, 0)),           # w1 (resident)
            pl.BlockSpec(w2.shape, lambda i: (0, 0)),           # w2 (resident)
            pl.BlockSpec(w3.shape, lambda i: (0, 0)),           # w3 (resident)
            pl.BlockSpec(bmat.shape, lambda i: (0, 0)),         # biases
        ],
        out_specs=pl.BlockSpec((tb, out_pad), lambda i: (i, 0)),
        compiler_params=pltpu.CompilerParams(
            dimension_semantics=("parallel",),
            vmem_limit_bytes=16 * 1024 * 1024),
        cost_estimate=pl.CostEstimate(flops=flops, transcendentals=0,
                                      bytes_accessed=bytes_accessed),
    )(x, p, w1, w2, w3, bmat)

    return y_pad[:B, :output_dims], packed["w_vec"]


# ----------------------------------------------------------------------------
# Pure-JAX reference mirroring the PyTorch code (gather + cubic spline, f32).
# ----------------------------------------------------------------------------
def pfnn_reference(x, p, params):
    B = x.shape[0]
    r = jnp.arange(B)
    coeff = 4.0 * p / (2.0 * math.pi)
    mu = jnp.mod(coeff, 1.0)                                    # (B, 1)
    k1 = jnp.mod(jnp.floor(coeff), 4.0).astype(jnp.int32).reshape(-1)
    k0 = jnp.mod(k1 - 1, 4)
    k2 = jnp.mod(k1 + 1, 4)
    k3 = jnp.mod(k1 + 2, 4)

    def spline(a, b, c, d, mu):
        return (b + mu * (0.5 * c - 0.5 * a)
                + mu ** 2 * (a - 2.5 * b + 2.0 * c - 0.5 * d)
                + mu ** 3 * (1.5 * b - 1.5 * c + 0.5 * d - 0.5 * a))

    def layer(inp, lparams):
        H = jnp.stack([inp @ w.T + b for (w, b) in lparams])    # (4, B, out)
        return spline(H[k0, r], H[k1, r], H[k2, r], H[k3, r], mu)

    mid0 = jax.nn.relu(layer(x, params[0]))
    mid1 = jax.nn.relu(layer(mid0, params[1]))
    return layer(mid1, params[2])


if __name__ == "__main__":
    B, INPUT_DIMS, OUTPUT_DIMS = 8, 64, 32

    key = jax.random.PRNGKey(0)
    kx, kp, kparam = jax.random.split(key, 3)
    x = jax.random.normal(kx, (B, INPUT_DIMS), jnp.float32)
    p = jax.random.uniform(kp, (B, 1), jnp.float32, 0.0, 2.0 * math.pi)
    params = init_params(kparam, INPUT_DIMS, OUTPUT_DIMS)

    packed = prepack_params(params)          # one-time weight packing (bf16)
    jax.block_until_ready(packed)

    y, w_vec = pfnn_forward(x, p, packed)
    jax.block_until_ready((y, w_vec))

    y_ref = pfnn_reference(x, p, params)
    assert y.shape == (B, OUTPUT_DIMS)
    n_params = 4 * (INPUT_DIMS * HIDDEN + HIDDEN
                    + HIDDEN * HIDDEN + HIDDEN
                    + HIDDEN * OUTPUT_DIMS + OUTPUT_DIMS)
    assert w_vec.shape == (n_params,)
    # bf16 weights/activations with f32 accumulation -> loosened tolerance
    # vs. the pure-f32 reference.
    assert jnp.allclose(y, y_ref, atol=5e-2, rtol=5e-2), (
        float(jnp.max(jnp.abs(y - y_ref))))

    print("KERNEL_OK")
</pallas_src>

<mosaic_0001>
module attributes {stable_mosaic.version = 11 : i64} {
  func.func @pfnn_kernel(%arg0: i32, %arg1: memref<8x64xf32, #tpu.memory_space<vmem>>, %arg2: memref<8x1xf32, #tpu.memory_space<vmem>>, %arg3: memref<256x512xbf16, #tpu.memory_space<vmem>>, %arg4: memref<2048x512xbf16, #tpu.memory_space<vmem>>, %arg5: memref<2048x128xbf16, #tpu.memory_space<vmem>>, %arg6: memref<8x1152xf32, #tpu.memory_space<vmem>>, %arg7: memref<8x128xf32, #tpu.memory_space<vmem>>) attributes {dimension_semantics = [#tpu.dimension_semantics<parallel>], iteration_bounds = array<i64: 1>, scalar_prefetch = 0 : i64, scratch_operands = 0 : i64, tpu.core_type = #tpu.core_type<tc>, window_params = [{transform_indices = @transform_0, window_bounds = array<i64: 8, 64>}, {transform_indices = @transform_1, window_bounds = array<i64: 8, 1>}, {pipeline_mode = #tpu.pipeline_mode<synchronous>, transform_indices = @transform_2, window_bounds = array<i64: 256, 512>}, {pipeline_mode = #tpu.pipeline_mode<synchronous>, transform_indices = @transform_3, window_bounds = array<i64: 2048, 512>}, {pipeline_mode = #tpu.pipeline_mode<synchronous>, transform_indices = @transform_4, window_bounds = array<i64: 2048, 128>}, {pipeline_mode = #tpu.pipeline_mode<synchronous>, transform_indices = @transform_5, window_bounds = array<i64: 8, 1152>}, {transform_indices = @transform_6, window_bounds = array<i64: 8, 128>}]} {
    %c0 = arith.constant 0 : index
    %c0_0 = arith.constant 0 : index
    %0 = vector.load %arg1[%c0, %c0_0] : memref<8x64xf32, #tpu.memory_space<vmem>>, vector<8x64xf32>
    %c0_1 = arith.constant 0 : index
    %c0_2 = arith.constant 0 : index
    %1 = vector.load %arg2[%c0_1, %c0_2] : memref<8x1xf32, #tpu.memory_space<vmem>>, vector<8x1xf32>
    %cst = arith.constant 0.636619746 : f32
    %2 = vector.broadcast %cst : f32 to vector<8x1xf32>
    %3 = arith.mulf %1, %2 : vector<8x1xf32>
    %4 = math.floor %3 : vector<8x1xf32>
    %5 = arith.subf %3, %4 : vector<8x1xf32>
    %6 = arith.fptosi %4 : vector<8x1xf32> to vector<8x1xi32>
    %c1_i32 = arith.constant 1 : i32
    %7 = vector.broadcast %c1_i32 : i32 to vector<8x1xi32>
    %8 = arith.subi %6, %7 : vector<8x1xi32>
    %c3_i32 = arith.constant 3 : i32
    %9 = vector.broadcast %c3_i32 : i32 to vector<8x1xi32>
    %10 = arith.andi %8, %9 : vector<8x1xi32>
    %c1_i32_3 = arith.constant 1 : i32
    %11 = vector.broadcast %c1_i32_3 : i32 to vector<8x1xi32>
    %12 = arith.addi %6, %11 : vector<8x1xi32>
    %c3_i32_4 = arith.constant 3 : i32
    %13 = vector.broadcast %c3_i32_4 : i32 to vector<8x1xi32>
    %14 = arith.andi %12, %13 : vector<8x1xi32>
    %c2_i32 = arith.constant 2 : i32
    %15 = vector.broadcast %c2_i32 : i32 to vector<8x1xi32>
    %16 = arith.addi %6, %15 : vector<8x1xi32>
    %c3_i32_5 = arith.constant 3 : i32
    %17 = vector.broadcast %c3_i32_5 : i32 to vector<8x1xi32>
    %18 = arith.andi %16, %17 : vector<8x1xi32>
    %c3_i32_6 = arith.constant 3 : i32
    %19 = vector.broadcast %c3_i32_6 : i32 to vector<8x1xi32>
    %20 = arith.andi %6, %19 : vector<8x1xi32>
    %21 = arith.mulf %5, %5 : vector<8x1xf32>
    %22 = arith.mulf %21, %5 : vector<8x1xf32>
    %cst_7 = arith.constant -5.000000e-01 : f32
    %23 = vector.broadcast %cst_7 : f32 to vector<8x1xf32>
    %24 = arith.mulf %23, %5 : vector<8x1xf32>
    %25 = arith.addf %24, %21 : vector<8x1xf32>
    %cst_8 = arith.constant 5.000000e-01 : f32
    %26 = vector.broadcast %cst_8 : f32 to vector<8x1xf32>
    %27 = arith.mulf %26, %22 : vector<8x1xf32>
    %28 = arith.subf %25, %27 : vector<8x1xf32>
    %cst_9 = arith.constant 2.500000e+00 : f32
    %29 = vector.broadcast %cst_9 : f32 to vector<8x1xf32>
    %30 = arith.mulf %29, %21 : vector<8x1xf32>
    %cst_10 = arith.constant 1.000000e+00 : f32
    %31 = vector.broadcast %cst_10 : f32 to vector<8x1xf32>
    %32 = arith.subf %31, %30 : vector<8x1xf32>
    %cst_11 = arith.constant 1.500000e+00 : f32
    %33 = vector.broadcast %cst_11 : f32 to vector<8x1xf32>
    %34 = arith.mulf %33, %22 : vector<8x1xf32>
    %35 = arith.addf %32, %34 : vector<8x1xf32>
    %cst_12 = arith.constant 5.000000e-01 : f32
    %36 = vector.broadcast %cst_12 : f32 to vector<8x1xf32>
    %37 = arith.mulf %36, %5 : vector<8x1xf32>
    %cst_13 = arith.constant 2.000000e+00 : f32
    %38 = vector.broadcast %cst_13 : f32 to vector<8x1xf32>
    %39 = arith.mulf %38, %21 : vector<8x1xf32>
    %40 = arith.addf %37, %39 : vector<8x1xf32>
    %cst_14 = arith.constant 1.500000e+00 : f32
    %41 = vector.broadcast %cst_14 : f32 to vector<8x1xf32>
    %42 = arith.mulf %41, %22 : vector<8x1xf32>
    %43 = arith.subf %40, %42 : vector<8x1xf32>
    %cst_15 = arith.constant -5.000000e-01 : f32
    %44 = vector.broadcast %cst_15 : f32 to vector<8x1xf32>
    %45 = arith.mulf %44, %21 : vector<8x1xf32>
    %cst_16 = arith.constant 5.000000e-01 : f32
    %46 = vector.broadcast %cst_16 : f32 to vector<8x1xf32>
    %47 = arith.mulf %46, %22 : vector<8x1xf32>
    %48 = arith.addf %45, %47 : vector<8x1xf32>
    %cst_17 = arith.constant 0.000000e+00 : f32
    %49 = vector.broadcast %cst_17 : f32 to vector<8x1xf32>
    %c0_i32 = arith.constant 0 : i32
    %50 = vector.broadcast %c0_i32 : i32 to vector<8x1xi32>
    %51 = arith.cmpi eq, %10, %50 : vector<8x1xi32>
    %52 = arith.select %51, %28, %49 : vector<8x1xi1>, vector<8x1xf32>
    %c0_i32_18 = arith.constant 0 : i32
    %53 = vector.broadcast %c0_i32_18 : i32 to vector<8x1xi32>
    %54 = arith.cmpi eq, %20, %53 : vector<8x1xi32>
    %55 = arith.select %54, %35, %49 : vector<8x1xi1>, vector<8x1xf32>
    %56 = arith.addf %52, %55 : vector<8x1xf32>
    %c0_i32_19 = arith.constant 0 : i32
    %57 = vector.broadcast %c0_i32_19 : i32 to vector<8x1xi32>
    %58 = arith.cmpi eq, %14, %57 : vector<8x1xi32>
    %59 = arith.select %58, %43, %49 : vector<8x1xi1>, vector<8x1xf32>
    %60 = arith.addf %56, %59 : vector<8x1xf32>
    %c0_i32_20 = arith.constant 0 : i32
    %61 = vector.broadcast %c0_i32_20 : i32 to vector<8x1xi32>
    %62 = arith.cmpi eq, %18, %61 : vector<8x1xi32>
    %63 = arith.select %62, %48, %49 : vector<8x1xi1>, vector<8x1xf32>
    %64 = arith.addf %60, %63 : vector<8x1xf32>
    %c1_i32_21 = arith.constant 1 : i32
    %65 = vector.broadcast %c1_i32_21 : i32 to vector<8x1xi32>
    %66 = arith.cmpi eq, %10, %65 : vector<8x1xi32>
    %67 = arith.select %66, %28, %49 : vector<8x1xi1>, vector<8x1xf32>
    %c1_i32_22 = arith.constant 1 : i32
    %68 = vector.broadcast %c1_i32_22 : i32 to vector<8x1xi32>
    %69 = arith.cmpi eq, %20, %68 : vector<8x1xi32>
    %70 = arith.select %69, %35, %49 : vector<8x1xi1>, vector<8x1xf32>
    %71 = arith.addf %67, %70 : vector<8x1xf32>
    %c1_i32_23 = arith.constant 1 : i32
    %72 = vector.broadcast %c1_i32_23 : i32 to vector<8x1xi32>
    %73 = arith.cmpi eq, %14, %72 : vector<8x1xi32>
    %74 = arith.select %73, %43, %49 : vector<8x1xi1>, vector<8x1xf32>
    %75 = arith.addf %71, %74 : vector<8x1xf32>
    %c1_i32_24 = arith.constant 1 : i32
    %76 = vector.broadcast %c1_i32_24 : i32 to vector<8x1xi32>
    %77 = arith.cmpi eq, %18, %76 : vector<8x1xi32>
    %78 = arith.select %77, %48, %49 : vector<8x1xi1>, vector<8x1xf32>
    %79 = arith.addf %75, %78 : vector<8x1xf32>
    %c2_i32_25 = arith.constant 2 : i32
    %80 = vector.broadcast %c2_i32_25 : i32 to vector<8x1xi32>
    %81 = arith.cmpi eq, %10, %80 : vector<8x1xi32>
    %82 = arith.select %81, %28, %49 : vector<8x1xi1>, vector<8x1xf32>
    %c2_i32_26 = arith.constant 2 : i32
    %83 = vector.broadcast %c2_i32_26 : i32 to vector<8x1xi32>
    %84 = arith.cmpi eq, %20, %83 : vector<8x1xi32>
    %85 = arith.select %84, %35, %49 : vector<8x1xi1>, vector<8x1xf32>
    %86 = arith.addf %82, %85 : vector<8x1xf32>
    %c2_i32_27 = arith.constant 2 : i32
    %87 = vector.broadcast %c2_i32_27 : i32 to vector<8x1xi32>
    %88 = arith.cmpi eq, %14, %87 : vector<8x1xi32>
    %89 = arith.select %88, %43, %49 : vector<8x1xi1>, vector<8x1xf32>
    %90 = arith.addf %86, %89 : vector<8x1xf32>
    %c2_i32_28 = arith.constant 2 : i32
    %91 = vector.broadcast %c2_i32_28 : i32 to vector<8x1xi32>
    %92 = arith.cmpi eq, %18, %91 : vector<8x1xi32>
    %93 = arith.select %92, %48, %49 : vector<8x1xi1>, vector<8x1xf32>
    %94 = arith.addf %90, %93 : vector<8x1xf32>
    %c3_i32_29 = arith.constant 3 : i32
    %95 = vector.broadcast %c3_i32_29 : i32 to vector<8x1xi32>
    %96 = arith.cmpi eq, %10, %95 : vector<8x1xi32>
    %97 = arith.select %96, %28, %49 : vector<8x1xi1>, vector<8x1xf32>
    %c3_i32_30 = arith.constant 3 : i32
    %98 = vector.broadcast %c3_i32_30 : i32 to vector<8x1xi32>
    %99 = arith.cmpi eq, %20, %98 : vector<8x1xi32>
    %100 = arith.select %99, %35, %49 : vector<8x1xi1>, vector<8x1xf32>
    %101 = arith.addf %97, %100 : vector<8x1xf32>
    %c3_i32_31 = arith.constant 3 : i32
    %102 = vector.broadcast %c3_i32_31 : i32 to vector<8x1xi32>
    %103 = arith.cmpi eq, %14, %102 : vector<8x1xi32>
    %104 = arith.select %103, %43, %49 : vector<8x1xi1>, vector<8x1xf32>
    %105 = arith.addf %101, %104 : vector<8x1xf32>
    %c3_i32_32 = arith.constant 3 : i32
    %106 = vector.broadcast %c3_i32_32 : i32 to vector<8x1xi32>
    %107 = arith.cmpi eq, %18, %106 : vector<8x1xi32>
    %108 = arith.select %107, %48, %49 : vector<8x1xi1>, vector<8x1xf32>
    %109 = arith.addf %105, %108 : vector<8x1xf32>
    %110 = tpu.concatenate %64, %79, %94, %109, %49, %49, %49, %49 in 1 : vector<8x1xf32>, vector<8x1xf32>, vector<8x1xf32>, vector<8x1xf32>, vector<8x1xf32>, vector<8x1xf32>, vector<8x1xf32>, vector<8x1xf32> -> vector<8x8xf32>
    %c0_33 = arith.constant 0 : index
    %c0_34 = arith.constant 0 : index
    %111 = vector.load %arg6[%c0_33, %c0_34] : memref<8x1152xf32, #tpu.memory_space<vmem>>, vector<8x1152xf32>
    %cst_35 = arith.constant dense<0.000000e+00> : vector<8x1152xf32>
    %112 = tpu.matmul %110, %111, %cst_35 {dimension_numbers = #tpu.dot_dimension_numbers<[1], [0], [0], [1], [0, 0, 1, 1], [], []>} : vector<8x8xf32>, vector<8x1152xf32>, vector<8x1152xf32> -> vector<8x1152xf32>
    %113 = vector.broadcast %64 : vector<8x1xf32> to vector<8x64xf32>
    %114 = arith.mulf %113, %0 : vector<8x64xf32>
    %115 = vector.broadcast %79 : vector<8x1xf32> to vector<8x64xf32>
    %116 = arith.mulf %115, %0 : vector<8x64xf32>
    %117 = vector.broadcast %94 : vector<8x1xf32> to vector<8x64xf32>
    %118 = arith.mulf %117, %0 : vector<8x64xf32>
    %119 = vector.broadcast %109 : vector<8x1xf32> to vector<8x64xf32>
    %120 = arith.mulf %119, %0 : vector<8x64xf32>
    %121 = tpu.concatenate %114, %116, %118, %120 in 1 : vector<8x64xf32>, vector<8x64xf32>, vector<8x64xf32>, vector<8x64xf32> -> vector<8x256xf32>
    %122 = arith.truncf %121 : vector<8x256xf32> to vector<8x256xbf16>
    %c0_36 = arith.constant 0 : index
    %c0_37 = arith.constant 0 : index
    %123 = vector.load %arg3[%c0_36, %c0_37] : memref<256x512xbf16, #tpu.memory_space<vmem>>, vector<256x512xbf16>
    %cst_38 = arith.constant dense<0.000000e+00> : vector<8x512xf32>
    %124 = tpu.matmul %122, %123, %cst_38 {dimension_numbers = #tpu.dot_dimension_numbers<[1], [0], [0], [1], [0, 0, 1, 1], [], []>} : vector<8x256xbf16>, vector<256x512xbf16>, vector<8x512xf32> -> vector<8x512xf32>
    %125 = vector.extract_strided_slice %112 {offsets = [0, 0], sizes = [8, 512], strides = [1, 1]} : vector<8x1152xf32> to vector<8x512xf32>
    %126 = arith.addf %124, %125 : vector<8x512xf32>
    %cst_39 = arith.constant 0.000000e+00 : f32
    %127 = vector.broadcast %cst_39 : f32 to vector<8x512xf32>
    %128 = arith.maximumf %126, %127 : vector<8x512xf32>
    %129 = vector.broadcast %64 : vector<8x1xf32> to vector<8x512xf32>
    %130 = arith.mulf %129, %128 : vector<8x512xf32>
    %131 = vector.broadcast %79 : vector<8x1xf32> to vector<8x512xf32>
    %132 = arith.mulf %131, %128 : vector<8x512xf32>
    %133 = vector.broadcast %94 : vector<8x1xf32> to vector<8x512xf32>
    %134 = arith.mulf %133, %128 : vector<8x512xf32>
    %135 = vector.broadcast %109 : vector<8x1xf32> to vector<8x512xf32>
    %136 = arith.mulf %135, %128 : vector<8x512xf32>
    %137 = tpu.concatenate %130, %132, %134, %136 in 1 : vector<8x512xf32>, vector<8x512xf32>, vector<8x512xf32>, vector<8x512xf32> -> vector<8x2048xf32>
    %138 = arith.truncf %137 : vector<8x2048xf32> to vector<8x2048xbf16>
    %c0_40 = arith.constant 0 : index
    %c0_41 = arith.constant 0 : index
    %139 = vector.load %arg4[%c0_40, %c0_41] : memref<2048x512xbf16, #tpu.memory_space<vmem>>, vector<2048x512xbf16>
    %cst_42 = arith.constant dense<0.000000e+00> : vector<8x512xf32>
    %140 = tpu.matmul %138, %139, %cst_42 {dimension_numbers = #tpu.dot_dimension_numbers<[1], [0], [0], [1], [0, 0, 1, 1], [], []>} : vector<8x2048xbf16>, vector<2048x512xbf16>, vector<8x512xf32> -> vector<8x512xf32>
    %141 = vector.extract_strided_slice %112 {offsets = [0, 512], sizes = [8, 512], strides = [1, 1]} : vector<8x1152xf32> to vector<8x512xf32>
    %142 = arith.addf %140, %141 : vector<8x512xf32>
    %cst_43 = arith.constant 0.000000e+00 : f32
    %143 = vector.broadcast %cst_43 : f32 to vector<8x512xf32>
    %144 = arith.maximumf %142, %143 : vector<8x512xf32>
    %145 = vector.broadcast %64 : vector<8x1xf32> to vector<8x512xf32>
    %146 = arith.mulf %145, %144 : vector<8x512xf32>
    %147 = vector.broadcast %79 : vector<8x1xf32> to vector<8x512xf32>
    %148 = arith.mulf %147, %144 : vector<8x512xf32>
    %149 = vector.broadcast %94 : vector<8x1xf32> to vector<8x512xf32>
    %150 = arith.mulf %149, %144 : vector<8x512xf32>
    %151 = vector.broadcast %109 : vector<8x1xf32> to vector<8x512xf32>
    %152 = arith.mulf %151, %144 : vector<8x512xf32>
    %153 = tpu.concatenate %146, %148, %150, %152 in 1 : vector<8x512xf32>, vector<8x512xf32>, vector<8x512xf32>, vector<8x512xf32> -> vector<8x2048xf32>
    %154 = arith.truncf %153 : vector<8x2048xf32> to vector<8x2048xbf16>
    %c0_44 = arith.constant 0 : index
    %c0_45 = arith.constant 0 : index
    %155 = vector.load %arg5[%c0_44, %c0_45] : memref<2048x128xbf16, #tpu.memory_space<vmem>>, vector<2048x128xbf16>
    %cst_46 = arith.constant dense<0.000000e+00> : vector<8x128xf32>
    %156 = tpu.matmul %154, %155, %cst_46 {dimension_numbers = #tpu.dot_dimension_numbers<[1], [0], [0], [1], [0, 0, 1, 1], [], []>} : vector<8x2048xbf16>, vector<2048x128xbf16>, vector<8x128xf32> -> vector<8x128xf32>
    %157 = vector.extract_strided_slice %112 {offsets = [0, 1024], sizes = [8, 128], strides = [1, 1]} : vector<8x1152xf32> to vector<8x128xf32>
    %158 = arith.addf %156, %157 : vector<8x128xf32>
    %c0_47 = arith.constant 0 : index
    %c0_48 = arith.constant 0 : index
    %159 = vector.load %arg7[%c0_47, %c0_48] : memref<8x128xf32, #tpu.memory_space<vmem>>, vector<8x128xf32>
    tpu.vector_store %arg7[%c0_47, %c0_48], %158 {strides = array<i32>} : memref<8x128xf32, #tpu.memory_space<vmem>>, vector<8x128xf32>,
    return
  }
  func.func @transform_0(%arg0: i32) -> (i32, i32) {
    %c0_i32 = arith.constant 0 : i32
    %c0_i32_0 = arith.constant 0 : i32
    return %arg0, %c0_i32 : i32, i32
  }
  func.func @transform_1(%arg0: i32) -> (i32, i32) {
    %c0_i32 = arith.constant 0 : i32
    %c0_i32_0 = arith.constant 0 : i32
    return %arg0, %c0_i32 : i32, i32
  }
  func.func @transform_2(%arg0: i32) -> (i32, i32) {
    %c0_i32 = arith.constant 0 : i32
    %c0_i32_0 = arith.constant 0 : i32
    %c0_i32_1 = arith.constant 0 : i32
    return %c0_i32, %c0_i32_0 : i32, i32
  }
  func.func @transform_3(%arg0: i32) -> (i32, i32) {
    %c0_i32 = arith.constant 0 : i32
    %c0_i32_0 = arith.constant 0 : i32
    %c0_i32_1 = arith.constant 0 : i32
    return %c0_i32, %c0_i32_0 : i32, i32
  }
  func.func @transform_4(%arg0: i32) -> (i32, i32) {
    %c0_i32 = arith.constant 0 : i32
    %c0_i32_0 = arith.constant 0 : i32
    %c0_i32_1 = arith.constant 0 : i32
    return %c0_i32, %c0_i32_0 : i32, i32
  }
  func.func @transform_5(%arg0: i32) -> (i32, i32) {
    %c0_i32 = arith.constant 0 : i32
    %c0_i32_0 = arith.constant 0 : i32
    %c0_i32_1 = arith.constant 0 : i32
    return %c0_i32, %c0_i32_0 : i32, i32
  }
  func.func @transform_6(%arg0: i32) -> (i32, i32) {
    %c0_i32 = arith.constant 0 : i32
    %c0_i32_0 = arith.constant 0 : i32
    return %arg0, %c0_i32 : i32, i32
  }
}

</mosaic_0001>

<bundles_post_ra>
// kernel: tpu_custom_call.1
= control target key start
LH: loop header
LB: loop body
LE: loop exit
PB: predicated region body
PF: predicated region fallthrough
CT: control target
= control target key end

     0   :  { %11 = vsyncpa [#allocation3], 0  ;;  %s8672_s0 = inlined_call_operand.hbm [shape: f32[8,64], index: 0, kind: input, shape index: {}]   ;;  %s8673_s1 = inlined_call_operand.vmem [shape: f32[8,1], index: 1, kind: input, shape index: {}]   ;;  %s8674_s2 = inlined_call_operand.hbm [shape: bf16[256,512], index: 2, kind: input, shape index: {}]   ;;  %s8675_s3 = inlined_call_operand.hbm [shape: bf16[2048,512], index: 3, kind: input, shape index: {}]   ;;  %s8676_s4 = inlined_call_operand.hbm [shape: bf16[2048,128], index: 4, kind: input, shape index: {}]   ;;  %s8677_s5 = inlined_call_operand.hbm [shape: f32[8,1152], index: 5, kind: input, shape index: {}]   ;;  %s8678_s6 = inlined_call_operand.hbm [shape: f32[8,128], index: 6, kind: output, shape index: {}]  }
   0x1   :  { %12 = vsyncpa [#allocation6], 0 }
   0x2   :  { %13 = vsyncpa [#allocation9], 0 }
   0x3   :  { %14 = vsyncpa [#allocation4], 0  ;;  %s8319_s21 = smov [#allocation5]   ;;  %s8179_s25 = scalar_lea.hbm %s8674_s2, 8192 }
   0x4   :  { %s32_s22 = sshll.u32 %s8319_s21, 4  ;;  %p8180_p0 = scmp.ne.s32.totalorder %s8674_s2, %s8179_s25  ;;  %s33_s22 = int_to_ptr.vmem [resolvable:$true] %s32_s22 }
   0x5   :  { %p8183_p1 = scmp.lt.u32.totalorder %s8179_s25, %s8674_s2 }
   0x7   :  { %p8185_p2 = pnand %p8183_p1, %p8180_p0 }
   0x9   :  { %8188 = shalt.err (!%p8185_p2)
}
   0xa   :  { %s8189_s30 = scalar_lea.vmem %s33_s22, 8192  ;;  %p8194_p4 = scmp.lt.s32.totalorder %s33_s22, %s33_s22 }
   0xb   :  { %p8190_p3 = scmp.ne.s32.totalorder %s33_s22, %s8189_s30  ;;  %p8195_p5 = scmp.lt.s32.totalorder %s8189_s30, %s8189_s30 }
   0xd   :  { %p8196_p6 = por %p8195_p5, %p8194_p4 }
   0xf   :  { %p8197_p7 = pnand %p8196_p6, %p8190_p3 }
  0x11   :  { %8200 = shalt.err (!%p8197_p7)
}
  0x12   :  { %s8320_s7 = smov 256   ;;  %s8321_s8 = smov 16  }
  0x13   :  { %38 = dma.hbm_to_vmem [thread:$0]  %s8674_s2, 8192, %s33_s22, [#allocation6], %s8320_s7, %s8320_s7, %s8321_s8  }
  0x14   :  { %s8322_s11 = smov [#allocation8]   ;;  %s8201_s15 = scalar_lea.hbm %s8676_s4, 16384 }
  0x15   :  { %s56_s12 = sshll.u32 %s8322_s11, 4  ;;  %p8202_p8 = scmp.ne.s32.totalorder %s8676_s4, %s8201_s15  ;;  %s57_s12 = int_to_ptr.vmem [resolvable:$true] %s56_s12 }
  0x16   :  { %p8205_p9 = scmp.lt.u32.totalorder %s8201_s15, %s8676_s4 }
  0x18   :  { %p8207_p10 = pnand %p8205_p9, %p8202_p8 }
  0x1a   :  { %8210 = shalt.err (!%p8207_p10)
}
  0x1b   :  { %s8211_s20 = scalar_lea.vmem %s57_s12, 16384  ;;  %p8216_p12 = scmp.lt.s32.totalorder %s57_s12, %s57_s12 }
  0x1c   :  { %p8212_p11 = scmp.ne.s32.totalorder %s57_s12, %s8211_s20  ;;  %p8217_p13 = scmp.lt.s32.totalorder %s8211_s20, %s8211_s20 }
  0x1e   :  { %p8218_p0 = por %p8217_p13, %p8216_p12 }
  0x20   :  { %p8219_p1 = pnand %p8218_p0, %p8212_p11 }
  0x22   :  { %8222 = shalt.err (!%p8219_p1)
}
  0x23   :  { %s8323_s2 = smov 64   ;;  %s8324_s21 = smov 4  }
  0x24   :  { %62 = dma.hbm_to_vmem [thread:$0]  %s8676_s4, 16384, %s57_s12, [#allocation9], %s8323_s2, %s8323_s2, %s8324_s21  }
  0x25   :  { %s8325_s24 = smov [#allocation2]   ;;  %s8326_s26 = smov [#allocation7]  }
  0x26   :  { %s21_s25 = sshll.u32 %s8325_s24, 4  ;;  %s44_s27 = sshll.u32 %s8326_s26, 4  ;;  %s22_s25 = int_to_ptr.vmem [resolvable:$true] %s21_s25  ;;  %s8399_s27 = int_to_ptr.vmem [resolvable:$true] %s44_s27 }
  0x27   :  { %s8223_s30 = scalar_lea.hbm %s8672_s0, 128 }
  0x28   :  { %p8224_p2 = scmp.ne.s32.totalorder %s8672_s0, %s8223_s30  ;;  %p8227_p3 = scmp.lt.u32.totalorder %s8223_s30, %s8672_s0 }
  0x2a   :  { %p8229_p4 = pnand %p8227_p3, %p8224_p2 }
  0x2c   :  { %8232 = shalt.err (!%p8229_p4)
}
  0x2d   :  { %s8233_s4 = scalar_lea.vmem %s22_s25, 128  ;;  %p8238_p6 = scmp.lt.s32.totalorder %s22_s25, %s22_s25 }
  0x2e   :  { %p8234_p5 = scmp.ne.s32.totalorder %s22_s25, %s8233_s4  ;;  %p8239_p7 = scmp.lt.s32.totalorder %s8233_s4, %s8233_s4 }
  0x30   :  { %p8240_p8 = por %p8239_p7, %p8238_p6 }
  0x32   :  { %p8241_p9 = pnand %p8240_p8, %p8234_p5 }
  0x34   :  { %8244 = shalt.err (!%p8241_p9)
}
  0x35   :  { %24 = dma.hbm_to_vmem [thread:$0]  %s8672_s0, 128, %s22_s25, [#allocation3]  }
  0x36   :  { %s8245_s17 = scalar_lea.hbm %s8675_s3, 65536 }
  0x37   :  { %p8246_p10 = scmp.ne.s32.totalorder %s8675_s3, %s8245_s17  ;;  %p8249_p11 = scmp.lt.u32.totalorder %s8245_s17, %s8675_s3 }
  0x39   :  { %p8251_p12 = pnand %p8249_p11, %p8246_p10 }
  0x3b   :  { %8254 = shalt.err (!%p8251_p12)
}
  0x3c   :  { %s8255_s22 = scalar_lea.vmem %s8399_s27, 65536  ;;  %p8260_p0 = scmp.lt.s32.totalorder %s8399_s27, %s8399_s27 }
  0x3d   :  { %p8256_p13 = scmp.ne.s32.totalorder %s8399_s27, %s8255_s22  ;;  %p8261_p1 = scmp.lt.s32.totalorder %s8255_s22, %s8255_s22 }
  0x3f   :  { %p8262_p2 = por %p8261_p1, %p8260_p0 }
  0x41   :  { %p8263_p3 = pnand %p8262_p2, %p8256_p13 }
  0x43   :  { %8266 = shalt.err (!%p8263_p3)
}
  0x44   :  { %50 = dma.hbm_to_vmem [thread:$0]  %s8675_s3, 65536, %s8399_s27, [#allocation6], %s8320_s7, %s8320_s7, %s8321_s8  }
  0x45   :  { %s8327_s24 = smov [#allocation10]   ;;  %s8267_s29 = scalar_lea.hbm %s8677_s5, 1152 }
  0x46   :  { %s69_s25 = sshll.u32 %s8327_s24, 4  ;;  %p8268_p4 = scmp.ne.s32.totalorder %s8677_s5, %s8267_s29  ;;  %s70_s25 = int_to_ptr.vmem [resolvable:$true] %s69_s25 }
  0x47   :  { %p8271_p5 = scmp.lt.u32.totalorder %s8267_s29, %s8677_s5 }
  0x49   :  { %p8273_p6 = pnand %p8271_p5, %p8268_p4 }
  0x4b   :  { %8276 = shalt.err (!%p8273_p6)
}
  0x4c   :  { %s8277_s13 = scalar_lea.vmem %s70_s25, 1152  ;;  %p8282_p8 = scmp.lt.s32.totalorder %s70_s25, %s70_s25 }
  0x4d   :  { %p8278_p7 = scmp.ne.s32.totalorder %s70_s25, %s8277_s13  ;;  %p8283_p9 = scmp.lt.s32.totalorder %s8277_s13, %s8277_s13 }
  0x4f   :  { %p8284_p10 = por %p8283_p9, %p8282_p8 }
  0x51   :  { %p8285_p11 = pnand %p8284_p10, %p8278_p7 }
  0x53   :  { %8288 = shalt.err (!%p8285_p11)
}
  0x54   :  { %72 = dma.hbm_to_vmem [thread:$0]  %s8677_s5, 1152, %s70_s25, [#allocation9]  }
  0x55   :  { %8311 = dma.done.wait [#allocation3], 128  }
  0x56   :  { %8312 = vsyncadd [#allocation3], 4294967168 }
  0x57   :  { %8313 = dma.done.wait [#allocation6], 73728  }
  0x58   :  { %8314 = vsyncadd [#allocation6], 4294893568 }
  0x59   :  { %8315 = dma.done.wait [#allocation9], 17536  }
  0x5a   :  { %8316 = vsyncadd [#allocation9], 4294949760  ;;  %v8328_v0 = vmov 0   ;;  %v90_v1 = vld [vmem:[%s8673_s1] sm:$0xff]  ;;  %v189_v40 = vld [vmem:[#allocation10 + $0x8] sm:$0xff]  ;;  %s8329_s1 = smov 3  }
  0x5b   :  { %7180 = vset.pattern.permute.xlu1 %v8328_v0  ;;  %7181 = vset.pattern.permute.xlu0 %v8328_v0  ;;  %v91_v2 = vmul.f32 0.63661975, %v90_v1  ;;  %v191_v41 = vld [vmem:[#allocation10 + $0x18] sm:$0xff]  ;;  %v188_v42 = vld [vmem:[#allocation10] sm:$0xff]  ;;  %v190_v46 = vld [vmem:[#allocation10 + $0x10] sm:$0xff]  ;;  %s8330_s5 = smov 1  }
  0x5c   :  { %201 = vmatprep.subr.mxu0 %v189_v40  ;;  %272 = vmatprep.subr.mxu1 %v191_v41  ;;  %v193_v52 = vld [vmem:[#allocation10 + $0x28] sm:$0xff]  ;;  %v195_v53 = vld [vmem:[#allocation10 + $0x38] sm:$0xff]  ;;  %v8331_v61 = vmov 0.0   ;;  %s8332_s4 = smov 2   ;;  %v7217_v41 = vld [vmem:[#allocation5 + $0xa0] ss:$16 sps:$4 sm:$0xff]  }
  0x5d   :  { %v92_v3 = vfloor.f32 %v91_v2  ;;  %202 = vmatpush1.msra.mxu0 %v188_v42  ;;  %273 = vmatpush1.msra.mxu1 %v190_v46  ;;  %v7214_v40 = vld [vmem:[#allocation5 + $0x88] ss:$16 sps:$4 sm:$0xff]   ;;  %v7222_v42 = vld [vmem:[#allocation5 + $0xac] ss:$16 sps:$4 sm:$0xff]  }
  0x5e   :  { %343 = vmatprep.subr.mxu0 %v193_v52  ;;  %414 = vmatprep.subr.mxu1 %v195_v53  ;;  %v7228_v46 = vld [vmem:[#allocation5 + $0xcc] ss:$16 sps:$4 sm:$0xff]   ;;  %v7232_v52 = vld [vmem:[#allocation5 + $0xe8] ss:$16 sps:$4 sm:$0xff]   ;;  %v7235_v53 = vld [vmem:[#allocation5 + $0x100] ss:$16 sps:$4 sm:$0xff]  }
  0x5f   :  { %v93_v4 = vsub.f32 %v91_v2, %v92_v3  ;;  %v7162_v5 = vtrunc.f32 %v92_v3  ;;  %265 = vmatprep.mubr.f32.mxu0 %v8331_v61  ;;  %336 = vmatprep.mubr.f32.mxu1 %v8331_v61 }
  0x61   :  { %v7163_v6 = vcvt.f32.s32 %v7162_v5  ;;  %v102_v7 = vmul.f32 %v93_v4, %v93_v4  ;;  %v104_v8 = vmul.f32 -0.5, %v93_v4  ;;  %v112_v9 = vmul.f32 0.5, %v93_v4 }
  0x63   :  { %v6217_v10 = vadd.s32 4294967295, %v7163_v6  ;;  %v97_v11 = vadd.s32 1, %v7163_v6  ;;  %v99_v12 = vadd.s32 2, %v7163_v6  ;;  %v8448_v13 = vand.u32 3, %v7163_v6 }
  0x64   :  { %v103_v14 = vmul.f32 %v102_v7, %v93_v4  ;;  %v105_v15 = vadd.f32 %v104_v8, %v102_v7  ;;  %v108_v16 = vmul.f32 2.5, %v102_v7  ;;  %v113_v17 = vmul.f32 2.0, %v102_v7  ;;  %v192_v8 = vld [vmem:[#allocation10 + $0x20] sm:$0xff] }
  0x65   :  { %v96_v18 = vand.u32 3, %v6217_v10  ;;  %v8450_v19 = vand.u32 3, %v97_v11  ;;  %v8452_v20 = vand.u32 3, %v99_v12  ;;  %v116_v21 = vmul.f32 -0.5, %v102_v7  ;;  %v194_v10 = vld [vmem:[#allocation10 + $0x30] sm:$0xff] }
  0x66   :  { %v106_v22 = vmul.f32 0.5, %v103_v14  ;;  %v109_v23 = vsub.f32 1.0, %v108_v16  ;;  %v110_v24 = vmul.f32 1.5, %v103_v14  ;;  %v114_v25 = vadd.f32 %v113_v17, %v112_v9  ;;  %v7189_v11 = vld [vmem:[#allocation5 + $0x4] ss:$16 sps:$4 sm:$0xff]  }
  0x67   :  { %vm151_vm0 = vcmp.eq.s32.totalorder %v96_v18, 3  ;;  %vm153_vm1 = vcmp.eq.s32.totalorder %v8448_v13, 3  ;;  %vm156_vm2 = vcmp.eq.s32.totalorder %v8450_v19, 3  ;;  %vm159_vm3 = vcmp.eq.s32.totalorder %v8452_v20, 3  ;;  %v196_v14 = vld [vmem:[#allocation10 + $0x40] sm:$0xff] }
  0x68   :  { %v107_v26 = vsub.f32 %v105_v15, %v106_v22  ;;  %v111_v27 = vadd.f32 %v110_v24, %v109_v23  ;;  %v115_v28 = vsub.f32 %v114_v25, %v110_v24  ;;  %v117_v29 = vadd.f32 %v116_v21, %v106_v22  ;;  %v7187_v15 = vld [vmem:[#allocation5] ss:$16 sps:$4 sm:$0xff]   ;;  %v7192_v16 = vld [vmem:[#allocation5 + $0xc] ss:$16 sps:$4 sm:$0xff]   ;;  %v7190_v17 = vld [vmem:[#allocation5 + $0x8] ss:$16 sps:$4 sm:$0xff]  }
  0x69   :  { %vm129_vm4 = vcmp.eq.s32.totalorder %v96_v18, 1  ;;  %vm131_vm5 = vcmp.eq.s32.totalorder %v8448_v13, 1  ;;  %vm134_vm6 = vcmp.eq.s32.totalorder %v8450_v19, 1  ;;  %vm137_vm7 = vcmp.eq.s32.totalorder %v8452_v20, 1  ;;  %v7198_v21 = vld [vmem:[#allocation5 + $0x2c] ss:$16 sps:$4 sm:$0xff]  }
  0x6a   :  { %v152_v30 = vsel %vm151_vm0, %v107_v26, 0.0  ;;  %v154_v31 = vsel %vm153_vm1, %v111_v27, 0.0  ;;  %v157_v32 = vsel %vm156_vm2, %v115_v28, 0.0  ;;  %v160_v33 = vsel %vm159_vm3, %v117_v29, 0.0  ;;  %v7201_v22 = vld [vmem:[#allocation5 + $0x44] ss:$16 sps:$4 sm:$0xff]  }
  0x6b   :  { %v155_v34 = vadd.f32 %v154_v31, %v152_v30  ;;  %v130_v35 = vsel %vm129_vm4, %v107_v26, 0.0  ;;  %v132_v36 = vsel %vm131_vm5, %v111_v27, 0.0  ;;  %v135_v37 = vsel %vm134_vm6, %v115_v28, 0.0  ;;  %v7196_v23 = vld [vmem:[#allocation5 + $0x28] ss:$16 sps:$4 sm:$0xff]  }
  0x6c   :  { %v133_v38 = vadd.f32 %v132_v36, %v130_v35  ;;  %v138_v39 = vsel %vm137_vm7, %v117_v29, 0.0  ;;  %vm140_vm8 = vcmp.eq.s32.totalorder %v96_v18, 2  ;;  %vm142_vm9 = vcmp.eq.s32.totalorder %v8448_v13, 2  ;;  %v7199_v25 = vld [vmem:[#allocation5 + $0x40] ss:$16 sps:$4 sm:$0xff]  }
  0x6d   :  { %v158_v43 = vadd.f32 %v157_v32, %v155_v34  ;;  %v141_v44 = vsel %vm140_vm8, %v107_v26, 0.0  ;;  %v143_v45 = vsel %vm142_vm9, %v111_v27, 0.0  ;;  %vm145_vm10 = vcmp.eq.s32.totalorder %v8450_v19, 2  ;;  %v7202_v31 = vld [vmem:[#allocation5 + $0x48] ss:$16 sps:$4 sm:$0xff]  }
  0x6e   :  { %v136_v47 = vadd.f32 %v135_v37, %v133_v38  ;;  %v144_v48 = vadd.f32 %v143_v45, %v141_v44  ;;  %v146_v49 = vsel %vm145_vm10, %v115_v28, 0.0  ;;  %vm148_vm11 = vcmp.eq.s32.totalorder %v8452_v20, 2  ;;  %v7205_v32 = vld [vmem:[#allocation5 + $0x60] ss:$16 sps:$4 sm:$0xff]   ;;  %v7213_v35 = vld [vmem:[#allocation5 + $0x84] ss:$16 sps:$4 sm:$0xff]  }
  0x6f   :  { %v161_v50 = vadd.f32 %v160_v33, %v158_v43  ;;  %v149_v51 = vsel %vm148_vm11, %v117_v29, 0.0  ;;  %vm118_vm12 = vcmp.eq.s32.totalorder %v96_v18, 0  ;;  %vm120_vm13 = vcmp.eq.s32.totalorder %v8448_v13, 0  ;;  %v7195_v18 = vld [vmem:[#allocation5 + $0x24] ss:$16 sps:$4 sm:$0xff]  }
  0x70   :  { %v139_v54 = vadd.f32 %v138_v39, %v136_v47  ;;  %v147_v55 = vadd.f32 %v146_v49, %v144_v48  ;;  %v119_v56 = vsel %vm118_vm12, %v107_v26, 0.0  ;;  %v121_v57 = vsel %vm120_vm13, %v111_v27, 0.0  ;;  %v7204_v26 = vld [vmem:[#allocation5 + $0x4c] ss:$16 sps:$4 sm:$0xff]   ;;  %v7208_v36 = vld [vmem:[#allocation5 + $0x68] ss:$16 sps:$4 sm:$0xff]  }
  0x71   :  { %171 = vrot.lane.b32.xlu1 %v161_v50, %s8329_s1  ;;  %v122_v58 = vadd.f32 %v121_v57, %v119_v56  ;;  %vm123_vm14 = vcmp.eq.s32.totalorder %v8450_v19, 0  ;;  %vm126_vm15 = vcmp.eq.s32.totalorder %v8452_v20, 0  ;;  %vm174_vm0 = vcmask 7168   ;;  %v8470_v19 = vld [vmem:[#allocation2] sm:$0xff]  ;;  %v7193_v20 = vld [vmem:[#allocation5 + $0x20] ss:$16 sps:$4 sm:$0xff]  }
  0x72   :  { %163 = vrot.lane.b32.xlu0 %v139_v54, %s8330_s5  ;;  %v150_v59 = vadd.f32 %v149_v51, %v147_v55  ;;  %v124_v60 = vsel %vm123_vm14, %v115_v28, 0.0  ;;  %v127_v63 = vsel %vm126_vm15, %v117_v29, 0.0  ;;  %vm176_vm1 = vcmask 15360   ;;  %v7207_v28 = vld [vmem:[#allocation5 + $0x64] ss:$16 sps:$4 sm:$0xff]  }
  0x73   :  { %v125_v62 = vadd.f32 %v124_v60, %v122_v58  ;;  %vm178_vm2 = vcmask 23552   ;;  %vm180_vm3 = vcmask 31744   ;;  %vm182_vm4 = vcmask 39936   ;;  %v7210_v33 = vld [vmem:[#allocation5 + $0x6c] ss:$16 sps:$4 sm:$0xff]  }
  0x74   :  { %vm184_vm5 = vcmask 48128   ;;  %vm186_vm6 = vcmask 56320   ;;  %vm197_vm7 = vcmask 64512   ;;  %vm8333_vm8 = vmmov 0   ;;  %v7211_v37 = vld [vmem:[#allocation5 + $0x80] ss:$16 sps:$4 sm:$0xff]  }
  0x75   :  { %572 = vperm.xlu1 %7180, %v161_v50   ;;  %v128_v0 = vadd.f32 %v127_v63, %v125_v62  ;;  %v7216_v38 = vld [vmem:[#allocation5 + $0x8c] ss:$16 sps:$4 sm:$0xff]   ;;  %v7219_v39 = vld [vmem:[#allocation5 + $0xa4] ss:$16 sps:$4 sm:$0xff]   ;;  %v7220_v44 = vld [vmem:[#allocation5 + $0xa8] ss:$16 sps:$4 sm:$0xff]  }
  0x76   :  { %167 = vrot.lane.b32.xlu0 %v150_v59, %s8332_s4  ;;  %v7225_v43 = vld [vmem:[#allocation5 + $0xc4] ss:$16 sps:$4 sm:$0xff]   ;;  %v7223_v45 = vld [vmem:[#allocation5 + $0xc0] ss:$16 sps:$4 sm:$0xff]   ;;  %v7226_v48 = vld [vmem:[#allocation5 + $0xc8] ss:$16 sps:$4 sm:$0xff]  }
  0x77   :  { %v7231_v47 = vld [vmem:[#allocation5 + $0xe4] ss:$16 sps:$4 sm:$0xff]   ;;  %v7229_v49 = vld [vmem:[#allocation5 + $0xe0] ss:$16 sps:$4 sm:$0xff]   ;;  %v7234_v50 = vld [vmem:[#allocation5 + $0xec] ss:$16 sps:$4 sm:$0xff]  }
  0x78   :  { %v7237_v51 = vld [vmem:[#allocation5 + $0x104] ss:$16 sps:$4 sm:$0xff]   ;;  %v7238_v56 = vld [vmem:[#allocation5 + $0x108] ss:$16 sps:$4 sm:$0xff]   ;;  %v7241_v57 = vld [vmem:[#allocation5 + $0x120] ss:$16 sps:$4 sm:$0xff]  }
  0x79   :  { %567 = vperm.xlu1 %7180, %v150_v59   ;;  %v7243_v55 = vld [vmem:[#allocation5 + $0x124] ss:$16 sps:$4 sm:$0xff]   ;;  %v7246_v58 = vld [vmem:[#allocation5 + $0x12c] ss:$16 sps:$4 sm:$0xff]   ;;  %v7244_v60 = vld [vmem:[#allocation5 + $0x128] ss:$16 sps:$4 sm:$0xff]  }
  0x7a   :  { %562 = vperm.xlu0 %7181, %v139_v54   ;;  %v7240_v54 = vld [vmem:[#allocation5 + $0x10c] ss:$16 sps:$4 sm:$0xff]   ;;  %v7249_v59 = vld [vmem:[#allocation5 + $0x144] ss:$16 sps:$4 sm:$0xff]   ;;  %vm584_vm9 = vcmask 523264  }
  0x7b   :  { %v7252_v62 = vld [vmem:[#allocation5 + $0x14c] ss:$16 sps:$4 sm:$0xff]   ;;  %v7255_v63 = vld [vmem:[#allocation5 + $0x164] ss:$16 sps:$4 sm:$0xff]  }
  0x7d   :  { %557 = vperm.xlu1 %7180, %v128_v0  }
  0xe3   :  { %v172_v2 = vpop.permute.xlu1 %171 }
  0xe4   :  { %v164_v1 = vpop.permute.xlu0 %163 }
  0xe5   :  { %v175_v3 = vsel %vm174_vm0, %v128_v0, %v164_v1  ;;  %v7250_v0 = vld [vmem:[#allocation5 + $0x148] ss:$16 sps:$4 sm:$0xff]   ;;  %v7253_v1 = vld [vmem:[#allocation5 + $0x160] ss:$16 sps:$4 sm:$0xff]  }
  0xe8   :  { %v168_v4 = vpop.permute.xlu0 %167 }
  0xe9   :  { %v177_v5 = vsel %vm176_vm1, %v175_v3, %v168_v4  ;;  %v7261_v3 = vld [vmem:[#allocation5 + $0x184] ss:$16 sps:$4 sm:$0xff]   ;;  %v7256_v4 = vld [vmem:[#allocation5 + $0x168] ss:$16 sps:$4 sm:$0xff]  }
  0xea   :  { %v179_v6 = vsel %vm178_vm2, %v177_v5, %v172_v2  ;;  %v7258_v2 = vld [vmem:[#allocation5 + $0x16c] ss:$16 sps:$4 sm:$0xff]   ;;  %v7259_v5 = vld [vmem:[#allocation5 + $0x180] ss:$16 sps:$4 sm:$0xff]  }
  0xeb   :  { %v181_v7 = vsel %vm180_vm3, %v179_v6, 0.0  ;;  %v7264_v6 = vld [vmem:[#allocation5 + $0x18c] ss:$16 sps:$4 sm:$0xff]  }
  0xec   :  { %v183_v9 = vsel %vm182_vm4, %v181_v7, 0.0  ;;  %v7267_v7 = vld [vmem:[#allocation5 + $0x1a4] ss:$16 sps:$4 sm:$0xff]  }
  0xed   :  { %v185_v12 = vsel %vm184_vm5, %v183_v9, 0.0  ;;  %v7265_v9 = vld [vmem:[#allocation5 + $0x1a0] ss:$16 sps:$4 sm:$0xff]  }
  0xee   :  { %v187_v13 = vsel %vm186_vm6, %v185_v12, 0.0  ;;  %v7268_v12 = vld [vmem:[#allocation5 + $0x1a8] ss:$16 sps:$4 sm:$0xff]  }
  0xef   :  { %6218 = vmatmul.mubr.msk.f32.vlgmr.msra.gmra.mrb[0].mxu0 %vm197_vm7, %v187_v13  ;;  %6219 = vmatmul.mubr.msk.f32.vlgmr.msra.gmra.mrb[0].mxu1 %vm197_vm7, %v187_v13 }
  0xf0   :  { %344 = vmatpush1.msra.mxu0 %v192_v8  ;;  %407 = vmatprep.mubr.f32.mxu0 %v8331_v61  ;;  %v7262_v8 = vld [vmem:[#allocation5 + $0x188] ss:$16 sps:$4 sm:$0xff]  }
  0xf1   :  { %415 = vmatpush1.msra.mxu1 %v194_v10  ;;  %478 = vmatprep.mubr.f32.mxu1 %v8331_v61  ;;  %v7270_v10 = vld [vmem:[#allocation5 + $0x1ac] ss:$16 sps:$4 sm:$0xff]  }
  0xf2   :  { %7105 = vmatprep.subr.mxu0 %v8331_v61  ;;  %973 = vmatprep.subr.bf16.mxu1 %v7189_v11  ;;  %v7273_v11 = vld [vmem:[#allocation5 + $0x1c4] ss:$16 sps:$4 sm:$0xff]  }
  0xf3   :  { %6220 = vmatmul.mubr.msk.f32.vlgmr.msra.gmra.mrb[2].mxu0 %vm197_vm7, %v187_v13  ;;  %6221 = vmatmul.mubr.msk.f32.vlgmr.msra.gmra.mrb[2].mxu1 %vm197_vm7, %v187_v13 }
  0xf4   :  { %7106 = vmatpush3.msra.mxu0 %v196_v14  ;;  %7107 = vmatprep.mubr.msk.f32.mxu0 %vm8333_vm8, %v8331_v61  ;;  %v8472_v24 = vpop.permute.xlu1 %572  ;;  %v7247_v61 = vld [vmem:[#allocation5 + $0x140] ss:$16 sps:$4 sm:$0xff]   ;;  %v7276_v14 = vld [vmem:[#allocation5 + $0x1cc] ss:$16 sps:$4 sm:$0xff]  }
  0xf5   :  { %1014 = vmatprep.subr.bf16.mxu0 %v7192_v16  ;;  %974 = vmatpush1.bf16.msra.mxu1 %v7187_v15  ;;  %v575_v27 = vmul.f32 %v8472_v24, %v8470_v19  ;;  %v7279_v15 = vld [vmem:[#allocation5 + $0x1e4] ss:$16 sps:$4 sm:$0xff]   ;;  %v7274_v16 = vld [vmem:[#allocation5 + $0x1c8] ss:$16 sps:$4 sm:$0xff]  }
  0xf6   :  { %975 = vmatprep.subr.bf16.mxu1 %v7195_v18  ;;  %v7282_v18 = vld [vmem:[#allocation5 + $0x1ec] ss:$16 sps:$4 sm:$0xff]  }
  0xf7   :  { %7108 = vmatmul.mubr.msk.f32.vlgmr.msra.gmra.mrb[4].mxu0 %vm197_vm7, %v187_v13  ;;  %v7271_v13 = vld [vmem:[#allocation5 + $0x1c0] ss:$16 sps:$4 sm:$0xff]  }
  0xf8   :  { %1015 = vmatpush1.bf16.msra.mxu0 %v7190_v17  ;;  %v7277_v17 = vld [vmem:[#allocation5 + $0x1e0] ss:$16 sps:$4 sm:$0xff]  }
  0xf9   :  { %v8477_v29 = vpop.permute.xlu0 %562  ;;  %1016 = vmatprep.subr.bf16.mxu0 %v7198_v21  ;;  %976 = vmatpush1.bf16.msra.mxu1 %v7193_v20  ;;  %v7280_v20 = vld [vmem:[#allocation5 + $0x1e8] ss:$16 sps:$4 sm:$0xff]   ;;  %v7285_v21 = vld [vmem:[#allocation7 + $0x4] ss:$16 sps:$4 sm:$0xff]  }
  0xfa   :  { %v565_v30 = vmul.f32 %v8477_v29, %v8470_v19  ;;  %977 = vmatprep.subr.bf16.mxu1 %v7201_v22  ;;  %v7288_v22 = vld [vmem:[#allocation7 + $0x204] ss:$16 sps:$4 sm:$0xff]  }
  0xfc   :  { %v7182_v34 = vpack.i.bf16 %v565_v30, %v575_v27  ;;  %1017 = vmatpush1.bf16.msra.mxu0 %v7196_v23  ;;  %v8482_v23 = vpop.permute.xlu1 %567 }
  0xfd   :  { %1018 = vmatprep.subr.bf16.mxu0 %v7204_v26  ;;  %978 = vmatpush1.bf16.msra.mxu1 %v7199_v25 }
  0xfe   :  { %7183 = vrot.lane.b32.xlu0 %v7182_v34, %s8323_s2  ;;  %979 = vmatprep.subr.bf16.mxu1 %v7207_v28  ;;  %s8334_s2 = smov [#allocation11]  }
  0xff   :  { %s6206_s12 = sshll.u32 %s8334_s2, 4  ;;  %s6207_s12 = int_to_ptr.vmem [resolvable:$true] %s6206_s12 }
 0x100   :  { %1019 = vmatpush1.bf16.msra.mxu0 %v7202_v31  ;;  %v8484_v25 = vpop.permute.xlu1 %557  ;;  %v570_v31 = vmul.f32 %v8482_v23, %v8470_v19  ;;  %s8289_s14 = scalar_lea.vmem %s6207_s12, 128  ;;  %p8294_p13 = scmp.lt.s32.totalorder %s6207_s12, %s6207_s12 }
 0x101   :  { %1020 = vmatprep.subr.bf16.mxu0 %v7210_v33  ;;  %980 = vmatpush1.bf16.msra.mxu1 %v7205_v32  ;;  %v560_v30 = vmul.f32 %v8484_v25, %v8470_v19  ;;  %v7283_v32 = vld [vmem:[#allocation7] ss:$16 sps:$4 sm:$0xff]   ;;  %p8290_p12 = scmp.ne.s32.totalorder %s6207_s12, %s8289_s14  ;;  %p8295_p0 = scmp.lt.s32.totalorder %s8289_s14, %s8289_s14 }
 0x102   :  { %981 = vmatprep.subr.bf16.mxu1 %v7213_v35  ;;  %v7286_v33 = vld [vmem:[#allocation7 + $0x200] ss:$16 sps:$4 sm:$0xff]  }
 0x103   :  { %v7295_v19 = vld [vmem:[#allocation7 + $0x40] ss:$16 sps:$4 sm:$0xff]   ;;  %p8296_p1 = por %p8295_p0, %p8294_p13 }
 0x104   :  { %1021 = vmatpush1.bf16.msra.mxu0 %v7208_v36  ;;  %v7291_v36 = vld [vmem:[#allocation7 + $0x24] ss:$16 sps:$4 sm:$0xff]  }
 0x105   :  { %1022 = vmatprep.subr.bf16.mxu0 %v7216_v38  ;;  %982 = vmatpush1.bf16.msra.mxu1 %v7211_v37  ;;  %v7294_v37 = vld [vmem:[#allocation7 + $0x224] ss:$16 sps:$4 sm:$0xff]   ;;  %p8297_p2 = pnand %p8296_p1, %p8290_p12 }
 0x106   :  { %983 = vmatprep.subr.bf16.mxu1 %v7219_v39 }
 0x108   :  { %1023 = vmatpush1.bf16.msra.mxu0 %v7214_v40  ;;  %v7289_v40 = vld [vmem:[#allocation7 + $0x20] ss:$16 sps:$4 sm:$0xff]  }
 0x109   :  { %1024 = vmatprep.subr.bf16.mxu0 %v7222_v42  ;;  %984 = vmatpush1.bf16.msra.mxu1 %v7217_v41  ;;  %v7292_v41 = vld [vmem:[#allocation7 + $0x220] ss:$16 sps:$4 sm:$0xff]   ;;  %v7297_v42 = vld [vmem:[#allocation7 + $0x44] ss:$16 sps:$4 sm:$0xff]  }
 0x10a   :  { %985 = vmatprep.subr.bf16.mxu1 %v7225_v43  ;;  %v7300_v43 = vld [vmem:[#allocation7 + $0x244] ss:$16 sps:$4 sm:$0xff]  }
 0x10c   :  { %1025 = vmatpush1.bf16.msra.mxu0 %v7220_v44  ;;  %v7298_v44 = vld [vmem:[#allocation7 + $0x240] ss:$16 sps:$4 sm:$0xff]  }
 0x10d   :  { %1026 = vmatprep.subr.bf16.mxu0 %v7228_v46  ;;  %986 = vmatpush1.bf16.msra.mxu1 %v7223_v45  ;;  %v7303_v45 = vld [vmem:[#allocation7 + $0x64] ss:$16 sps:$4 sm:$0xff]  }
 0x10e   :  { %987 = vmatprep.subr.bf16.mxu1 %v7231_v47  ;;  %v7306_v46 = vld [vmem:[#allocation7 + $0x264] ss:$16 sps:$4 sm:$0xff]   ;;  %v7301_v47 = vld [vmem:[#allocation7 + $0x60] ss:$16 sps:$4 sm:$0xff]  }
 0x110   :  { %1027 = vmatpush1.bf16.msra.mxu0 %v7226_v48  ;;  %v7304_v48 = vld [vmem:[#allocation7 + $0x260] ss:$16 sps:$4 sm:$0xff]  }
 0x111   :  { %1028 = vmatprep.subr.bf16.mxu0 %v7234_v50  ;;  %988 = vmatpush1.bf16.msra.mxu1 %v7229_v49  ;;  %v7309_v49 = vld [vmem:[#allocation7 + $0x84] ss:$16 sps:$4 sm:$0xff]  }
 0x112   :  { %989 = vmatprep.subr.bf16.mxu1 %v7237_v51  ;;  %v7312_v50 = vld [vmem:[#allocation7 + $0x284] ss:$16 sps:$4 sm:$0xff]   ;;  %v7307_v51 = vld [vmem:[#allocation7 + $0x80] ss:$16 sps:$4 sm:$0xff]  }
 0x114   :  { %1029 = vmatpush1.bf16.msra.mxu0 %v7232_v52  ;;  %v7310_v52 = vld [vmem:[#allocation7 + $0x280] ss:$16 sps:$4 sm:$0xff]  }
 0x115   :  { %1030 = vmatprep.subr.bf16.mxu0 %v7240_v54  ;;  %990 = vmatpush1.bf16.msra.mxu1 %v7235_v53  ;;  %v7315_v53 = vld [vmem:[#allocation7 + $0xa4] ss:$16 sps:$4 sm:$0xff]  }
 0x116   :  { %991 = vmatprep.subr.bf16.mxu1 %v7243_v55  ;;  %v7318_v54 = vld [vmem:[#allocation7 + $0x2a4] ss:$16 sps:$4 sm:$0xff]   ;;  %v7313_v55 = vld [vmem:[#allocation7 + $0xa0] ss:$16 sps:$4 sm:$0xff]  }
 0x118   :  { %1031 = vmatpush1.bf16.msra.mxu0 %v7238_v56  ;;  %v7316_v56 = vld [vmem:[#allocation7 + $0x2a0] ss:$16 sps:$4 sm:$0xff]  }
 0x119   :  { %1032 = vmatprep.subr.bf16.mxu0 %v7246_v58  ;;  %992 = vmatpush1.bf16.msra.mxu1 %v7241_v57  ;;  %v7321_v57 = vld [vmem:[#allocation7 + $0xc4] ss:$16 sps:$4 sm:$0xff]  }
 0x11a   :  { %993 = vmatprep.subr.bf16.mxu1 %v7249_v59  ;;  %v7324_v58 = vld [vmem:[#allocation7 + $0x2c4] ss:$16 sps:$4 sm:$0xff]   ;;  %v7319_v59 = vld [vmem:[#allocation7 + $0xc0] ss:$16 sps:$4 sm:$0xff]  }
 0x11c   :  { %1033 = vmatpush1.bf16.msra.mxu0 %v7244_v60  ;;  %v7322_v60 = vld [vmem:[#allocation7 + $0x2c0] ss:$16 sps:$4 sm:$0xff]  }
 0x11d   :  { %1034 = vmatprep.subr.bf16.mxu0 %v7252_v62  ;;  %994 = vmatpush1.bf16.msra.mxu1 %v7247_v61  ;;  %v7327_v61 = vld [vmem:[#allocation7 + $0xe4] ss:$16 sps:$4 sm:$0xff]  }
 0x11e   :  { %995 = vmatprep.subr.bf16.mxu1 %v7255_v63  ;;  %v7330_v62 = vld [vmem:[#allocation7 + $0x2e4] ss:$16 sps:$4 sm:$0xff]   ;;  %v7325_v63 = vld [vmem:[#allocation7 + $0xe0] ss:$16 sps:$4 sm:$0xff]  }
 0x120   :  { %1035 = vmatpush1.bf16.msra.mxu0 %v7250_v0  ;;  %v7328_v0 = vld [vmem:[#allocation7 + $0x2e0] ss:$16 sps:$4 sm:$0xff]  }
 0x121   :  { %1036 = vmatprep.subr.bf16.mxu0 %v7258_v2  ;;  %996 = vmatpush1.bf16.msra.mxu1 %v7253_v1  ;;  %v7333_v1 = vld [vmem:[#allocation7 + $0x104] ss:$16 sps:$4 sm:$0xff]  }
 0x122   :  { %997 = vmatprep.subr.bf16.mxu1 %v7261_v3  ;;  %v7336_v2 = vld [vmem:[#allocation7 + $0x304] ss:$16 sps:$4 sm:$0xff]   ;;  %v7331_v3 = vld [vmem:[#allocation7 + $0x100] ss:$16 sps:$4 sm:$0xff]  }
 0x124   :  { %1037 = vmatpush1.bf16.msra.mxu0 %v7256_v4  ;;  %v7334_v4 = vld [vmem:[#allocation7 + $0x300] ss:$16 sps:$4 sm:$0xff]  }
 0x125   :  { %1038 = vmatprep.subr.bf16.mxu0 %v7264_v6  ;;  %998 = vmatpush1.bf16.msra.mxu1 %v7259_v5  ;;  %v7339_v5 = vld [vmem:[#allocation7 + $0x124] ss:$16 sps:$4 sm:$0xff]  }
 0x126   :  { %999 = vmatprep.subr.bf16.mxu1 %v7267_v7  ;;  %v7342_v6 = vld [vmem:[#allocation7 + $0x324] ss:$16 sps:$4 sm:$0xff]   ;;  %v7337_v7 = vld [vmem:[#allocation7 + $0x120] ss:$16 sps:$4 sm:$0xff]  }
 0x128   :  { %1039 = vmatpush1.bf16.msra.mxu0 %v7262_v8  ;;  %v7340_v8 = vld [vmem:[#allocation7 + $0x320] ss:$16 sps:$4 sm:$0xff]  }
 0x129   :  { %1040 = vmatprep.subr.bf16.mxu0 %v7270_v10  ;;  %1000 = vmatpush1.bf16.msra.mxu1 %v7265_v9  ;;  %v7345_v9 = vld [vmem:[#allocation7 + $0x144] ss:$16 sps:$4 sm:$0xff]  }
 0x12a   :  { %1001 = vmatprep.subr.bf16.mxu1 %v7273_v11  ;;  %v7348_v10 = vld [vmem:[#allocation7 + $0x344] ss:$16 sps:$4 sm:$0xff]   ;;  %v7343_v11 = vld [vmem:[#allocation7 + $0x140] ss:$16 sps:$4 sm:$0xff]  }
 0x12c   :  { %1041 = vmatpush1.bf16.msra.mxu0 %v7268_v12  ;;  %v7346_v12 = vld [vmem:[#allocation7 + $0x340] ss:$16 sps:$4 sm:$0xff]  }
 0x12d   :  { %1042 = vmatprep.subr.bf16.mxu0 %v7276_v14  ;;  %1002 = vmatpush1.bf16.msra.mxu1 %v7271_v13  ;;  %v7351_v13 = vld [vmem:[#allocation7 + $0x164] ss:$16 sps:$4 sm:$0xff]  }
 0x12e   :  { %1003 = vmatprep.subr.bf16.mxu1 %v7279_v15  ;;  %v7354_v14 = vld [vmem:[#allocation7 + $0x364] ss:$16 sps:$4 sm:$0xff]   ;;  %v7349_v15 = vld [vmem:[#allocation7 + $0x160] ss:$16 sps:$4 sm:$0xff]  }
 0x130   :  { %1043 = vmatpush1.bf16.msra.mxu0 %v7274_v16  ;;  %v7352_v16 = vld [vmem:[#allocation7 + $0x360] ss:$16 sps:$4 sm:$0xff]  }
 0x131   :  { %1044 = vmatprep.subr.bf16.mxu0 %v7282_v18  ;;  %1004 = vmatpush1.bf16.msra.mxu1 %v7277_v17  ;;  %v7357_v17 = vld [vmem:[#allocation7 + $0x184] ss:$16 sps:$4 sm:$0xff]  }
 0x132   :  { %4163 = vmatprep.subr.bf16.mxu1 %v7285_v21  ;;  %v7360_v18 = vld [vmem:[#allocation7 + $0x384] ss:$16 sps:$4 sm:$0xff]   ;;  %v7358_v21 = vld [vmem:[#allocation7 + $0x380] ss:$16 sps:$4 sm:$0xff]  }
 0x134   :  { %1045 = vmatpush1.bf16.msra.mxu0 %v7280_v20  ;;  %v7355_v20 = vld [vmem:[#allocation7 + $0x180] ss:$16 sps:$4 sm:$0xff]  }
 0x135   :  { %4204 = vmatprep.subr.bf16.mxu0 %v7288_v22  ;;  %v7363_v22 = vld [vmem:[#allocation7 + $0x1a4] ss:$16 sps:$4 sm:$0xff]  }
 0x170   :  { %v7184_v26 = vpop.permute.xlu0 %7183 }
 0x171   :  { %v7186_v27 = vunpack.i.h.bf16 %v7184_v26  ;;  %v7185_v28 = vunpack.i.l.bf16 %v7184_v26  ;;  %v7366_v26 = vld [vmem:[#allocation7 + $0x3a4] ss:$16 sps:$4 sm:$0xff]  }
 0x173   :  { %v585_v34 = vsel %vm584_vm9, %v560_v30, %v7186_v27  ;;  %v586_v35 = vsel %vm584_vm9, %v570_v31, %v7185_v28  ;;  %v7361_v27 = vld [vmem:[#allocation7 + $0x1a0] ss:$16 sps:$4 sm:$0xff]  }
 0x174   :  { %v587_v38 = vpack.c.bf16 %v585_v34, %v585_v34  ;;  %v588_v39 = vpack.c.bf16 %v586_v35, %v586_v35  ;;  %v7364_v28 = vld [vmem:[#allocation7 + $0x3a0] ss:$16 sps:$4 sm:$0xff]  }
 0x176   :  { %1005 = vmatprep.mubr.bf16.mxu1 %v588_v39  ;;  %1046 = vmatprep.mubr.bf16.mxu0 %v588_v39  ;;  %v7369_v39 = vld [vmem:[#allocation7 + $0x1c4] ss:$16 sps:$4 sm:$0xff]  }
 0x177   :  { %1006 = vmatmul.mubr.bf16.vlgmr.msra.gmra.mrb[4].mxu1 %v587_v38  ;;  %1047 = vmatmul.mubr.bf16.vlgmr.msra.gmra.mrb[8].mxu0 %v587_v38 }
 0x178   :  { %4164 = vmatpush1.bf16.msra.mxu1 %v7283_v32  ;;  %4205 = vmatpush1.bf16.msra.mxu0 %v7286_v33 }
 0x179   :  { %4165 = vmatprep.subr.bf16.mxu1 %v7291_v36  ;;  %4206 = vmatprep.subr.bf16.mxu0 %v7294_v37 }
 0x17c   :  { %4166 = vmatpush1.bf16.msra.mxu1 %v7289_v40  ;;  %4207 = vmatpush1.bf16.msra.mxu0 %v7292_v41  ;;  %v7372_v40 = vld [vmem:[#allocation7 + $0x3c4] ss:$16 sps:$4 sm:$0xff]  }
 0x17d   :  { %4167 = vmatprep.subr.bf16.mxu1 %v7297_v42  ;;  %4208 = vmatprep.subr.bf16.mxu0 %v7300_v43  ;;  %v7367_v42 = vld [vmem:[#allocation7 + $0x1c0] ss:$16 sps:$4 sm:$0xff]  }
 0x17e   :  { %v7370_v43 = vld [vmem:[#allocation7 + $0x3c0] ss:$16 sps:$4 sm:$0xff]  }
 0x180   :  { %4168 = vmatpush1.bf16.msra.mxu1 %v7295_v19  ;;  %4209 = vmatpush1.bf16.msra.mxu0 %v7298_v44  ;;  %v7373_v19 = vld [vmem:[#allocation7 + $0x1e0] ss:$16 sps:$4 sm:$0xff]   ;;  %v7375_v44 = vld [vmem:[#allocation7 + $0x1e4] ss:$16 sps:$4 sm:$0xff]  }
 0x181   :  { %4169 = vmatprep.subr.bf16.mxu1 %v7303_v45  ;;  %4210 = vmatprep.subr.bf16.mxu0 %v7306_v46  ;;  %v7376_v45 = vld [vmem:[#allocation7 + $0x3e0] ss:$16 sps:$4 sm:$0xff]   ;;  %v7378_v46 = vld [vmem:[#allocation7 + $0x3e4] ss:$16 sps:$4 sm:$0xff]  }
 0x184   :  { %4170 = vmatpush1.bf16.msra.mxu1 %v7301_v47  ;;  %4211 = vmatpush1.bf16.msra.mxu0 %v7304_v48  ;;  %v7381_v47 = vld [vmem:[#allocation7 + $0x404] ss:$16 sps:$4 sm:$0xff]   ;;  %v7384_v48 = vld [vmem:[#allocation7 + $0xc] ss:$16 sps:$4 sm:$0xff]  }
 0x185   :  { %4171 = vmatprep.subr.bf16.mxu1 %v7309_v49  ;;  %4212 = vmatprep.subr.bf16.mxu0 %v7312_v50 }
 0x188   :  { %4172 = vmatpush1.bf16.msra.mxu1 %v7307_v51  ;;  %4213 = vmatpush1.bf16.msra.mxu0 %v7310_v52 }
 0x189   :  { %4173 = vmatprep.subr.bf16.mxu1 %v7315_v53  ;;  %4214 = vmatprep.subr.bf16.mxu0 %v7318_v54 }
 0x18c   :  { %4174 = vmatpush1.bf16.msra.mxu1 %v7313_v55  ;;  %4215 = vmatpush1.bf16.msra.mxu0 %v7316_v56 }
 0x18d   :  { %4175 = vmatprep.subr.bf16.mxu1 %v7321_v57  ;;  %4216 = vmatprep.subr.bf16.mxu0 %v7324_v58 }
 0x190   :  { %4176 = vmatpush1.bf16.msra.mxu1 %v7319_v59  ;;  %4217 = vmatpush1.bf16.msra.mxu0 %v7322_v60 }
 0x191   :  { %4177 = vmatprep.subr.bf16.mxu1 %v7327_v61  ;;  %4218 = vmatprep.subr.bf16.mxu0 %v7330_v62 }
 0x194   :  { %4178 = vmatpush1.bf16.msra.mxu1 %v7325_v63  ;;  %4219 = vmatpush1.bf16.msra.mxu0 %v7328_v0 }
 0x195   :  { %4179 = vmatprep.subr.bf16.mxu1 %v7333_v1  ;;  %4220 = vmatprep.subr.bf16.mxu0 %v7336_v2 }
 0x198   :  { %4180 = vmatpush1.bf16.msra.mxu1 %v7331_v3  ;;  %4221 = vmatpush1.bf16.msra.mxu0 %v7334_v4 }
 0x199   :  { %4181 = vmatprep.subr.bf16.mxu1 %v7339_v5  ;;  %4222 = vmatprep.subr.bf16.mxu0 %v7342_v6 }
 0x19c   :  { %4182 = vmatpush1.bf16.msra.mxu1 %v7337_v7  ;;  %4223 = vmatpush1.bf16.msra.mxu0 %v7340_v8  ;;  %v7379_v8 = vld [vmem:[#allocation7 + $0x400] ss:$16 sps:$4 sm:$0xff]  }
 0x19d   :  { %4183 = vmatprep.subr.bf16.mxu1 %v7345_v9  ;;  %4224 = vmatprep.subr.bf16.mxu0 %v7348_v10  ;;  %v7382_v9 = vld [vmem:[#allocation7 + $0x8] ss:$16 sps:$4 sm:$0xff]  }
 0x1a0   :  { %4184 = vmatpush1.bf16.msra.mxu1 %v7343_v11  ;;  %4225 = vmatpush1.bf16.msra.mxu0 %v7346_v12  ;;  %v7387_v12 = vld [vmem:[#allocation7 + $0x424] ss:$16 sps:$4 sm:$0xff]  }
 0x1a1   :  { %4185 = vmatprep.subr.bf16.mxu1 %v7351_v13  ;;  %4226 = vmatprep.subr.bf16.mxu0 %v7354_v14  ;;  %v7390_v13 = vld [vmem:[#allocation7 + $0x2c] ss:$16 sps:$4 sm:$0xff]  }
 0x1a4   :  { %4186 = vmatpush1.bf16.msra.mxu1 %v7349_v15  ;;  %4227 = vmatpush1.bf16.msra.mxu0 %v7352_v16  ;;  %v7385_v15 = vld [vmem:[#allocation7 + $0x420] ss:$16 sps:$4 sm:$0xff]   ;;  %v7388_v16 = vld [vmem:[#allocation7 + $0x28] ss:$16 sps:$4 sm:$0xff]  }
 0x1a5   :  { %4187 = vmatprep.subr.bf16.mxu1 %v7357_v17  ;;  %4228 = vmatprep.subr.bf16.mxu0 %v7360_v18  ;;  %v7393_v17 = vld [vmem:[#allocation7 + $0x444] ss:$16 sps:$4 sm:$0xff]   ;;  %v7396_v18 = vld [vmem:[#allocation7 + $0x4c] ss:$16 sps:$4 sm:$0xff]  }
 0x1a8   :  { %4188 = vmatpush1.bf16.msra.mxu1 %v7355_v20  ;;  %4229 = vmatpush1.bf16.msra.mxu0 %v7358_v21  ;;  %v7391_v20 = vld [vmem:[#allocation7 + $0x440] ss:$16 sps:$4 sm:$0xff]   ;;  %v7394_v21 = vld [vmem:[#allocation7 + $0x48] ss:$16 sps:$4 sm:$0xff]  }
 0x1a9   :  { %4189 = vmatprep.subr.bf16.mxu1 %v7363_v22  ;;  %4230 = vmatprep.subr.bf16.mxu0 %v7366_v26  ;;  %v7399_v22 = vld [vmem:[#allocation7 + $0x464] ss:$16 sps:$4 sm:$0xff]   ;;  %v7402_v26 = vld [vmem:[#allocation7 + $0x6c] ss:$16 sps:$4 sm:$0xff]  }
 0x1ac   :  { %4190 = vmatpush1.bf16.msra.mxu1 %v7361_v27  ;;  %4231 = vmatpush1.bf16.msra.mxu0 %v7364_v28  ;;  %v7397_v27 = vld [vmem:[#allocation7 + $0x460] ss:$16 sps:$4 sm:$0xff]   ;;  %v7400_v28 = vld [vmem:[#allocation7 + $0x68] ss:$16 sps:$4 sm:$0xff]  }
 0x1ad   :  { %4191 = vmatprep.subr.bf16.mxu1 %v7369_v39  ;;  %4232 = vmatprep.subr.bf16.mxu0 %v7372_v40  ;;  %v7411_v39 = vld [vmem:[#allocation7 + $0x4a4] ss:$16 sps:$4 sm:$0xff]   ;;  %v7414_v40 = vld [vmem:[#allocation7 + $0xac] ss:$16 sps:$4 sm:$0xff]  }
 0x1b0   :  { %4192 = vmatpush1.bf16.msra.mxu1 %v7367_v42  ;;  %4233 = vmatpush1.bf16.msra.mxu0 %v7370_v43  ;;  %v7412_v42 = vld [vmem:[#allocation7 + $0xa8] ss:$16 sps:$4 sm:$0xff]   ;;  %v7417_v43 = vld [vmem:[#allocation7 + $0x4c4] ss:$16 sps:$4 sm:$0xff]  }
 0x1b1   :  { %4193 = vmatprep.subr.bf16.mxu1 %v7375_v44  ;;  %4234 = vmatprep.subr.bf16.mxu0 %v7378_v46  ;;  %v7415_v44 = vld [vmem:[#allocation7 + $0x4c0] ss:$16 sps:$4 sm:$0xff]   ;;  %v7423_v46 = vld [vmem:[#allocation7 + $0x4e4] ss:$16 sps:$4 sm:$0xff]  }
 0x1b4   :  { %4194 = vmatpush1.bf16.msra.mxu1 %v7373_v19  ;;  %4235 = vmatpush1.bf16.msra.mxu0 %v7376_v45  ;;  %v7420_v19 = vld [vmem:[#allocation7 + $0xcc] ss:$16 sps:$4 sm:$0xff]   ;;  %v7418_v45 = vld [vmem:[#allocation7 + $0xc8] ss:$16 sps:$4 sm:$0xff]  }
 0x1b5   :  { %4245 = vmatprep.subr.bf16.mxu0 %v7381_v47  ;;  %4491 = vmatprep.subr.bf16.mxu1 %v7384_v48  ;;  %v7426_v47 = vld [vmem:[#allocation7 + $0xec] ss:$16 sps:$4 sm:$0xff]   ;;  %v7421_v48 = vld [vmem:[#allocation7 + $0x4e0] ss:$16 sps:$4 sm:$0xff]  }
 0x1c2   :  { %v267_v30 = vpop.f32.mrb[0].mxu0  ;;  %v338_v31 = vpop.f32.mrb[0].mxu1 }
 0x1c3   :  { %v269_v32 = vpop.f32.mrb[1].mxu0  ;;  %v340_v33 = vpop.f32.mrb[1].mxu1 }
 0x1c6   :  { %v8490_v34 = vpop.f32.mrb[2].mxu0  ;;  %v8492_v35 = vpop.f32.mrb[2].mxu1 }
 0x1c7   :  { %v8494_v36 = vpop.f32.mrb[3].mxu0  ;;  %v8496_v37 = vpop.f32.mrb[3].mxu1 }
 0x1ca   :  { %v8498_v38 = vpop.f32.mrb[4].mxu0 }
 0x1cb   :  { %v7109_v41 = vpop.f32.mrb[5].mxu0 }
 0x1cc   :  { %v7409_v41 = vld [vmem:[#allocation7 + $0x4a0] ss:$16 sps:$4 sm:$0xff]  }
 0x24a   :  { %v1007_v49 = vpop.f32.mrb[4].mxu1  ;;  %v1048_v50 = vpop.f32.mrb[8].mxu0 }
 0x24b   :  { %v1008_v51 = vadd.f32 %v1007_v49, %v267_v30  ;;  %v1049_v52 = vadd.f32 %v1048_v50, %v338_v31  ;;  %v1009_v53 = vpop.f32.mrb[5].mxu1  ;;  %v1050_v54 = vpop.f32.mrb[9].mxu0  ;;  %v7405_v30 = vld [vmem:[#allocation7 + $0x484] ss:$16 sps:$4 sm:$0xff]   ;;  %v7408_v31 = vld [vmem:[#allocation7 + $0x8c] ss:$16 sps:$4 sm:$0xff]  }
 0x24c   :  { %v1010_v55 = vadd.f32 %v1009_v53, %v269_v32  ;;  %v1051_v56 = vadd.f32 %v1050_v54, %v340_v33  ;;  %v1011_v57 = vpop.f32.mrb[6].mxu1  ;;  %v1052_v58 = vpop.f32.mrb[10].mxu0  ;;  %v7403_v32 = vld [vmem:[#allocation7 + $0x480] ss:$16 sps:$4 sm:$0xff]   ;;  %v7406_v33 = vld [vmem:[#allocation7 + $0x88] ss:$16 sps:$4 sm:$0xff]  }
 0x24d   :  { %v8500_v59 = vmax.f32 %v1008_v51, 0.0  ;;  %v8502_v60 = vmax.f32 %v1049_v52, 0.0  ;;  %v1012_v61 = vpop.f32.mrb[7].mxu1  ;;  %v1053_v62 = vpop.f32.mrb[11].mxu0  ;;  %v7424_v49 = vld [vmem:[#allocation7 + $0xe8] ss:$16 sps:$4 sm:$0xff]  }
 0x24e   :  { %v8504_v63 = vmax.f32 %v1010_v55, 0.0  ;;  %v8506_v0 = vmax.f32 %v1051_v56, 0.0  ;;  %v7429_v50 = vld [vmem:[#allocation7 + $0x504] ss:$16 sps:$4 sm:$0xff]   ;;  %v7432_v51 = vld [vmem:[#allocation7 + $0x10c] ss:$16 sps:$4 sm:$0xff]  }
 0x24f   :  { %v1059_v1 = vmul.f32 %v8500_v59, %v8484_v25  ;;  %v1061_v2 = vmul.f32 %v8502_v60, %v8484_v25  ;;  %v7427_v52 = vld [vmem:[#allocation7 + $0x500] ss:$16 sps:$4 sm:$0xff]   ;;  %v7430_v53 = vld [vmem:[#allocation7 + $0x108] ss:$16 sps:$4 sm:$0xff]   ;;  %v7435_v54 = vld [vmem:[#allocation7 + $0x524] ss:$16 sps:$4 sm:$0xff]  }
 0x250   :  { %v1060_v3 = vmul.f32 %v8504_v63, %v8484_v25  ;;  %v1062_v4 = vmul.f32 %v8506_v0, %v8484_v25  ;;  %v1064_v5 = vmul.f32 %v8504_v63, %v8477_v29  ;;  %v7438_v55 = vld [vmem:[#allocation7 + $0x12c] ss:$16 sps:$4 sm:$0xff]   ;;  %v7433_v56 = vld [vmem:[#allocation7 + $0x520] ss:$16 sps:$4 sm:$0xff]   ;;  %v7436_v57 = vld [vmem:[#allocation7 + $0x128] ss:$16 sps:$4 sm:$0xff]  }
 0x251   :  { %v8520_v10 = vpack.c.bf16 %v1059_v1, %v1059_v1  ;;  %v8522_v11 = vpack.c.bf16 %v1061_v2, %v1061_v2  ;;  %v7441_v58 = vld [vmem:[#allocation7 + $0x544] ss:$16 sps:$4 sm:$0xff]   ;;  %v7444_v61 = vld [vmem:[#allocation7 + $0x14c] ss:$16 sps:$4 sm:$0xff]   ;;  %v7439_v62 = vld [vmem:[#allocation7 + $0x540] ss:$16 sps:$4 sm:$0xff]  }
 0x252   :  { %v1076_v6 = vpack.c.bf16 %v1060_v3, %v1060_v3  ;;  %v8518_v7 = vpack.c.bf16 %v1062_v4, %v1062_v4  ;;  %v8527_v14 = vpack.c.bf16 %v1064_v5, %v1064_v5  ;;  %v7442_v1 = vld [vmem:[#allocation7 + $0x148] ss:$16 sps:$4 sm:$0xff]   ;;  %v7447_v2 = vld [vmem:[#allocation7 + $0x564] ss:$16 sps:$4 sm:$0xff]   ;;  %v7450_v3 = vld [vmem:[#allocation7 + $0x16c] ss:$16 sps:$4 sm:$0xff]  }
 0x253   :  { %v7445_v4 = vld [vmem:[#allocation7 + $0x560] ss:$16 sps:$4 sm:$0xff]   ;;  %v7448_v5 = vld [vmem:[#allocation7 + $0x168] ss:$16 sps:$4 sm:$0xff]  }
 0x254   :  { %4195 = vmatprep.mubr.bf16.mxu1 %v1076_v6  ;;  %4236 = vmatprep.mubr.bf16.mxu0 %v8518_v7 }
 0x255   :  { %4196 = vmatmul.mubr.bf16.vlgmr.msra.gmra.mrb[8].mxu1 %v8520_v10  ;;  %4237 = vmatmul.mubr.bf16.vlgmr.msra.gmra.mrb[12].mxu0 %v8522_v11 }
 0x256   :  { %4246 = vmatpush1.bf16.msra.mxu0 %v7379_v8  ;;  %4492 = vmatpush1.bf16.msra.mxu1 %v7382_v9  ;;  %v7456_v8 = vld [vmem:[#allocation7 + $0x18c] ss:$16 sps:$4 sm:$0xff]   ;;  %v7451_v9 = vld [vmem:[#allocation7 + $0x580] ss:$16 sps:$4 sm:$0xff]  }
 0x257   :  { %4277 = vmatprep.mubr.bf16.mxu0 %v8527_v14  ;;  %4523 = vmatprep.mubr.bf16.mxu1 %v1076_v6  ;;  %v7453_v6 = vld [vmem:[#allocation7 + $0x584] ss:$16 sps:$4 sm:$0xff]  }
 0x258   :  { %4247 = vmatprep.subr.bf16.mxu0 %v7387_v12  ;;  %4493 = vmatprep.subr.bf16.mxu1 %v7390_v13  ;;  %v7454_v12 = vld [vmem:[#allocation7 + $0x188] ss:$16 sps:$4 sm:$0xff]   ;;  %v7459_v13 = vld [vmem:[#allocation7 + $0x5a4] ss:$16 sps:$4 sm:$0xff]  }
 0x25a   :  { %4248 = vmatpush1.bf16.msra.mxu0 %v7385_v15  ;;  %4494 = vmatpush1.bf16.msra.mxu1 %v7388_v16  ;;  %v7462_v15 = vld [vmem:[#allocation7 + $0x1ac] ss:$16 sps:$4 sm:$0xff]   ;;  %v7457_v16 = vld [vmem:[#allocation7 + $0x5a0] ss:$16 sps:$4 sm:$0xff]  }
 0x25b   :  { %4249 = vmatprep.subr.bf16.mxu0 %v7393_v17  ;;  %4495 = vmatprep.subr.bf16.mxu1 %v7396_v18  ;;  %v7460_v17 = vld [vmem:[#allocation7 + $0x1a8] ss:$16 sps:$4 sm:$0xff]   ;;  %v7465_v18 = vld [vmem:[#allocation7 + $0x5c4] ss:$16 sps:$4 sm:$0xff]  }
 0x25e   :  { %4250 = vmatpush1.bf16.msra.mxu0 %v7391_v20  ;;  %4496 = vmatpush1.bf16.msra.mxu1 %v7394_v21  ;;  %v7468_v20 = vld [vmem:[#allocation7 + $0x1cc] ss:$16 sps:$4 sm:$0xff]   ;;  %v7463_v21 = vld [vmem:[#allocation7 + $0x5c0] ss:$16 sps:$4 sm:$0xff]  }
 0x25f   :  { %4251 = vmatprep.subr.bf16.mxu0 %v7399_v22  ;;  %4497 = vmatprep.subr.bf16.mxu1 %v7402_v26  ;;  %v7466_v22 = vld [vmem:[#allocation7 + $0x1c8] ss:$16 sps:$4 sm:$0xff]   ;;  %v7471_v26 = vld [vmem:[#allocation7 + $0x5e4] ss:$16 sps:$4 sm:$0xff]  }
 0x262   :  { %4252 = vmatpush1.bf16.msra.mxu0 %v7397_v27  ;;  %4498 = vmatpush1.bf16.msra.mxu1 %v7400_v28  ;;  %v7474_v27 = vld [vmem:[#allocation7 + $0x1ec] ss:$16 sps:$4 sm:$0xff]   ;;  %v7469_v28 = vld [vmem:[#allocation7 + $0x5e0] ss:$16 sps:$4 sm:$0xff]  }
 0x263   :  { %4253 = vmatprep.subr.bf16.mxu0 %v7405_v30  ;;  %4499 = vmatprep.subr.bf16.mxu1 %v7408_v31  ;;  %v7472_v30 = vld [vmem:[#allocation7 + $0x1e8] ss:$16 sps:$4 sm:$0xff]   ;;  %v1063_v31 = vmul.f32 %v8500_v59, %v8477_v29 }
 0x266   :  { %4254 = vmatpush1.bf16.msra.mxu0 %v7403_v32  ;;  %4500 = vmatpush1.bf16.msra.mxu1 %v7406_v33  ;;  %v7477_v32 = vld [vmem:[#allocation7 + $0x604] ss:$16 sps:$4 sm:$0xff]   ;;  %v7480_v33 = vld [vmem:[#allocation7 + $0x20c] ss:$16 sps:$4 sm:$0xff]  }
 0x267   :  { %4255 = vmatprep.subr.bf16.mxu0 %v7411_v39  ;;  %4501 = vmatprep.subr.bf16.mxu1 %v7414_v40  ;;  %v1066_v39 = vmul.f32 %v8506_v0, %v8477_v29  ;;  %v7475_v40 = vld [vmem:[#allocation7 + $0x600] ss:$16 sps:$4 sm:$0xff]  }
 0x26a   :  { %4256 = vmatpush1.bf16.msra.mxu0 %v7409_v41  ;;  %4502 = vmatpush1.bf16.msra.mxu1 %v7412_v42  ;;  %v8534_v41 = vpack.c.bf16 %v1063_v31, %v1063_v31  ;;  %v7478_v42 = vld [vmem:[#allocation7 + $0x208] ss:$16 sps:$4 sm:$0xff]   ;;  %v7546_v31 = vld [vmem:[#allocation7 + $0x36c] ss:$16 sps:$4 sm:$0xff]  }
 0x26b   :  { %4257 = vmatprep.subr.bf16.mxu0 %v7417_v43  ;;  %4503 = vmatprep.subr.bf16.mxu1 %v7420_v19  ;;  %v8536_v43 = vpack.c.bf16 %v1066_v39, %v1066_v39  ;;  %v7483_v19 = vld [vmem:[#allocation7 + $0x624] ss:$16 sps:$4 sm:$0xff]  }
 0x26c   :  { %v7549_v39 = vld [vmem:[#allocation7 + $0x784] ss:$16 sps:$4 sm:$0xff]  }
 0x26e   :  { %4258 = vmatpush1.bf16.msra.mxu0 %v7415_v44  ;;  %4504 = vmatpush1.bf16.msra.mxu1 %v7418_v45  ;;  %v7486_v44 = vld [vmem:[#allocation7 + $0x22c] ss:$16 sps:$4 sm:$0xff]   ;;  %v7481_v45 = vld [vmem:[#allocation7 + $0x620] ss:$16 sps:$4 sm:$0xff]  }
 0x26f   :  { %4259 = vmatprep.subr.bf16.mxu0 %v7423_v46  ;;  %4505 = vmatprep.subr.bf16.mxu1 %v7426_v47  ;;  %v7484_v46 = vld [vmem:[#allocation7 + $0x228] ss:$16 sps:$4 sm:$0xff]   ;;  %v7489_v47 = vld [vmem:[#allocation7 + $0x644] ss:$16 sps:$4 sm:$0xff]  }
 0x272   :  { %4260 = vmatpush1.bf16.msra.mxu0 %v7421_v48  ;;  %4506 = vmatpush1.bf16.msra.mxu1 %v7424_v49  ;;  %v7492_v48 = vld [vmem:[#allocation7 + $0x24c] ss:$16 sps:$4 sm:$0xff]   ;;  %v7487_v49 = vld [vmem:[#allocation7 + $0x640] ss:$16 sps:$4 sm:$0xff]  }
 0x273   :  { %4261 = vmatprep.subr.bf16.mxu0 %v7429_v50  ;;  %4507 = vmatprep.subr.bf16.mxu1 %v7432_v51  ;;  %v7490_v50 = vld [vmem:[#allocation7 + $0x248] ss:$16 sps:$4 sm:$0xff]   ;;  %v7495_v51 = vld [vmem:[#allocation7 + $0x664] ss:$16 sps:$4 sm:$0xff]  }
 0x276   :  { %4262 = vmatpush1.bf16.msra.mxu0 %v7427_v52  ;;  %4508 = vmatpush1.bf16.msra.mxu1 %v7430_v53  ;;  %v7493_v52 = vld [vmem:[#allocation7 + $0x660] ss:$16 sps:$4 sm:$0xff]   ;;  %v7496_v53 = vld [vmem:[#allocation7 + $0x268] ss:$16 sps:$4 sm:$0xff]  }
 0x277   :  { %4263 = vmatprep.subr.bf16.mxu0 %v7435_v54  ;;  %4509 = vmatprep.subr.bf16.mxu1 %v7438_v55  ;;  %v7501_v54 = vld [vmem:[#allocation7 + $0x684] ss:$16 sps:$4 sm:$0xff]   ;;  %v7499_v55 = vld [vmem:[#allocation7 + $0x680] ss:$16 sps:$4 sm:$0xff]  }
 0x27a   :  { %4264 = vmatpush1.bf16.msra.mxu0 %v7433_v56  ;;  %4510 = vmatpush1.bf16.msra.mxu1 %v7436_v57  ;;  %v7502_v56 = vld [vmem:[#allocation7 + $0x288] ss:$16 sps:$4 sm:$0xff]   ;;  %v7507_v57 = vld [vmem:[#allocation7 + $0x6a4] ss:$16 sps:$4 sm:$0xff]  }
 0x27b   :  { %4265 = vmatprep.subr.bf16.mxu0 %v7441_v58  ;;  %4511 = vmatprep.subr.bf16.mxu1 %v7444_v61  ;;  %v7510_v58 = vld [vmem:[#allocation7 + $0x2ac] ss:$16 sps:$4 sm:$0xff]   ;;  %v7505_v61 = vld [vmem:[#allocation7 + $0x6a0] ss:$16 sps:$4 sm:$0xff]  }
 0x27e   :  { %4266 = vmatpush1.bf16.msra.mxu0 %v7439_v62  ;;  %4512 = vmatpush1.bf16.msra.mxu1 %v7442_v1  ;;  %v7508_v62 = vld [vmem:[#allocation7 + $0x2a8] ss:$16 sps:$4 sm:$0xff]   ;;  %v7513_v1 = vld [vmem:[#allocation7 + $0x6c4] ss:$16 sps:$4 sm:$0xff]  }
 0x27f   :  { %4267 = vmatprep.subr.bf16.mxu0 %v7447_v2  ;;  %4513 = vmatprep.subr.bf16.mxu1 %v7450_v3  ;;  %v7516_v2 = vld [vmem:[#allocation7 + $0x2cc] ss:$16 sps:$4 sm:$0xff]   ;;  %v7511_v3 = vld [vmem:[#allocation7 + $0x6c0] ss:$16 sps:$4 sm:$0xff]  }
 0x282   :  { %4268 = vmatpush1.bf16.msra.mxu0 %v7445_v4  ;;  %4514 = vmatpush1.bf16.msra.mxu1 %v7448_v5  ;;  %v7514_v4 = vld [vmem:[#allocation7 + $0x2c8] ss:$16 sps:$4 sm:$0xff]   ;;  %v7519_v5 = vld [vmem:[#allocation7 + $0x6e4] ss:$16 sps:$4 sm:$0xff]  }
 0x283   :  { %4269 = vmatprep.subr.bf16.mxu0 %v7453_v6  ;;  %4515 = vmatprep.subr.bf16.mxu1 %v7456_v8  ;;  %v7522_v6 = vld [vmem:[#allocation7 + $0x2ec] ss:$16 sps:$4 sm:$0xff]   ;;  %v7517_v8 = vld [vmem:[#allocation7 + $0x6e0] ss:$16 sps:$4 sm:$0xff]  }
 0x286   :  { %4270 = vmatpush1.bf16.msra.mxu0 %v7451_v9  ;;  %4516 = vmatpush1.bf16.msra.mxu1 %v7454_v12  ;;  %v7520_v9 = vld [vmem:[#allocation7 + $0x2e8] ss:$16 sps:$4 sm:$0xff]   ;;  %v7525_v12 = vld [vmem:[#allocation7 + $0x704] ss:$16 sps:$4 sm:$0xff]  }
 0x287   :  { %4271 = vmatprep.subr.bf16.mxu0 %v7459_v13  ;;  %4517 = vmatprep.subr.bf16.mxu1 %v7462_v15  ;;  %v7528_v13 = vld [vmem:[#allocation7 + $0x30c] ss:$16 sps:$4 sm:$0xff]   ;;  %v7523_v15 = vld [vmem:[#allocation7 + $0x700] ss:$16 sps:$4 sm:$0xff]  }
 0x28a   :  { %4272 = vmatpush1.bf16.msra.mxu0 %v7457_v16  ;;  %4518 = vmatpush1.bf16.msra.mxu1 %v7460_v17  ;;  %v7526_v16 = vld [vmem:[#allocation7 + $0x308] ss:$16 sps:$4 sm:$0xff]   ;;  %v7531_v17 = vld [vmem:[#allocation7 + $0x724] ss:$16 sps:$4 sm:$0xff]  }
 0x28b   :  { %4273 = vmatprep.subr.bf16.mxu0 %v7465_v18  ;;  %4519 = vmatprep.subr.bf16.mxu1 %v7468_v20  ;;  %v7534_v18 = vld [vmem:[#allocation7 + $0x32c] ss:$16 sps:$4 sm:$0xff]   ;;  %v7529_v20 = vld [vmem:[#allocation7 + $0x720] ss:$16 sps:$4 sm:$0xff]  }
 0x28e   :  { %4274 = vmatpush1.bf16.msra.mxu0 %v7463_v21  ;;  %4520 = vmatpush1.bf16.msra.mxu1 %v7466_v22  ;;  %v7532_v21 = vld [vmem:[#allocation7 + $0x328] ss:$16 sps:$4 sm:$0xff]   ;;  %v7537_v22 = vld [vmem:[#allocation7 + $0x744] ss:$16 sps:$4 sm:$0xff]  }
 0x28f   :  { %4275 = vmatprep.subr.bf16.mxu0 %v7471_v26  ;;  %4521 = vmatprep.subr.bf16.mxu1 %v7474_v27  ;;  %v7540_v26 = vld [vmem:[#allocation7 + $0x34c] ss:$16 sps:$4 sm:$0xff]   ;;  %v7535_v27 = vld [vmem:[#allocation7 + $0x740] ss:$16 sps:$4 sm:$0xff]  }
 0x292   :  { %4276 = vmatpush1.bf16.msra.mxu0 %v7469_v28  ;;  %4522 = vmatpush1.bf16.msra.mxu1 %v7472_v30  ;;  %v7538_v28 = vld [vmem:[#allocation7 + $0x348] ss:$16 sps:$4 sm:$0xff]   ;;  %v7543_v30 = vld [vmem:[#allocation7 + $0x764] ss:$16 sps:$4 sm:$0xff]  }
 0x293   :  { %4286 = vmatprep.subr.bf16.mxu0 %v7477_v32  ;;  %4532 = vmatprep.subr.bf16.mxu1 %v7480_v33  ;;  %v7541_v32 = vld [vmem:[#allocation7 + $0x760] ss:$16 sps:$4 sm:$0xff]   ;;  %v7544_v33 = vld [vmem:[#allocation7 + $0x368] ss:$16 sps:$4 sm:$0xff]  }
 0x295   :  { %4278 = vmatmul.mubr.bf16.vlgmr.msra.gmra.mrb[12].mxu0 %v8534_v41  ;;  %4524 = vmatmul.mubr.bf16.vlgmr.msra.gmra.mrb[12].mxu1 %v8520_v10  ;;  %v7498_v10 = vld [vmem:[#allocation7 + $0x26c] ss:$16 sps:$4 sm:$0xff]  }
 0x296   :  { %4287 = vmatpush1.bf16.msra.mxu0 %v7475_v40  ;;  %4318 = vmatprep.mubr.bf16.mxu0 %v8536_v43  ;;  %v7552_v40 = vld [vmem:[#allocation7 + $0x38c] ss:$16 sps:$4 sm:$0xff]  }
 0x297   :  { %4533 = vmatpush1.bf16.msra.mxu1 %v7478_v42  ;;  %4564 = vmatprep.mubr.bf16.mxu1 %v8518_v7  ;;  %v7504_v7 = vld [vmem:[#allocation7 + $0x28c] ss:$16 sps:$4 sm:$0xff]   ;;  %v7547_v42 = vld [vmem:[#allocation7 + $0x780] ss:$16 sps:$4 sm:$0xff]  }
 0x298   :  { %4288 = vmatprep.subr.bf16.mxu0 %v7483_v19  ;;  %4534 = vmatprep.subr.bf16.mxu1 %v7486_v44  ;;  %v7550_v19 = vld [vmem:[#allocation7 + $0x388] ss:$16 sps:$4 sm:$0xff]   ;;  %v7555_v44 = vld [vmem:[#allocation7 + $0x7a4] ss:$16 sps:$4 sm:$0xff]  }
 0x29a   :  { %4289 = vmatpush1.bf16.msra.mxu0 %v7481_v45  ;;  %v7558_v45 = vld [vmem:[#allocation7 + $0x3ac] ss:$16 sps:$4 sm:$0xff]  }
 0x29b   :  { %4535 = vmatpush1.bf16.msra.mxu1 %v7484_v46  ;;  %4290 = vmatprep.subr.bf16.mxu0 %v7489_v47  ;;  %v7553_v46 = vld [vmem:[#allocation7 + $0x7a0] ss:$16 sps:$4 sm:$0xff]   ;;  %v7556_v47 = vld [vmem:[#allocation7 + $0x3a8] ss:$16 sps:$4 sm:$0xff]  }
 0x29c   :  { %4536 = vmatprep.subr.bf16.mxu1 %v7492_v48  ;;  %v7561_v48 = vld [vmem:[#allocation7 + $0x7c4] ss:$16 sps:$4 sm:$0xff]  }
 0x29e   :  { %4291 = vmatpush1.bf16.msra.mxu0 %v7487_v49  ;;  %v7564_v49 = vld [vmem:[#allocation7 + $0x3cc] ss:$16 sps:$4 sm:$0xff]  }
 0x29f   :  { %4537 = vmatpush1.bf16.msra.mxu1 %v7490_v50  ;;  %4292 = vmatprep.subr.bf16.mxu0 %v7495_v51  ;;  %v7559_v50 = vld [vmem:[#allocation7 + $0x7c0] ss:$16 sps:$4 sm:$0xff]   ;;  %v7562_v51 = vld [vmem:[#allocation7 + $0x3c8] ss:$16 sps:$4 sm:$0xff]  }
 0x2a0   :  { %4538 = vmatprep.subr.bf16.mxu1 %v7498_v10  ;;  %v7567_v10 = vld [vmem:[#allocation7 + $0x7e4] ss:$16 sps:$4 sm:$0xff]  }
 0x2a2   :  { %4293 = vmatpush1.bf16.msra.mxu0 %v7493_v52  ;;  %v7570_v52 = vld [vmem:[#allocation7 + $0x3ec] ss:$16 sps:$4 sm:$0xff]  }
 0x2a3   :  { %4539 = vmatpush1.bf16.msra.mxu1 %v7496_v53  ;;  %4294 = vmatprep.subr.bf16.mxu0 %v7501_v54  ;;  %v7565_v53 = vld [vmem:[#allocation7 + $0x7e0] ss:$16 sps:$4 sm:$0xff]   ;;  %v7568_v54 = vld [vmem:[#allocation7 + $0x3e8] ss:$16 sps:$4 sm:$0xff]  }
 0x2a4   :  { %4540 = vmatprep.subr.bf16.mxu1 %v7504_v7  ;;  %v1065_v7 = vmul.f32 %v8502_v60, %v8477_v29 }
 0x2a6   :  { %4295 = vmatpush1.bf16.msra.mxu0 %v7499_v55  ;;  %v7573_v55 = vld [vmem:[#allocation7 + $0x804] ss:$16 sps:$4 sm:$0xff]  }
 0x2a7   :  { %4541 = vmatpush1.bf16.msra.mxu1 %v7502_v56  ;;  %4296 = vmatprep.subr.bf16.mxu0 %v7507_v57  ;;  %v7576_v56 = vld [vmem:[#allocation7 + $0x40c] ss:$16 sps:$4 sm:$0xff]   ;;  %v1068_v57 = vmul.f32 %v8504_v63, %v8482_v23 }
 0x2a8   :  { %4542 = vmatprep.subr.bf16.mxu1 %v7510_v58  ;;  %v7571_v58 = vld [vmem:[#allocation7 + $0x800] ss:$16 sps:$4 sm:$0xff]  }
 0x2aa   :  { %4297 = vmatpush1.bf16.msra.mxu0 %v7505_v61  ;;  %v8546_v61 = vpack.c.bf16 %v1065_v7, %v1065_v7  ;;  %v7642_v7 = vld [vmem:[#allocation7 + $0x56c] ss:$16 sps:$4 sm:$0xff]  }
 0x2ab   :  { %4543 = vmatpush1.bf16.msra.mxu1 %v7508_v62  ;;  %4298 = vmatprep.subr.bf16.mxu0 %v7513_v1  ;;  %v7574_v62 = vld [vmem:[#allocation7 + $0x408] ss:$16 sps:$4 sm:$0xff]   ;;  %v7579_v1 = vld [vmem:[#allocation7 + $0x824] ss:$16 sps:$4 sm:$0xff]  }
 0x2ac   :  { %4544 = vmatprep.subr.bf16.mxu1 %v7516_v2  ;;  %v8549_v2 = vpack.c.bf16 %v1068_v57, %v1068_v57  ;;  %v7645_v57 = vld [vmem:[#allocation7 + $0x984] ss:$16 sps:$4 sm:$0xff]  }
 0x2ae   :  { %4299 = vmatpush1.bf16.msra.mxu0 %v7511_v3  ;;  %v7582_v3 = vld [vmem:[#allocation7 + $0x42c] ss:$16 sps:$4 sm:$0xff]  }
 0x2af   :  { %4545 = vmatpush1.bf16.msra.mxu1 %v7514_v4  ;;  %4300 = vmatprep.subr.bf16.mxu0 %v7519_v5  ;;  %v7577_v4 = vld [vmem:[#allocation7 + $0x820] ss:$16 sps:$4 sm:$0xff]   ;;  %v7580_v5 = vld [vmem:[#allocation7 + $0x428] ss:$16 sps:$4 sm:$0xff]  }
 0x2b0   :  { %4546 = vmatprep.subr.bf16.mxu1 %v7522_v6  ;;  %v7585_v6 = vld [vmem:[#allocation7 + $0x844] ss:$16 sps:$4 sm:$0xff]  }
 0x2b2   :  { %4301 = vmatpush1.bf16.msra.mxu0 %v7517_v8  ;;  %v7588_v8 = vld [vmem:[#allocation7 + $0x44c] ss:$16 sps:$4 sm:$0xff]  }
 0x2b3   :  { %4547 = vmatpush1.bf16.msra.mxu1 %v7520_v9  ;;  %4302 = vmatprep.subr.bf16.mxu0 %v7525_v12  ;;  %v7583_v9 = vld [vmem:[#allocation7 + $0x840] ss:$16 sps:$4 sm:$0xff]   ;;  %v7586_v12 = vld [vmem:[#allocation7 + $0x448] ss:$16 sps:$4 sm:$0xff]  }
 0x2b4   :  { %4548 = vmatprep.subr.bf16.mxu1 %v7528_v13  ;;  %v7591_v13 = vld [vmem:[#allocation7 + $0x864] ss:$16 sps:$4 sm:$0xff]  }
 0x2b6   :  { %4303 = vmatpush1.bf16.msra.mxu0 %v7523_v15  ;;  %v7589_v15 = vld [vmem:[#allocation7 + $0x860] ss:$16 sps:$4 sm:$0xff]  }
 0x2b7   :  { %4549 = vmatpush1.bf16.msra.mxu1 %v7526_v16  ;;  %4304 = vmatprep.subr.bf16.mxu0 %v7531_v17  ;;  %v7592_v16 = vld [vmem:[#allocation7 + $0x468] ss:$16 sps:$4 sm:$0xff]   ;;  %v7597_v17 = vld [vmem:[#allocation7 + $0x884] ss:$16 sps:$4 sm:$0xff]  }
 0x2b8   :  { %4550 = vmatprep.subr.bf16.mxu1 %v7534_v18  ;;  %v7600_v18 = vld [vmem:[#allocation7 + $0x48c] ss:$16 sps:$4 sm:$0xff]  }
 0x2ba   :  { %4305 = vmatpush1.bf16.msra.mxu0 %v7529_v20  ;;  %v7598_v20 = vld [vmem:[#allocation7 + $0x488] ss:$16 sps:$4 sm:$0xff]  }
 0x2bb   :  { %4551 = vmatpush1.bf16.msra.mxu1 %v7532_v21  ;;  %4306 = vmatprep.subr.bf16.mxu0 %v7537_v22  ;;  %v7603_v21 = vld [vmem:[#allocation7 + $0x8a4] ss:$16 sps:$4 sm:$0xff]   ;;  %v7606_v22 = vld [vmem:[#allocation7 + $0x4ac] ss:$16 sps:$4 sm:$0xff]  }
 0x2bc   :  { %4552 = vmatprep.subr.bf16.mxu1 %v7540_v26  ;;  %v7601_v26 = vld [vmem:[#allocation7 + $0x8a0] ss:$16 sps:$4 sm:$0xff]  }
 0x2be   :  { %4307 = vmatpush1.bf16.msra.mxu0 %v7535_v27  ;;  %v7604_v27 = vld [vmem:[#allocation7 + $0x4a8] ss:$16 sps:$4 sm:$0xff]  }
 0x2bf   :  { %4553 = vmatpush1.bf16.msra.mxu1 %v7538_v28  ;;  %4308 = vmatprep.subr.bf16.mxu0 %v7543_v30  ;;  %v7609_v28 = vld [vmem:[#allocation7 + $0x8c4] ss:$16 sps:$4 sm:$0xff]   ;;  %v7612_v30 = vld [vmem:[#allocation7 + $0x4cc] ss:$16 sps:$4 sm:$0xff]  }
 0x2c0   :  { %4554 = vmatprep.subr.bf16.mxu1 %v7546_v31  ;;  %v7607_v31 = vld [vmem:[#allocation7 + $0x8c0] ss:$16 sps:$4 sm:$0xff]  }
 0x2c2   :  { %4309 = vmatpush1.bf16.msra.mxu0 %v7541_v32  ;;  %v7610_v32 = vld [vmem:[#allocation7 + $0x4c8] ss:$16 sps:$4 sm:$0xff]  }
 0x2c3   :  { %4555 = vmatpush1.bf16.msra.mxu1 %v7544_v33  ;;  %4310 = vmatprep.subr.bf16.mxu0 %v7549_v39  ;;  %v7615_v33 = vld [vmem:[#allocation7 + $0x8e4] ss:$16 sps:$4 sm:$0xff]   ;;  %v7618_v39 = vld [vmem:[#allocation7 + $0x4ec] ss:$16 sps:$4 sm:$0xff]  }
 0x2c4   :  { %4556 = vmatprep.subr.bf16.mxu1 %v7552_v40  ;;  %v7613_v40 = vld [vmem:[#allocation7 + $0x8e0] ss:$16 sps:$4 sm:$0xff]  }
 0x2c6   :  { %4311 = vmatpush1.bf16.msra.mxu0 %v7547_v42  ;;  %v7616_v42 = vld [vmem:[#allocation7 + $0x4e8] ss:$16 sps:$4 sm:$0xff]  }
 0x2c7   :  { %4557 = vmatpush1.bf16.msra.mxu1 %v7550_v19  ;;  %4312 = vmatprep.subr.bf16.mxu0 %v7555_v44  ;;  %v7621_v19 = vld [vmem:[#allocation7 + $0x904] ss:$16 sps:$4 sm:$0xff]   ;;  %v7624_v44 = vld [vmem:[#allocation7 + $0x50c] ss:$16 sps:$4 sm:$0xff]  }
 0x2c8   :  { %4558 = vmatprep.subr.bf16.mxu1 %v7558_v45  ;;  %v7619_v45 = vld [vmem:[#allocation7 + $0x900] ss:$16 sps:$4 sm:$0xff]  }
 0x2ca   :  { %4313 = vmatpush1.bf16.msra.mxu0 %v7553_v46  ;;  %v7622_v46 = vld [vmem:[#allocation7 + $0x508] ss:$16 sps:$4 sm:$0xff]  }
 0x2cb   :  { %4559 = vmatpush1.bf16.msra.mxu1 %v7556_v47  ;;  %4314 = vmatprep.subr.bf16.mxu0 %v7561_v48  ;;  %v7627_v47 = vld [vmem:[#allocation7 + $0x924] ss:$16 sps:$4 sm:$0xff]   ;;  %v7630_v48 = vld [vmem:[#allocation7 + $0x52c] ss:$16 sps:$4 sm:$0xff]  }
 0x2cc   :  { %4560 = vmatprep.subr.bf16.mxu1 %v7564_v49  ;;  %v7625_v49 = vld [vmem:[#allocation7 + $0x920] ss:$16 sps:$4 sm:$0xff]  }
 0x2ce   :  { %4315 = vmatpush1.bf16.msra.mxu0 %v7559_v50  ;;  %v7628_v50 = vld [vmem:[#allocation7 + $0x528] ss:$16 sps:$4 sm:$0xff]  }
 0x2cf   :  { %4561 = vmatpush1.bf16.msra.mxu1 %v7562_v51  ;;  %4316 = vmatprep.subr.bf16.mxu0 %v7567_v10  ;;  %v7633_v51 = vld [vmem:[#allocation7 + $0x944] ss:$16 sps:$4 sm:$0xff]   ;;  %v7636_v10 = vld [vmem:[#allocation7 + $0x54c] ss:$16 sps:$4 sm:$0xff]  }
 0x2d0   :  { %4562 = vmatprep.subr.bf16.mxu1 %v7570_v52  ;;  %v7631_v52 = vld [vmem:[#allocation7 + $0x940] ss:$16 sps:$4 sm:$0xff]  }
 0x2d2   :  { %4317 = vmatpush1.bf16.msra.mxu0 %v7565_v53  ;;  %v7634_v53 = vld [vmem:[#allocation7 + $0x548] ss:$16 sps:$4 sm:$0xff]  }
 0x2d3   :  { %4563 = vmatpush1.bf16.msra.mxu1 %v7568_v54  ;;  %4327 = vmatprep.subr.bf16.mxu0 %v7573_v55  ;;  %v7639_v54 = vld [vmem:[#allocation7 + $0x964] ss:$16 sps:$4 sm:$0xff]   ;;  %v7637_v55 = vld [vmem:[#allocation7 + $0x960] ss:$16 sps:$4 sm:$0xff]  }
 0x2d4   :  { %4573 = vmatprep.subr.bf16.mxu1 %v7576_v56  ;;  %v7640_v56 = vld [vmem:[#allocation7 + $0x568] ss:$16 sps:$4 sm:$0xff]  }
 0x2d5   :  { %4319 = vmatmul.mubr.bf16.vlgmr.msra.gmra.mrb[12].mxu0 %v8546_v61 }
 0x2d6   :  { %4565 = vmatmul.mubr.bf16.vlgmr.msra.gmra.mrb[16].mxu1 %v8522_v11  ;;  %4328 = vmatpush1.bf16.msra.mxu0 %v7571_v58  ;;  %v7594_v11 = vld [vmem:[#allocation7 + $0x46c] ss:$16 sps:$4 sm:$0xff]  }
 0x2d7   :  { %4359 = vmatprep.mubr.bf16.mxu0 %v8549_v2  ;;  %4574 = vmatpush1.bf16.msra.mxu1 %v7574_v62  ;;  %v7648_v58 = vld [vmem:[#allocation7 + $0x58c] ss:$16 sps:$4 sm:$0xff]   ;;  %v7643_v62 = vld [vmem:[#allocation7 + $0x980] ss:$16 sps:$4 sm:$0xff]  }
 0x2d8   :  { %4605 = vmatprep.mubr.bf16.mxu1 %v8527_v14  ;;  %4329 = vmatprep.subr.bf16.mxu0 %v7579_v1  ;;  %v7595_v14 = vld [vmem:[#allocation7 + $0x880] ss:$16 sps:$4 sm:$0xff]   ;;  %v7646_v1 = vld [vmem:[#allocation7 + $0x588] ss:$16 sps:$4 sm:$0xff]  }
 0x2d9   :  { %4575 = vmatprep.subr.bf16.mxu1 %v7582_v3  ;;  %v7651_v3 = vld [vmem:[#allocation7 + $0x9a4] ss:$16 sps:$4 sm:$0xff]  }
 0x2da   :  { %4330 = vmatpush1.bf16.msra.mxu0 %v7577_v4  ;;  %v7654_v4 = vld [vmem:[#allocation7 + $0x5ac] ss:$16 sps:$4 sm:$0xff]  }
 0x2db   :  { %4576 = vmatpush1.bf16.msra.mxu1 %v7580_v5  ;;  %4331 = vmatprep.subr.bf16.mxu0 %v7585_v6  ;;  %v7649_v5 = vld [vmem:[#allocation7 + $0x9a0] ss:$16 sps:$4 sm:$0xff]   ;;  %v7652_v6 = vld [vmem:[#allocation7 + $0x5a8] ss:$16 sps:$4 sm:$0xff]  }
 0x2dc   :  { %4577 = vmatprep.subr.bf16.mxu1 %v7588_v8  ;;  %v7657_v8 = vld [vmem:[#allocation7 + $0x9c4] ss:$16 sps:$4 sm:$0xff]  }
 0x2de   :  { %4332 = vmatpush1.bf16.msra.mxu0 %v7583_v9  ;;  %v7660_v9 = vld [vmem:[#allocation7 + $0x5cc] ss:$16 sps:$4 sm:$0xff]  }
 0x2df   :  { %4578 = vmatpush1.bf16.msra.mxu1 %v7586_v12  ;;  %4333 = vmatprep.subr.bf16.mxu0 %v7591_v13  ;;  %v7655_v12 = vld [vmem:[#allocation7 + $0x9c0] ss:$16 sps:$4 sm:$0xff]   ;;  %v7658_v13 = vld [vmem:[#allocation7 + $0x5c8] ss:$16 sps:$4 sm:$0xff]  }
 0x2e0   :  { %4579 = vmatprep.subr.bf16.mxu1 %v7594_v11  ;;  %v7663_v11 = vld [vmem:[#allocation7 + $0x9e4] ss:$16 sps:$4 sm:$0xff]  }
 0x2e2   :  { %4334 = vmatpush1.bf16.msra.mxu0 %v7589_v15  ;;  %v7666_v15 = vld [vmem:[#allocation7 + $0x5ec] ss:$16 sps:$4 sm:$0xff]  }
 0x2e3   :  { %4580 = vmatpush1.bf16.msra.mxu1 %v7592_v16  ;;  %4335 = vmatprep.subr.bf16.mxu0 %v7597_v17  ;;  %v7661_v16 = vld [vmem:[#allocation7 + $0x9e0] ss:$16 sps:$4 sm:$0xff]   ;;  %v7664_v17 = vld [vmem:[#allocation7 + $0x5e8] ss:$16 sps:$4 sm:$0xff]  }
 0x2e4   :  { %4581 = vmatprep.subr.bf16.mxu1 %v7600_v18  ;;  %v1067_v18 = vmul.f32 %v8500_v59, %v8482_v23 }
 0x2e6   :  { %4336 = vmatpush1.bf16.msra.mxu0 %v7595_v14  ;;  %v7669_v14 = vld [vmem:[#allocation7 + $0xa04] ss:$16 sps:$4 sm:$0xff]  }
 0x2e7   :  { %4582 = vmatpush1.bf16.msra.mxu1 %v7598_v20  ;;  %4337 = vmatprep.subr.bf16.mxu0 %v7603_v21  ;;  %v7672_v20 = vld [vmem:[#allocation7 + $0x60c] ss:$16 sps:$4 sm:$0xff]   ;;  %v1070_v21 = vmul.f32 %v8506_v0, %v8482_v23 }
 0x2e8   :  { %4583 = vmatprep.subr.bf16.mxu1 %v7606_v22  ;;  %v7667_v22 = vld [vmem:[#allocation7 + $0xa00] ss:$16 sps:$4 sm:$0xff]  }
 0x2ea   :  { %4338 = vmatpush1.bf16.msra.mxu0 %v7601_v26  ;;  %v8558_v26 = vpack.c.bf16 %v1067_v18, %v1067_v18  ;;  %v7732_v18 = vld [vmem:[#allocation7 + $0x74c] ss:$16 sps:$4 sm:$0xff]  }
 0x2eb   :  { %4584 = vmatpush1.bf16.msra.mxu1 %v7604_v27  ;;  %4339 = vmatprep.subr.bf16.mxu0 %v7609_v28  ;;  %v7670_v27 = vld [vmem:[#allocation7 + $0x608] ss:$16 sps:$4 sm:$0xff]   ;;  %v7675_v28 = vld [vmem:[#allocation7 + $0xa24] ss:$16 sps:$4 sm:$0xff]  }
 0x2ec   :  { %4585 = vmatprep.subr.bf16.mxu1 %v7612_v30  ;;  %v8561_v30 = vpack.c.bf16 %v1070_v21, %v1070_v21  ;;  %v7735_v21 = vld [vmem:[#allocation7 + $0xb64] ss:$16 sps:$4 sm:$0xff]  }
 0x2ee   :  { %4340 = vmatpush1.bf16.msra.mxu0 %v7607_v31  ;;  %v7678_v31 = vld [vmem:[#allocation7 + $0x62c] ss:$16 sps:$4 sm:$0xff]  }
 0x2ef   :  { %4586 = vmatpush1.bf16.msra.mxu1 %v7610_v32  ;;  %4341 = vmatprep.subr.bf16.mxu0 %v7615_v33  ;;  %v7673_v32 = vld [vmem:[#allocation7 + $0xa20] ss:$16 sps:$4 sm:$0xff]   ;;  %v7676_v33 = vld [vmem:[#allocation7 + $0x628] ss:$16 sps:$4 sm:$0xff]  }
 0x2f0   :  { %4587 = vmatprep.subr.bf16.mxu1 %v7618_v39  ;;  %v7681_v39 = vld [vmem:[#allocation7 + $0xa44] ss:$16 sps:$4 sm:$0xff]  }
 0x2f2   :  { %4342 = vmatpush1.bf16.msra.mxu0 %v7613_v40  ;;  %v7684_v40 = vld [vmem:[#allocation7 + $0x64c] ss:$16 sps:$4 sm:$0xff]  }
 0x2f3   :  { %4588 = vmatpush1.bf16.msra.mxu1 %v7616_v42  ;;  %4343 = vmatprep.subr.bf16.mxu0 %v7621_v19  ;;  %v7679_v42 = vld [vmem:[#allocation7 + $0xa40] ss:$16 sps:$4 sm:$0xff]   ;;  %v7682_v19 = vld [vmem:[#allocation7 + $0x648] ss:$16 sps:$4 sm:$0xff]  }
 0x2f4   :  { %4589 = vmatprep.subr.bf16.mxu1 %v7624_v44  ;;  %v7687_v44 = vld [vmem:[#allocation7 + $0xa64] ss:$16 sps:$4 sm:$0xff]  }
 0x2f6   :  { %4344 = vmatpush1.bf16.msra.mxu0 %v7619_v45  ;;  %v7685_v45 = vld [vmem:[#allocation7 + $0xa60] ss:$16 sps:$4 sm:$0xff]  }
 0x2f7   :  { %4590 = vmatpush1.bf16.msra.mxu1 %v7622_v46  ;;  %4345 = vmatprep.subr.bf16.mxu0 %v7627_v47  ;;  %v7688_v46 = vld [vmem:[#allocation7 + $0x668] ss:$16 sps:$4 sm:$0xff]   ;;  %v7693_v47 = vld [vmem:[#allocation7 + $0xa84] ss:$16 sps:$4 sm:$0xff]  }
 0x2f8   :  { %4591 = vmatprep.subr.bf16.mxu1 %v7630_v48  ;;  %v7696_v48 = vld [vmem:[#allocation7 + $0x68c] ss:$16 sps:$4 sm:$0xff]  }
 0x2fa   :  { %4346 = vmatpush1.bf16.msra.mxu0 %v7625_v49  ;;  %v7694_v49 = vld [vmem:[#allocation7 + $0x688] ss:$16 sps:$4 sm:$0xff]  }
 0x2fb   :  { %4592 = vmatpush1.bf16.msra.mxu1 %v7628_v50  ;;  %4347 = vmatprep.subr.bf16.mxu0 %v7633_v51  ;;  %v7699_v50 = vld [vmem:[#allocation7 + $0xaa4] ss:$16 sps:$4 sm:$0xff]   ;;  %v7702_v51 = vld [vmem:[#allocation7 + $0x6ac] ss:$16 sps:$4 sm:$0xff]  }
 0x2fc   :  { %4593 = vmatprep.subr.bf16.mxu1 %v7636_v10  ;;  %v7697_v10 = vld [vmem:[#allocation7 + $0xaa0] ss:$16 sps:$4 sm:$0xff]  }
 0x2fe   :  { %4348 = vmatpush1.bf16.msra.mxu0 %v7631_v52  ;;  %v7700_v52 = vld [vmem:[#allocation7 + $0x6a8] ss:$16 sps:$4 sm:$0xff]  }
 0x2ff   :  { %4594 = vmatpush1.bf16.msra.mxu1 %v7634_v53  ;;  %4349 = vmatprep.subr.bf16.mxu0 %v7639_v54  ;;  %v7705_v53 = vld [vmem:[#allocation7 + $0xac4] ss:$16 sps:$4 sm:$0xff]  }
 0x300   :  { %4595 = vmatprep.subr.bf16.mxu1 %v7642_v7  ;;  %v7708_v7 = vld [vmem:[#allocation7 + $0x6cc] ss:$16 sps:$4 sm:$0xff]  }
 0x302   :  { %4350 = vmatpush1.bf16.msra.mxu0 %v7637_v55 }
 0x303   :  { %4596 = vmatpush1.bf16.msra.mxu1 %v7640_v56  ;;  %4351 = vmatprep.subr.bf16.mxu0 %v7645_v57 }
 0x304   :  { %4597 = vmatprep.subr.bf16.mxu1 %v7648_v58 }
 0x306   :  { %4352 = vmatpush1.bf16.msra.mxu0 %v7643_v62  ;;  %v7703_v62 = vld [vmem:[#allocation7 + $0xac0] ss:$16 sps:$4 sm:$0xff]  }
 0x307   :  { %4598 = vmatpush1.bf16.msra.mxu1 %v7646_v1  ;;  %4353 = vmatprep.subr.bf16.mxu0 %v7651_v3  ;;  %v7706_v3 = vld [vmem:[#allocation7 + $0x6c8] ss:$16 sps:$4 sm:$0xff]  }
 0x308   :  { %4599 = vmatprep.subr.bf16.mxu1 %v7654_v4  ;;  %v7711_v4 = vld [vmem:[#allocation7 + $0xae4] ss:$16 sps:$4 sm:$0xff]  }
 0x30a   :  { %4354 = vmatpush1.bf16.msra.mxu0 %v7649_v5  ;;  %v7714_v5 = vld [vmem:[#allocation7 + $0x6ec] ss:$16 sps:$4 sm:$0xff]  }
 0x30b   :  { %4600 = vmatpush1.bf16.msra.mxu1 %v7652_v6  ;;  %4355 = vmatprep.subr.bf16.mxu0 %v7657_v8  ;;  %v7709_v6 = vld [vmem:[#allocation7 + $0xae0] ss:$16 sps:$4 sm:$0xff]   ;;  %v7717_v8 = vld [vmem:[#allocation7 + $0xb04] ss:$16 sps:$4 sm:$0xff]  }
 0x30c   :  { %4601 = vmatprep.subr.bf16.mxu1 %v7660_v9  ;;  %v7720_v9 = vld [vmem:[#allocation7 + $0x70c] ss:$16 sps:$4 sm:$0xff]  }
 0x30e   :  { %4356 = vmatpush1.bf16.msra.mxu0 %v7655_v12  ;;  %v7718_v12 = vld [vmem:[#allocation7 + $0x708] ss:$16 sps:$4 sm:$0xff]  }
 0x30f   :  { %4602 = vmatpush1.bf16.msra.mxu1 %v7658_v13  ;;  %4357 = vmatprep.subr.bf16.mxu0 %v7663_v11  ;;  %v7723_v13 = vld [vmem:[#allocation7 + $0xb24] ss:$16 sps:$4 sm:$0xff]   ;;  %v7726_v11 = vld [vmem:[#allocation7 + $0x72c] ss:$16 sps:$4 sm:$0xff]  }
 0x310   :  { %4603 = vmatprep.subr.bf16.mxu1 %v7666_v15  ;;  %v7721_v15 = vld [vmem:[#allocation7 + $0xb20] ss:$16 sps:$4 sm:$0xff]  }
 0x312   :  { %4358 = vmatpush1.bf16.msra.mxu0 %v7661_v16  ;;  %v7724_v16 = vld [vmem:[#allocation7 + $0x728] ss:$16 sps:$4 sm:$0xff]  }
 0x313   :  { %4604 = vmatpush1.bf16.msra.mxu1 %v7664_v17  ;;  %4368 = vmatprep.subr.bf16.mxu0 %v7669_v14  ;;  %v7729_v17 = vld [vmem:[#allocation7 + $0xb44] ss:$16 sps:$4 sm:$0xff]   ;;  %v7727_v14 = vld [vmem:[#allocation7 + $0xb40] ss:$16 sps:$4 sm:$0xff]  }
 0x314   :  { %4614 = vmatprep.subr.bf16.mxu1 %v7672_v20  ;;  %v7730_v20 = vld [vmem:[#allocation7 + $0x748] ss:$16 sps:$4 sm:$0xff]  }
 0x315   :  { %4360 = vmatmul.mubr.bf16.vlgmr.msra.gmra.mrb[12].mxu0 %v8558_v26 }
 0x316   :  { %4606 = vmatmul.mubr.bf16.vlgmr.msra.gmra.mrb[16].mxu1 %v8534_v41  ;;  %4369 = vmatpush1.bf16.msra.mxu0 %v7667_v22  ;;  %v7690_v41 = vld [vmem:[#allocation7 + $0x66c] ss:$16 sps:$4 sm:$0xff]  }
 0x317   :  { %4400 = vmatprep.mubr.bf16.mxu0 %v8561_v30  ;;  %4615 = vmatpush1.bf16.msra.mxu1 %v7670_v27  ;;  %v7738_v22 = vld [vmem:[#allocation7 + $0x76c] ss:$16 sps:$4 sm:$0xff]   ;;  %v7733_v27 = vld [vmem:[#allocation7 + $0xb60] ss:$16 sps:$4 sm:$0xff]  }
 0x318   :  { %4646 = vmatprep.mubr.bf16.mxu1 %v8536_v43  ;;  %4370 = vmatprep.subr.bf16.mxu0 %v7675_v28  ;;  %v7691_v43 = vld [vmem:[#allocation7 + $0xa80] ss:$16 sps:$4 sm:$0xff]   ;;  %v7736_v28 = vld [vmem:[#allocation7 + $0x768] ss:$16 sps:$4 sm:$0xff]  }
 0x319   :  { %4616 = vmatprep.subr.bf16.mxu1 %v7678_v31  ;;  %v7741_v31 = vld [vmem:[#allocation7 + $0xb84] ss:$16 sps:$4 sm:$0xff]  }
 0x31a   :  { %4371 = vmatpush1.bf16.msra.mxu0 %v7673_v32  ;;  %v7744_v32 = vld [vmem:[#allocation7 + $0x78c] ss:$16 sps:$4 sm:$0xff]  }
 0x31b   :  { %4617 = vmatpush1.bf16.msra.mxu1 %v7676_v33  ;;  %4372 = vmatprep.subr.bf16.mxu0 %v7681_v39  ;;  %v7739_v33 = vld [vmem:[#allocation7 + $0xb80] ss:$16 sps:$4 sm:$0xff]   ;;  %v7742_v39 = vld [vmem:[#allocation7 + $0x788] ss:$16 sps:$4 sm:$0xff]  }
 0x31c   :  { %4618 = vmatprep.subr.bf16.mxu1 %v7684_v40  ;;  %v7747_v40 = vld [vmem:[#allocation7 + $0xba4] ss:$16 sps:$4 sm:$0xff]  }
 0x31e   :  { %4373 = vmatpush1.bf16.msra.mxu0 %v7679_v42  ;;  %v7750_v42 = vld [vmem:[#allocation7 + $0x7ac] ss:$16 sps:$4 sm:$0xff]  }
 0x31f   :  { %4619 = vmatpush1.bf16.msra.mxu1 %v7682_v19  ;;  %4374 = vmatprep.subr.bf16.mxu0 %v7687_v44  ;;  %v7745_v19 = vld [vmem:[#allocation7 + $0xba0] ss:$16 sps:$4 sm:$0xff]   ;;  %v7748_v44 = vld [vmem:[#allocation7 + $0x7a8] ss:$16 sps:$4 sm:$0xff]  }
 0x320   :  { %4620 = vmatprep.subr.bf16.mxu1 %v7690_v41  ;;  %v7753_v41 = vld [vmem:[#allocation7 + $0xbc4] ss:$16 sps:$4 sm:$0xff]  }
 0x322   :  { %4375 = vmatpush1.bf16.msra.mxu0 %v7685_v45  ;;  %v7756_v45 = vld [vmem:[#allocation7 + $0x7cc] ss:$16 sps:$4 sm:$0xff]  }
 0x323   :  { %4621 = vmatpush1.bf16.msra.mxu1 %v7688_v46  ;;  %4376 = vmatprep.subr.bf16.mxu0 %v7693_v47  ;;  %v7751_v46 = vld [vmem:[#allocation7 + $0xbc0] ss:$16 sps:$4 sm:$0xff]   ;;  %v7754_v47 = vld [vmem:[#allocation7 + $0x7c8] ss:$16 sps:$4 sm:$0xff]  }
 0x324   :  { %4622 = vmatprep.subr.bf16.mxu1 %v7696_v48  ;;  %v7759_v48 = vld [vmem:[#allocation7 + $0xbe4] ss:$16 sps:$4 sm:$0xff]  }
 0x326   :  { %4377 = vmatpush1.bf16.msra.mxu0 %v7691_v43  ;;  %v7762_v43 = vld [vmem:[#allocation7 + $0x7ec] ss:$16 sps:$4 sm:$0xff]  }
 0x327   :  { %4623 = vmatpush1.bf16.msra.mxu1 %v7694_v49  ;;  %4378 = vmatprep.subr.bf16.mxu0 %v7699_v50  ;;  %v7757_v49 = vld [vmem:[#allocation7 + $0xbe0] ss:$16 sps:$4 sm:$0xff]   ;;  %v7760_v50 = vld [vmem:[#allocation7 + $0x7e8] ss:$16 sps:$4 sm:$0xff]  }
 0x328   :  { %v4197_v54 = vpop.f32.mrb[8].mxu1  ;;  %4624 = vmatprep.subr.bf16.mxu1 %v7702_v51  ;;  %v1069_v51 = vmul.f32 %v8502_v60, %v8482_v23 }
 0x329   :  { %v8567_v55 = vadd.f32 %v4197_v54, %v8490_v34  ;;  %v4199_v56 = vpop.f32.mrb[9].mxu1  ;;  %v7712_v34 = vld [vmem:[#allocation7 + $0x6e8] ss:$16 sps:$4 sm:$0xff]   ;;  %v7763_v54 = vld [vmem:[#allocation7 + $0xc00] ss:$16 sps:$4 sm:$0xff]  }
 0x32a   :  { %v8570_v57 = vadd.f32 %v4199_v56, %v8494_v36  ;;  %4379 = vmatpush1.bf16.msra.mxu0 %v7697_v10  ;;  %v4201_v58 = vpop.f32.mrb[10].mxu1  ;;  %v7715_v36 = vld [vmem:[#allocation7 + $0xb00] ss:$16 sps:$4 sm:$0xff]   ;;  %v7765_v10 = vld [vmem:[#allocation7 + $0xc04] ss:$16 sps:$4 sm:$0xff]  }
 0x32b   :  { %4625 = vmatpush1.bf16.msra.mxu1 %v7700_v52  ;;  %v4202_v1 = vpop.f32.mrb[11].mxu1  ;;  %4380 = vmatprep.subr.bf16.mxu0 %v7705_v53  ;;  %v7768_v52 = vld [vmem:[#allocation7 + $0x80c] ss:$16 sps:$4 sm:$0xff]   ;;  %v1072_v53 = vmul.f32 %v8504_v63, %v8472_v24  ;;  %v7766_v56 = vld [vmem:[#allocation7 + $0x808] ss:$16 sps:$4 sm:$0xff]  }
 0x32c   :  { %4626 = vmatprep.subr.bf16.mxu1 %v7708_v7  ;;  %v8576_v7 = vpack.c.bf16 %v1069_v51, %v1069_v51  ;;  %v7771_v58 = vld [vmem:[#allocation7 + $0xc24] ss:$16 sps:$4 sm:$0xff]   ;;  %v7774_v1 = vld [vmem:[#allocation7 + $0x82c] ss:$16 sps:$4 sm:$0xff]   ;;  %v7772_v63 = vld [vmem:[#allocation7 + $0x828] ss:$16 sps:$4 sm:$0xff]  }
 0x32d   :  { %v7823_v51 = vld [vmem:[#allocation7 + $0xd40] ss:$16 sps:$4 sm:$0xff]  }
 0x32e   :  { %4381 = vmatpush1.bf16.msra.mxu0 %v7703_v62  ;;  %v8579_v62 = vpack.c.bf16 %v1072_v53, %v1072_v53  ;;  %v7834_v53 = vld [vmem:[#allocation7 + $0x96c] ss:$16 sps:$4 sm:$0xff]  }
 0x32f   :  { %4627 = vmatpush1.bf16.msra.mxu1 %v7706_v3  ;;  %4382 = vmatprep.subr.bf16.mxu0 %v7711_v4  ;;  %v7769_v3 = vld [vmem:[#allocation7 + $0xc20] ss:$16 sps:$4 sm:$0xff]   ;;  %v7777_v4 = vld [vmem:[#allocation7 + $0xc44] ss:$16 sps:$4 sm:$0xff]  }
 0x330   :  { %4628 = vmatprep.subr.bf16.mxu1 %v7714_v5  ;;  %v7780_v5 = vld [vmem:[#allocation7 + $0x84c] ss:$16 sps:$4 sm:$0xff]  }
 0x332   :  { %4383 = vmatpush1.bf16.msra.mxu0 %v7709_v6  ;;  %v7775_v6 = vld [vmem:[#allocation7 + $0xc40] ss:$16 sps:$4 sm:$0xff]  }
 0x333   :  { %4629 = vmatpush1.bf16.msra.mxu1 %v7712_v34  ;;  %4384 = vmatprep.subr.bf16.mxu0 %v7717_v8  ;;  %v7778_v34 = vld [vmem:[#allocation7 + $0x848] ss:$16 sps:$4 sm:$0xff]   ;;  %v7783_v8 = vld [vmem:[#allocation7 + $0xc64] ss:$16 sps:$4 sm:$0xff]  }
 0x334   :  { %4630 = vmatprep.subr.bf16.mxu1 %v7720_v9  ;;  %v7781_v9 = vld [vmem:[#allocation7 + $0xc60] ss:$16 sps:$4 sm:$0xff]  }
 0x336   :  { %4385 = vmatpush1.bf16.msra.mxu0 %v7715_v36  ;;  %v7784_v36 = vld [vmem:[#allocation7 + $0x868] ss:$16 sps:$4 sm:$0xff]  }
 0x337   :  { %4631 = vmatpush1.bf16.msra.mxu1 %v7718_v12  ;;  %4386 = vmatprep.subr.bf16.mxu0 %v7723_v13  ;;  %v7789_v12 = vld [vmem:[#allocation7 + $0xc84] ss:$16 sps:$4 sm:$0xff]   ;;  %v7792_v13 = vld [vmem:[#allocation7 + $0x88c] ss:$16 sps:$4 sm:$0xff]  }
 0x338   :  { %4632 = vmatprep.subr.bf16.mxu1 %v7726_v11  ;;  %v7790_v11 = vld [vmem:[#allocation7 + $0x888] ss:$16 sps:$4 sm:$0xff]  }
 0x33a   :  { %4387 = vmatpush1.bf16.msra.mxu0 %v7721_v15  ;;  %v7795_v15 = vld [vmem:[#allocation7 + $0xca4] ss:$16 sps:$4 sm:$0xff]  }
 0x33b   :  { %4633 = vmatpush1.bf16.msra.mxu1 %v7724_v16  ;;  %4388 = vmatprep.subr.bf16.mxu0 %v7729_v17  ;;  %v7798_v16 = vld [vmem:[#allocation7 + $0x8ac] ss:$16 sps:$4 sm:$0xff]   ;;  %v7793_v17 = vld [vmem:[#allocation7 + $0xca0] ss:$16 sps:$4 sm:$0xff]  }
 0x33c   :  { %4634 = vmatprep.subr.bf16.mxu1 %v7732_v18  ;;  %v7796_v18 = vld [vmem:[#allocation7 + $0x8a8] ss:$16 sps:$4 sm:$0xff]  }
 0x33e   :  { %4389 = vmatpush1.bf16.msra.mxu0 %v7727_v14  ;;  %v7801_v14 = vld [vmem:[#allocation7 + $0xcc4] ss:$16 sps:$4 sm:$0xff]  }
 0x33f   :  { %4635 = vmatpush1.bf16.msra.mxu1 %v7730_v20  ;;  %4390 = vmatprep.subr.bf16.mxu0 %v7735_v21  ;;  %v7804_v21 = vld [vmem:[#allocation7 + $0x8cc] ss:$16 sps:$4 sm:$0xff]  }
 0x340   :  { %4636 = vmatprep.subr.bf16.mxu1 %v7738_v22 }
 0x342   :  { %4391 = vmatpush1.bf16.msra.mxu0 %v7733_v27 }
 0x343   :  { %4637 = vmatpush1.bf16.msra.mxu1 %v7736_v28  ;;  %4392 = vmatprep.subr.bf16.mxu0 %v7741_v31 }
 0x344   :  { %4638 = vmatprep.subr.bf16.mxu1 %v7744_v32  ;;  %v7799_v32 = vld [vmem:[#allocation7 + $0xcc0] ss:$16 sps:$4 sm:$0xff]  }
 0x346   :  { %4393 = vmatpush1.bf16.msra.mxu0 %v7739_v33 }
 0x347   :  { %4639 = vmatpush1.bf16.msra.mxu1 %v7742_v39  ;;  %4394 = vmatprep.subr.bf16.mxu0 %v7747_v40  ;;  %v7802_v39 = vld [vmem:[#allocation7 + $0x8c8] ss:$16 sps:$4 sm:$0xff]   ;;  %v7807_v40 = vld [vmem:[#allocation7 + $0xce4] ss:$16 sps:$4 sm:$0xff]  }
 0x348   :  { %4640 = vmatprep.subr.bf16.mxu1 %v7750_v42  ;;  %v7810_v42 = vld [vmem:[#allocation7 + $0x8ec] ss:$16 sps:$4 sm:$0xff]  }
 0x34a   :  { %4395 = vmatpush1.bf16.msra.mxu0 %v7745_v19  ;;  %v7805_v19 = vld [vmem:[#allocation7 + $0xce0] ss:$16 sps:$4 sm:$0xff]  }
 0x34b   :  { %4641 = vmatpush1.bf16.msra.mxu1 %v7748_v44  ;;  %4396 = vmatprep.subr.bf16.mxu0 %v7753_v41  ;;  %v7813_v44 = vld [vmem:[#allocation7 + $0xd04] ss:$16 sps:$4 sm:$0xff]   ;;  %v7816_v41 = vld [vmem:[#allocation7 + $0x90c] ss:$16 sps:$4 sm:$0xff]  }
 0x34c   :  { %4642 = vmatprep.subr.bf16.mxu1 %v7756_v45  ;;  %v7814_v45 = vld [vmem:[#allocation7 + $0x908] ss:$16 sps:$4 sm:$0xff]  }
 0x34e   :  { %4397 = vmatpush1.bf16.msra.mxu0 %v7751_v46  ;;  %v7819_v46 = vld [vmem:[#allocation7 + $0xd24] ss:$16 sps:$4 sm:$0xff]  }
 0x34f   :  { %4643 = vmatpush1.bf16.msra.mxu1 %v7754_v47  ;;  %4398 = vmatprep.subr.bf16.mxu0 %v7759_v48  ;;  %v7822_v47 = vld [vmem:[#allocation7 + $0x92c] ss:$16 sps:$4 sm:$0xff]   ;;  %v7817_v48 = vld [vmem:[#allocation7 + $0xd20] ss:$16 sps:$4 sm:$0xff]  }
 0x350   :  { %4644 = vmatprep.subr.bf16.mxu1 %v7762_v43  ;;  %v7820_v43 = vld [vmem:[#allocation7 + $0x928] ss:$16 sps:$4 sm:$0xff]  }
 0x352   :  { %4399 = vmatpush1.bf16.msra.mxu0 %v7757_v49  ;;  %v7825_v49 = vld [vmem:[#allocation7 + $0xd44] ss:$16 sps:$4 sm:$0xff]  }
 0x353   :  { %4645 = vmatpush1.bf16.msra.mxu1 %v7760_v50  ;;  %4409 = vmatprep.subr.bf16.mxu0 %v7765_v10  ;;  %v7828_v50 = vld [vmem:[#allocation7 + $0x94c] ss:$16 sps:$4 sm:$0xff]   ;;  %v7826_v10 = vld [vmem:[#allocation7 + $0x948] ss:$16 sps:$4 sm:$0xff]  }
 0x354   :  { %4655 = vmatprep.subr.bf16.mxu1 %v7768_v52  ;;  %v7831_v52 = vld [vmem:[#allocation7 + $0xd64] ss:$16 sps:$4 sm:$0xff]  }
 0x355   :  { %4401 = vmatmul.mubr.bf16.vlgmr.msra.gmra.mrb[12].mxu0 %v8576_v7 }
 0x356   :  { %4647 = vmatmul.mubr.bf16.vlgmr.msra.gmra.mrb[16].mxu1 %v8546_v61  ;;  %4410 = vmatpush1.bf16.msra.mxu0 %v7763_v54  ;;  %v7786_v61 = vld [vmem:[#allocation7 + $0x86c] ss:$16 sps:$4 sm:$0xff]   ;;  %v7829_v54 = vld [vmem:[#allocation7 + $0xd60] ss:$16 sps:$4 sm:$0xff]  }
 0x357   :  { %4441 = vmatprep.mubr.bf16.mxu0 %v8579_v62  ;;  %4656 = vmatpush1.bf16.msra.mxu1 %v7766_v56  ;;  %v7832_v56 = vld [vmem:[#allocation7 + $0x968] ss:$16 sps:$4 sm:$0xff]  }
 0x358   :  { %4687 = vmatprep.mubr.bf16.mxu1 %v8549_v2  ;;  %4411 = vmatprep.subr.bf16.mxu0 %v7771_v58  ;;  %v7787_v2 = vld [vmem:[#allocation7 + $0xc80] ss:$16 sps:$4 sm:$0xff]   ;;  %v7837_v58 = vld [vmem:[#allocation7 + $0xd84] ss:$16 sps:$4 sm:$0xff]  }
 0x359   :  { %4657 = vmatprep.subr.bf16.mxu1 %v7774_v1  ;;  %v7840_v1 = vld [vmem:[#allocation7 + $0x98c] ss:$16 sps:$4 sm:$0xff]  }
 0x35a   :  { %4412 = vmatpush1.bf16.msra.mxu0 %v7769_v3  ;;  %v7835_v3 = vld [vmem:[#allocation7 + $0xd80] ss:$16 sps:$4 sm:$0xff]  }
 0x35b   :  { %4658 = vmatpush1.bf16.msra.mxu1 %v7772_v63  ;;  %4413 = vmatprep.subr.bf16.mxu0 %v7777_v4  ;;  %v7838_v63 = vld [vmem:[#allocation7 + $0x988] ss:$16 sps:$4 sm:$0xff]   ;;  %v7843_v4 = vld [vmem:[#allocation7 + $0xda4] ss:$16 sps:$4 sm:$0xff]  }
 0x35c   :  { %4659 = vmatprep.subr.bf16.mxu1 %v7780_v5  ;;  %v7846_v5 = vld [vmem:[#allocation7 + $0x9ac] ss:$16 sps:$4 sm:$0xff]  }
 0x35e   :  { %4414 = vmatpush1.bf16.msra.mxu0 %v7775_v6  ;;  %v7841_v6 = vld [vmem:[#allocation7 + $0xda0] ss:$16 sps:$4 sm:$0xff]  }
 0x35f   :  { %4660 = vmatpush1.bf16.msra.mxu1 %v7778_v34  ;;  %4415 = vmatprep.subr.bf16.mxu0 %v7783_v8  ;;  %v7844_v34 = vld [vmem:[#allocation7 + $0x9a8] ss:$16 sps:$4 sm:$0xff]   ;;  %v7849_v8 = vld [vmem:[#allocation7 + $0xdc4] ss:$16 sps:$4 sm:$0xff]  }
 0x360   :  { %4661 = vmatprep.subr.bf16.mxu1 %v7786_v61  ;;  %v7852_v61 = vld [vmem:[#allocation7 + $0x9cc] ss:$16 sps:$4 sm:$0xff]  }
 0x362   :  { %4416 = vmatpush1.bf16.msra.mxu0 %v7781_v9  ;;  %v7847_v9 = vld [vmem:[#allocation7 + $0xdc0] ss:$16 sps:$4 sm:$0xff]  }
 0x363   :  { %4662 = vmatpush1.bf16.msra.mxu1 %v7784_v36  ;;  %4417 = vmatprep.subr.bf16.mxu0 %v7789_v12  ;;  %v7850_v36 = vld [vmem:[#allocation7 + $0x9c8] ss:$16 sps:$4 sm:$0xff]   ;;  %v7855_v12 = vld [vmem:[#allocation7 + $0xde4] ss:$16 sps:$4 sm:$0xff]  }
 0x364   :  { %4663 = vmatprep.subr.bf16.mxu1 %v7792_v13  ;;  %v7858_v13 = vld [vmem:[#allocation7 + $0x9ec] ss:$16 sps:$4 sm:$0xff]  }
 0x366   :  { %4418 = vmatpush1.bf16.msra.mxu0 %v7787_v2  ;;  %v7853_v2 = vld [vmem:[#allocation7 + $0xde0] ss:$16 sps:$4 sm:$0xff]  }
 0x367   :  { %4664 = vmatpush1.bf16.msra.mxu1 %v7790_v11  ;;  %4419 = vmatprep.subr.bf16.mxu0 %v7795_v15  ;;  %v7856_v11 = vld [vmem:[#allocation7 + $0x9e8] ss:$16 sps:$4 sm:$0xff]   ;;  %v1071_v15 = vmul.f32 %v8500_v59, %v8472_v24  ;;  %v7870_v59 = vld [vmem:[#allocation7 + $0xa2c] ss:$16 sps:$4 sm:$0xff]  }
 0x368   :  { %v4525_v20 = vpop.f32.mrb[12].mxu1  ;;  %4665 = vmatprep.subr.bf16.mxu1 %v7798_v16  ;;  %v7861_v16 = vld [vmem:[#allocation7 + $0xe04] ss:$16 sps:$4 sm:$0xff]  }
 0x369   :  { %v8585_v22 = vadd.f32 %v4525_v20, %v8492_v35  ;;  %v4527_v27 = vpop.f32.mrb[13].mxu1  ;;  %v7808_v35 = vld [vmem:[#allocation7 + $0x8e8] ss:$16 sps:$4 sm:$0xff]   ;;  %v8594_v20 = vpack.c.bf16 %v1071_v15, %v1071_v15  ;;  %v7933_v15 = vld [vmem:[#allocation7 + $0xf84] ss:$16 sps:$4 sm:$0xff]  }
 0x36a   :  { %v8588_v28 = vadd.f32 %v4527_v27, %v8496_v37  ;;  %4420 = vmatpush1.bf16.msra.mxu0 %v7793_v17  ;;  %v4529_v31 = vpop.f32.mrb[14].mxu1  ;;  %v7811_v37 = vld [vmem:[#allocation7 + $0xd00] ss:$16 sps:$4 sm:$0xff]   ;;  %v7864_v17 = vld [vmem:[#allocation7 + $0xa0c] ss:$16 sps:$4 sm:$0xff]  }
 0x36b   :  { %4666 = vmatpush1.bf16.msra.mxu1 %v7796_v18  ;;  %v4530_v33 = vpop.f32.mrb[15].mxu1  ;;  %4421 = vmatprep.subr.bf16.mxu0 %v7801_v14  ;;  %v1074_v18 = vmul.f32 %v8506_v0, %v8472_v24  ;;  %v7859_v14 = vld [vmem:[#allocation7 + $0xe00] ss:$16 sps:$4 sm:$0xff]   ;;  %v7867_v27 = vld [vmem:[#allocation7 + $0xe24] ss:$16 sps:$4 sm:$0xff]  }
 0x36c   :  { %4667 = vmatprep.subr.bf16.mxu1 %v7804_v21  ;;  %v7862_v21 = vld [vmem:[#allocation7 + $0xa08] ss:$16 sps:$4 sm:$0xff]   ;;  %v7873_v33 = vld [vmem:[#allocation7 + $0xe44] ss:$16 sps:$4 sm:$0xff]  }
 0x36d   :  { %v8597_v31 = vpack.c.bf16 %v1074_v18, %v1074_v18  ;;  %v7868_v0 = vld [vmem:[#allocation7 + $0xa28] ss:$16 sps:$4 sm:$0xff]  }
 0x36e   :  { %4422 = vmatpush1.bf16.msra.mxu0 %v7799_v32  ;;  %v7865_v32 = vld [vmem:[#allocation7 + $0xe20] ss:$16 sps:$4 sm:$0xff]   ;;  %v7934_v18 = vld [vmem:[#allocation7 + $0xb88] ss:$16 sps:$4 sm:$0xff]  }
 0x36f   :  { %4668 = vmatpush1.bf16.msra.mxu1 %v7802_v39  ;;  %4423 = vmatprep.subr.bf16.mxu0 %v7807_v40  ;;  %v7876_v39 = vld [vmem:[#allocation7 + $0xa4c] ss:$16 sps:$4 sm:$0xff]   ;;  %v7871_v40 = vld [vmem:[#allocation7 + $0xe40] ss:$16 sps:$4 sm:$0xff]  }
 0x370   :  { %4669 = vmatprep.subr.bf16.mxu1 %v7810_v42  ;;  %v7874_v42 = vld [vmem:[#allocation7 + $0xa48] ss:$16 sps:$4 sm:$0xff]  }
 0x372   :  { %4424 = vmatpush1.bf16.msra.mxu0 %v7805_v19  ;;  %v7879_v19 = vld [vmem:[#allocation7 + $0xe64] ss:$16 sps:$4 sm:$0xff]  }
 0x373   :  { %4670 = vmatpush1.bf16.msra.mxu1 %v7808_v35  ;;  %4425 = vmatprep.subr.bf16.mxu0 %v7813_v44  ;;  %v7877_v35 = vld [vmem:[#allocation7 + $0xe60] ss:$16 sps:$4 sm:$0xff]   ;;  %v7880_v44 = vld [vmem:[#allocation7 + $0xa68] ss:$16 sps:$4 sm:$0xff]  }
 0x374   :  { %4671 = vmatprep.subr.bf16.mxu1 %v7816_v41  ;;  %v7885_v41 = vld [vmem:[#allocation7 + $0xe84] ss:$16 sps:$4 sm:$0xff]  }
 0x376   :  { %4426 = vmatpush1.bf16.msra.mxu0 %v7811_v37  ;;  %v7888_v37 = vld [vmem:[#allocation7 + $0xa8c] ss:$16 sps:$4 sm:$0xff]  }
 0x377   :  { %4672 = vmatpush1.bf16.msra.mxu1 %v7814_v45  ;;  %4427 = vmatprep.subr.bf16.mxu0 %v7819_v46  ;;  %v7886_v45 = vld [vmem:[#allocation7 + $0xa88] ss:$16 sps:$4 sm:$0xff]   ;;  %v7891_v46 = vld [vmem:[#allocation7 + $0xea4] ss:$16 sps:$4 sm:$0xff]  }
 0x378   :  { %4673 = vmatprep.subr.bf16.mxu1 %v7822_v47  ;;  %v7894_v47 = vld [vmem:[#allocation7 + $0xaac] ss:$16 sps:$4 sm:$0xff]  }
 0x37a   :  { %4428 = vmatpush1.bf16.msra.mxu0 %v7817_v48  ;;  %v7889_v48 = vld [vmem:[#allocation7 + $0xea0] ss:$16 sps:$4 sm:$0xff]  }
 0x37b   :  { %4674 = vmatpush1.bf16.msra.mxu1 %v7820_v43  ;;  %4429 = vmatprep.subr.bf16.mxu0 %v7825_v49  ;;  %v7892_v43 = vld [vmem:[#allocation7 + $0xaa8] ss:$16 sps:$4 sm:$0xff]   ;;  %v7897_v49 = vld [vmem:[#allocation7 + $0xec4] ss:$16 sps:$4 sm:$0xff]  }
 0x37c   :  { %4675 = vmatprep.subr.bf16.mxu1 %v7828_v50  ;;  %v7900_v50 = vld [vmem:[#allocation7 + $0xacc] ss:$16 sps:$4 sm:$0xff]  }
 0x37e   :  { %4430 = vmatpush1.bf16.msra.mxu0 %v7823_v51  ;;  %v7895_v51 = vld [vmem:[#allocation7 + $0xec0] ss:$16 sps:$4 sm:$0xff]  }
 0x37f   :  { %4676 = vmatpush1.bf16.msra.mxu1 %v7826_v10  ;;  %4431 = vmatprep.subr.bf16.mxu0 %v7831_v52  ;;  %v7898_v10 = vld [vmem:[#allocation7 + $0xac8] ss:$16 sps:$4 sm:$0xff]   ;;  %v7903_v52 = vld [vmem:[#allocation7 + $0xee4] ss:$16 sps:$4 sm:$0xff]  }
 0x380   :  { %4677 = vmatprep.subr.bf16.mxu1 %v7834_v53  ;;  %v7906_v53 = vld [vmem:[#allocation7 + $0xaec] ss:$16 sps:$4 sm:$0xff]  }
 0x382   :  { %4432 = vmatpush1.bf16.msra.mxu0 %v7829_v54  ;;  %v7901_v54 = vld [vmem:[#allocation7 + $0xee0] ss:$16 sps:$4 sm:$0xff]  }
 0x383   :  { %4678 = vmatpush1.bf16.msra.mxu1 %v7832_v56  ;;  %4433 = vmatprep.subr.bf16.mxu0 %v7837_v58  ;;  %v7904_v56 = vld [vmem:[#allocation7 + $0xae8] ss:$16 sps:$4 sm:$0xff]   ;;  %v7909_v58 = vld [vmem:[#allocation7 + $0xf04] ss:$16 sps:$4 sm:$0xff]  }
 0x384   :  { %4679 = vmatprep.subr.bf16.mxu1 %v7840_v1  ;;  %v7912_v1 = vld [vmem:[#allocation7 + $0xb0c] ss:$16 sps:$4 sm:$0xff]  }
 0x386   :  { %4434 = vmatpush1.bf16.msra.mxu0 %v7835_v3  ;;  %v7907_v3 = vld [vmem:[#allocation7 + $0xf00] ss:$16 sps:$4 sm:$0xff]  }
 0x387   :  { %4680 = vmatpush1.bf16.msra.mxu1 %v7838_v63  ;;  %4435 = vmatprep.subr.bf16.mxu0 %v7843_v4  ;;  %v7910_v63 = vld [vmem:[#allocation7 + $0xb08] ss:$16 sps:$4 sm:$0xff]   ;;  %v7915_v4 = vld [vmem:[#allocation7 + $0xf24] ss:$16 sps:$4 sm:$0xff]  }
 0x388   :  { %4681 = vmatprep.subr.bf16.mxu1 %v7846_v5  ;;  %v7918_v5 = vld [vmem:[#allocation7 + $0xb2c] ss:$16 sps:$4 sm:$0xff]  }
 0x38a   :  { %4436 = vmatpush1.bf16.msra.mxu0 %v7841_v6  ;;  %v7913_v6 = vld [vmem:[#allocation7 + $0xf20] ss:$16 sps:$4 sm:$0xff]  }
 0x38b   :  { %4682 = vmatpush1.bf16.msra.mxu1 %v7844_v34  ;;  %4437 = vmatprep.subr.bf16.mxu0 %v7849_v8  ;;  %v7916_v34 = vld [vmem:[#allocation7 + $0xb28] ss:$16 sps:$4 sm:$0xff]   ;;  %v7921_v8 = vld [vmem:[#allocation7 + $0xf44] ss:$16 sps:$4 sm:$0xff]  }
 0x38c   :  { %4683 = vmatprep.subr.bf16.mxu1 %v7852_v61  ;;  %v7924_v61 = vld [vmem:[#allocation7 + $0xb4c] ss:$16 sps:$4 sm:$0xff]  }
 0x38e   :  { %4438 = vmatpush1.bf16.msra.mxu0 %v7847_v9  ;;  %v7919_v9 = vld [vmem:[#allocation7 + $0xf40] ss:$16 sps:$4 sm:$0xff]  }
 0x38f   :  { %4684 = vmatpush1.bf16.msra.mxu1 %v7850_v36  ;;  %4439 = vmatprep.subr.bf16.mxu0 %v7855_v12  ;;  %v7922_v36 = vld [vmem:[#allocation7 + $0xb48] ss:$16 sps:$4 sm:$0xff]   ;;  %v7927_v12 = vld [vmem:[#allocation7 + $0xf64] ss:$16 sps:$4 sm:$0xff]  }
 0x390   :  { %4685 = vmatprep.subr.bf16.mxu1 %v7858_v13  ;;  %v7930_v13 = vld [vmem:[#allocation7 + $0xb6c] ss:$16 sps:$4 sm:$0xff]  }
 0x392   :  { %4440 = vmatpush1.bf16.msra.mxu0 %v7853_v2  ;;  %v7925_v2 = vld [vmem:[#allocation7 + $0xf60] ss:$16 sps:$4 sm:$0xff]  }
 0x393   :  { %4686 = vmatpush1.bf16.msra.mxu1 %v7856_v11  ;;  %4450 = vmatprep.subr.bf16.mxu0 %v7861_v16  ;;  %v7928_v11 = vld [vmem:[#allocation7 + $0xb68] ss:$16 sps:$4 sm:$0xff]   ;;  %v7936_v16 = vld [vmem:[#allocation7 + $0xb8c] ss:$16 sps:$4 sm:$0xff]  }
 0x394   :  { %4696 = vmatprep.subr.bf16.mxu1 %v7864_v17  ;;  %v7931_v17 = vld [vmem:[#allocation7 + $0xf80] ss:$16 sps:$4 sm:$0xff]  }
 0x395   :  { %4442 = vmatmul.mubr.bf16.vlgmr.msra.gmra.mrb[12].mxu0 %v8594_v20 }
 0x396   :  { %4688 = vmatmul.mubr.bf16.vlgmr.msra.gmra.mrb[16].mxu1 %v8558_v26  ;;  %4451 = vmatpush1.bf16.msra.mxu0 %v7859_v14  ;;  %v7882_v26 = vld [vmem:[#allocation7 + $0xa6c] ss:$16 sps:$4 sm:$0xff]   ;;  %v7939_v14 = vld [vmem:[#allocation7 + $0xfa4] ss:$16 sps:$4 sm:$0xff]  }
 0x397   :  { %4482 = vmatprep.mubr.bf16.mxu0 %v8597_v31  ;;  %4697 = vmatpush1.bf16.msra.mxu1 %v7862_v21  ;;  %v7942_v21 = vld [vmem:[#allocation7 + $0xbac] ss:$16 sps:$4 sm:$0xff]  }
 0x398   :  { %4728 = vmatprep.mubr.bf16.mxu1 %v8561_v30  ;;  %4452 = vmatprep.subr.bf16.mxu0 %v7867_v27  ;;  %v7883_v30 = vld [vmem:[#allocation7 + $0xe80] ss:$16 sps:$4 sm:$0xff]  }
 0x399   :  { %4698 = vmatprep.subr.bf16.mxu1 %v7870_v59  ;;  %v7937_v27 = vld [vmem:[#allocation7 + $0xfa0] ss:$16 sps:$4 sm:$0xff]   ;;  %v7940_v59 = vld [vmem:[#allocation7 + $0xba8] ss:$16 sps:$4 sm:$0xff]  }
 0x39a   :  { %4453 = vmatpush1.bf16.msra.mxu0 %v7865_v32  ;;  %v7945_v32 = vld [vmem:[#allocation7 + $0xfc4] ss:$16 sps:$4 sm:$0xff]  }
 0x39b   :  { %4699 = vmatpush1.bf16.msra.mxu1 %v7868_v0  ;;  %4454 = vmatprep.subr.bf16.mxu0 %v7873_v33  ;;  %v7948_v0 = vld [vmem:[#allocation7 + $0xbcc] ss:$16 sps:$4 sm:$0xff]   ;;  %v7943_v33 = vld [vmem:[#allocation7 + $0xfc0] ss:$16 sps:$4 sm:$0xff]  }
 0x39c   :  { %4700 = vmatprep.subr.bf16.mxu1 %v7876_v39  ;;  %v7946_v39 = vld [vmem:[#allocation7 + $0xbc8] ss:$16 sps:$4 sm:$0xff]  }
 0x39e   :  { %4455 = vmatpush1.bf16.msra.mxu0 %v7871_v40  ;;  %v7951_v40 = vld [vmem:[#allocation7 + $0xfe4] ss:$16 sps:$4 sm:$0xff]  }
 0x39f   :  { %4701 = vmatpush1.bf16.msra.mxu1 %v7874_v42  ;;  %4456 = vmatprep.subr.bf16.mxu0 %v7879_v19  ;;  %v7954_v42 = vld [vmem:[#allocation7 + $0xbec] ss:$16 sps:$4 sm:$0xff]   ;;  %v7949_v19 = vld [vmem:[#allocation7 + $0xfe0] ss:$16 sps:$4 sm:$0xff]  }
 0x3a0   :  { %4702 = vmatprep.subr.bf16.mxu1 %v7882_v26  ;;  %v7952_v26 = vld [vmem:[#allocation7 + $0xbe8] ss:$16 sps:$4 sm:$0xff]  }
 0x3a2   :  { %4457 = vmatpush1.bf16.msra.mxu0 %v7877_v35  ;;  %v1073_v35 = vmul.f32 %v8502_v60, %v8472_v24  ;;  %v7963_v60 = vld [vmem:[#allocation7 + $0xc4c] ss:$16 sps:$4 sm:$0xff]  }
 0x3a3   :  { %4703 = vmatpush1.bf16.msra.mxu1 %v7880_v44  ;;  %4458 = vmatprep.subr.bf16.mxu0 %v7885_v41  ;;  %v7957_v44 = vld [vmem:[#allocation7 + $0xc0c] ss:$16 sps:$4 sm:$0xff]  }
 0x3a4   :  { %4704 = vmatprep.subr.bf16.mxu1 %v7888_v37  ;;  %v8604_v41 = vpack.c.bf16 %v1073_v35, %v1073_v35  ;;  %v7955_v37 = vld [vmem:[#allocation7 + $0xc08] ss:$16 sps:$4 sm:$0xff]   ;;  %v8017_v35 = vld [vmem:[#allocation7 + $0xe8c] ss:$16 sps:$4 sm:$0xff]  }
 0x3a6   :  { %4459 = vmatpush1.bf16.msra.mxu0 %v7883_v30  ;;  %v7960_v30 = vld [vmem:[#allocation7 + $0xc2c] ss:$16 sps:$4 sm:$0xff]  }
 0x3a7   :  { %4705 = vmatpush1.bf16.msra.mxu1 %v7886_v45  ;;  %4460 = vmatprep.subr.bf16.mxu0 %v7891_v46  ;;  %v8052_v45 = vld [vmem:[#allocation8 + $0x40] sm:$0xff]   ;;  %v7958_v46 = vld [vmem:[#allocation7 + $0xc28] ss:$16 sps:$4 sm:$0xff]  }
 0x3a8   :  { %4706 = vmatprep.subr.bf16.mxu1 %v7894_v47  ;;  %v8054_v47 = vld [vmem:[#allocation8] sm:$0xff]  }
 0x3aa   :  { %4461 = vmatpush1.bf16.msra.mxu0 %v7889_v48  ;;  %v8056_v48 = vld [vmem:[#allocation8 + $0x48] sm:$0xff]  }
 0x3ab   :  { %4707 = vmatpush1.bf16.msra.mxu1 %v7892_v43  ;;  %4462 = vmatprep.subr.bf16.mxu0 %v7897_v49  ;;  %v7961_v43 = vld [vmem:[#allocation7 + $0xc48] ss:$16 sps:$4 sm:$0xff]  }
 0x3ac   :  { %4708 = vmatprep.subr.bf16.mxu1 %v7900_v50  ;;  %v8058_v49 = vld [vmem:[#allocation8 + $0x8] sm:$0xff]  }
 0x3ad   :  { %v7966_v50 = vld [vmem:[#allocation7 + $0xc6c] ss:$16 sps:$4 sm:$0xff]  }
 0x3ae   :  { %4463 = vmatpush1.bf16.msra.mxu0 %v7895_v51  ;;  %v8060_v51 = vld [vmem:[#allocation8 + $0x50] sm:$0xff]  }
 0x3af   :  { %4709 = vmatpush1.bf16.msra.mxu1 %v7898_v10  ;;  %4464 = vmatprep.subr.bf16.mxu0 %v7903_v52  ;;  %v8062_v10 = vld [vmem:[#allocation8 + $0x10] sm:$0xff]   ;;  %v8064_v52 = vld [vmem:[#allocation8 + $0x58] sm:$0xff]  }
 0x3b0   :  { %4710 = vmatprep.subr.bf16.mxu1 %v7906_v53  ;;  %v7967_v53 = vld [vmem:[#allocation7 + $0xc88] ss:$16 sps:$4 sm:$0xff]  }
 0x3b2   :  { %4465 = vmatpush1.bf16.msra.mxu0 %v7901_v54  ;;  %v8066_v54 = vld [vmem:[#allocation8 + $0x18] sm:$0xff]  }
 0x3b3   :  { %4711 = vmatpush1.bf16.msra.mxu1 %v7904_v56  ;;  %4466 = vmatprep.subr.bf16.mxu0 %v7909_v58  ;;  %v7972_v56 = vld [vmem:[#allocation7 + $0xcac] ss:$16 sps:$4 sm:$0xff]   ;;  %v8068_v58 = vld [vmem:[#allocation8 + $0x60] sm:$0xff]  }
 0x3b4   :  { %4712 = vmatprep.subr.bf16.mxu1 %v7912_v1  ;;  %v7970_v1 = vld [vmem:[#allocation7 + $0xca8] ss:$16 sps:$4 sm:$0xff]  }
 0x3b6   :  { %4467 = vmatpush1.bf16.msra.mxu0 %v7907_v3  ;;  %v8070_v3 = vld [vmem:[#allocation8 + $0x20] sm:$0xff]  }
 0x3b7   :  { %4713 = vmatpush1.bf16.msra.mxu1 %v7910_v63  ;;  %4468 = vmatprep.subr.bf16.mxu0 %v7915_v4  ;;  %v7975_v63 = vld [vmem:[#allocation7 + $0xccc] ss:$16 sps:$4 sm:$0xff]  }
 0x3b8   :  { %4714 = vmatprep.subr.bf16.mxu1 %v7918_v5  ;;  %v8072_v4 = vld [vmem:[#allocation8 + $0x68] sm:$0xff]  }
 0x3b9   :  { %v7973_v5 = vld [vmem:[#allocation7 + $0xcc8] ss:$16 sps:$4 sm:$0xff]  }
 0x3ba   :  { %4469 = vmatpush1.bf16.msra.mxu0 %v7913_v6  ;;  %v7978_v6 = vld [vmem:[#allocation7 + $0xcec] ss:$16 sps:$4 sm:$0xff]  }
 0x3bb   :  { %4715 = vmatpush1.bf16.msra.mxu1 %v7916_v34  ;;  %4470 = vmatprep.subr.bf16.mxu0 %v7921_v8  ;;  %v7976_v34 = vld [vmem:[#allocation7 + $0xce8] ss:$16 sps:$4 sm:$0xff]   ;;  %v7981_v8 = vld [vmem:[#allocation7 + $0xd0c] ss:$16 sps:$4 sm:$0xff]  }
 0x3bc   :  { %4716 = vmatprep.subr.bf16.mxu1 %v7924_v61  ;;  %v7979_v61 = vld [vmem:[#allocation7 + $0xd08] ss:$16 sps:$4 sm:$0xff]  }
 0x3be   :  { %4471 = vmatpush1.bf16.msra.mxu0 %v7919_v9  ;;  %v7984_v9 = vld [vmem:[#allocation7 + $0xd2c] ss:$16 sps:$4 sm:$0xff]  }
 0x3bf   :  { %4717 = vmatpush1.bf16.msra.mxu1 %v7922_v36  ;;  %4472 = vmatprep.subr.bf16.mxu0 %v7927_v12  ;;  %v7982_v36 = vld [vmem:[#allocation7 + $0xd28] ss:$16 sps:$4 sm:$0xff]   ;;  %v7987_v12 = vld [vmem:[#allocation7 + $0xd4c] ss:$16 sps:$4 sm:$0xff]  }
 0x3c0   :  { %4718 = vmatprep.subr.bf16.mxu1 %v7930_v13  ;;  %v7985_v13 = vld [vmem:[#allocation7 + $0xd48] ss:$16 sps:$4 sm:$0xff]  }
 0x3c2   :  { %4473 = vmatpush1.bf16.msra.mxu0 %v7925_v2  ;;  %v7990_v2 = vld [vmem:[#allocation7 + $0xd6c] ss:$16 sps:$4 sm:$0xff]  }
 0x3c3   :  { %4719 = vmatpush1.bf16.msra.mxu1 %v7928_v11  ;;  %4474 = vmatprep.subr.bf16.mxu0 %v7933_v15  ;;  %v7988_v11 = vld [vmem:[#allocation7 + $0xd68] ss:$16 sps:$4 sm:$0xff]   ;;  %v7993_v15 = vld [vmem:[#allocation7 + $0xd8c] ss:$16 sps:$4 sm:$0xff]  }
 0x3c4   :  { %4720 = vmatprep.subr.bf16.mxu1 %v7936_v16  ;;  %v7991_v16 = vld [vmem:[#allocation7 + $0xd88] ss:$16 sps:$4 sm:$0xff]  }
 0x3c6   :  { %4475 = vmatpush1.bf16.msra.mxu0 %v7931_v17  ;;  %v7996_v17 = vld [vmem:[#allocation7 + $0xdac] ss:$16 sps:$4 sm:$0xff]  }
 0x3c7   :  { %4721 = vmatpush1.bf16.msra.mxu1 %v7934_v18  ;;  %4476 = vmatprep.subr.bf16.mxu0 %v7939_v14  ;;  %v7994_v18 = vld [vmem:[#allocation7 + $0xda8] ss:$16 sps:$4 sm:$0xff]   ;;  %v7999_v14 = vld [vmem:[#allocation7 + $0xdcc] ss:$16 sps:$4 sm:$0xff]  }
 0x3c8   :  { %4722 = vmatprep.subr.bf16.mxu1 %v7942_v21  ;;  %v7997_v21 = vld [vmem:[#allocation7 + $0xdc8] ss:$16 sps:$4 sm:$0xff]  }
 0x3ca   :  { %4477 = vmatpush1.bf16.msra.mxu0 %v7937_v27  ;;  %v8002_v27 = vld [vmem:[#allocation7 + $0xdec] ss:$16 sps:$4 sm:$0xff]  }
 0x3cb   :  { %4723 = vmatpush1.bf16.msra.mxu1 %v7940_v59  ;;  %4478 = vmatprep.subr.bf16.mxu0 %v7945_v32  ;;  %v8000_v59 = vld [vmem:[#allocation7 + $0xde8] ss:$16 sps:$4 sm:$0xff]   ;;  %v8005_v32 = vld [vmem:[#allocation7 + $0xe0c] ss:$16 sps:$4 sm:$0xff]  }
 0x3cc   :  { %4724 = vmatprep.subr.bf16.mxu1 %v7948_v0  ;;  %v8003_v0 = vld [vmem:[#allocation7 + $0xe08] ss:$16 sps:$4 sm:$0xff]  }
 0x3ce   :  { %4479 = vmatpush1.bf16.msra.mxu0 %v7943_v33  ;;  %v8008_v33 = vld [vmem:[#allocation7 + $0xe2c] ss:$16 sps:$4 sm:$0xff]  }
 0x3cf   :  { %4725 = vmatpush1.bf16.msra.mxu1 %v7946_v39  ;;  %4480 = vmatprep.subr.bf16.mxu0 %v7951_v40  ;;  %v8006_v39 = vld [vmem:[#allocation7 + $0xe28] ss:$16 sps:$4 sm:$0xff]   ;;  %v8011_v40 = vld [vmem:[#allocation7 + $0xe4c] ss:$16 sps:$4 sm:$0xff]  }
 0x3d0   :  { %4726 = vmatprep.subr.bf16.mxu1 %v7954_v42  ;;  %v8009_v42 = vld [vmem:[#allocation7 + $0xe48] ss:$16 sps:$4 sm:$0xff]  }
 0x3d2   :  { %4481 = vmatpush1.bf16.msra.mxu0 %v7949_v19  ;;  %v8014_v19 = vld [vmem:[#allocation7 + $0xe6c] ss:$16 sps:$4 sm:$0xff]  }
 0x3d3   :  { %4727 = vmatpush1.bf16.msra.mxu1 %v7952_v26  ;;  %6929 = vmatprep.subr.bf16.mxu0 %v8052_v45  ;;  %v8012_v26 = vld [vmem:[#allocation7 + $0xe68] ss:$16 sps:$4 sm:$0xff]  }
 0x3d4   :  { %4737 = vmatprep.subr.bf16.mxu1 %v7957_v44  ;;  %v8015_v44 = vld [vmem:[#allocation7 + $0xe88] ss:$16 sps:$4 sm:$0xff]  }
 0x3d5   :  { %4483 = vmatmul.mubr.bf16.vlgmr.msra.gmra.mrb[12].mxu0 %v8604_v41  ;;  %v8074_v45 = vld [vmem:[#allocation8 + $0x28] sm:$0xff]  }
 0x3d6   :  { %4729 = vmatmul.mubr.bf16.vlgmr.msra.gmra.mrb[16].mxu1 %v8576_v7  ;;  %6930 = vmatpush3.bf16.msra.mxu0 %v8054_v47  ;;  %v7964_v7 = vld [vmem:[#allocation7 + $0xc68] ss:$16 sps:$4 sm:$0xff]   ;;  %v8076_v47 = vld [vmem:[#allocation8 + $0x70] sm:$0xff]  }
 0x3d7   :  { %4738 = vmatpush1.bf16.msra.mxu1 %v7955_v37  ;;  %4769 = vmatprep.mubr.bf16.mxu1 %v8579_v62  ;;  %v7969_v62 = vld [vmem:[#allocation7 + $0xc8c] ss:$16 sps:$4 sm:$0xff]  }
 0x3d8   :  { %4739 = vmatprep.subr.bf16.mxu1 %v7960_v30  ;;  %6931 = vmatprep.subr.bf16.mxu0 %v8056_v48  ;;  %v8020_v37 = vld [vmem:[#allocation7 + $0xeac] ss:$16 sps:$4 sm:$0xff]  }
 0x3d9   :  { %v8023_v30 = vld [vmem:[#allocation7 + $0xecc] ss:$16 sps:$4 sm:$0xff]  }
 0x3da   :  { %6932 = vmatpush3.bf16.msra.mxu0 %v8058_v49  ;;  %v8080_v48 = vld [vmem:[#allocation8 + $0x78] sm:$0xff]  }
 0x3db   :  { %4740 = vmatpush1.bf16.msra.mxu1 %v7958_v46  ;;  %6933 = vmatprep.subr.bf16.mxu0 %v8060_v51  ;;  %v8026_v46 = vld [vmem:[#allocation7 + $0xeec] ss:$16 sps:$4 sm:$0xff]   ;;  %v8027_v51 = vld [vmem:[#allocation7 + $0xf08] ss:$16 sps:$4 sm:$0xff]  }
 0x3dc   :  { %4741 = vmatprep.subr.bf16.mxu1 %v7963_v60  ;;  %v8078_v60 = vld [vmem:[#allocation8 + $0x30] sm:$0xff]   ;;  %v8029_v49 = vld [vmem:[#allocation7 + $0xf0c] ss:$16 sps:$4 sm:$0xff]  }
 0x3de   :  { %6934 = vmatpush3.bf16.msra.mxu0 %v8062_v10  ;;  %v8030_v10 = vld [vmem:[#allocation7 + $0xf28] ss:$16 sps:$4 sm:$0xff]  }
 0x3df   :  { %4742 = vmatpush1.bf16.msra.mxu1 %v7961_v43  ;;  %6935 = vmatprep.subr.bf16.mxu0 %v8064_v52  ;;  %v8024_v43 = vld [vmem:[#allocation7 + $0xee8] ss:$16 sps:$4 sm:$0xff]  }
 0x3e0   :  { %4743 = vmatprep.subr.bf16.mxu1 %v7966_v50  ;;  %v8082_v50 = vld [vmem:[#allocation8 + $0x38] sm:$0xff]  }
 0x3e1   :  { %v8033_v52 = vld [vmem:[#allocation7 + $0xf48] ss:$16 sps:$4 sm:$0xff]  }
 0x3e2   :  { %6936 = vmatpush3.bf16.msra.mxu0 %v8066_v54  ;;  %v8036_v54 = vld [vmem:[#allocation7 + $0xf68] ss:$16 sps:$4 sm:$0xff]  }
 0x3e3   :  { %4744 = vmatpush1.bf16.msra.mxu1 %v7964_v7  ;;  %6937 = vmatprep.subr.bf16.mxu0 %v8068_v58  ;;  %v8032_v7 = vld [vmem:[#allocation7 + $0xf2c] ss:$16 sps:$4 sm:$0xff]   ;;  %v8039_v58 = vld [vmem:[#allocation7 + $0xf88] ss:$16 sps:$4 sm:$0xff]  }
 0x3e4   :  { %4745 = vmatprep.subr.bf16.mxu1 %v7969_v62  ;;  %v8035_v62 = vld [vmem:[#allocation7 + $0xf4c] ss:$16 sps:$4 sm:$0xff]  }
 0x3e6   :  { %6938 = vmatpush3.bf16.msra.mxu0 %v8070_v3  ;;  %v8042_v3 = vld [vmem:[#allocation7 + $0xfa8] ss:$16 sps:$4 sm:$0xff]  }
 0x3e7   :  { %4746 = vmatpush1.bf16.msra.mxu1 %v7967_v53  ;;  %6939 = vmatprep.subr.bf16.mxu0 %v8072_v4  ;;  %v8038_v53 = vld [vmem:[#allocation7 + $0xf6c] ss:$16 sps:$4 sm:$0xff]   ;;  %v8045_v4 = vld [vmem:[#allocation7 + $0xfc8] ss:$16 sps:$4 sm:$0xff]  }
 0x3e8   :  { %4747 = vmatprep.subr.bf16.mxu1 %v7972_v56  ;;  %v8041_v56 = vld [vmem:[#allocation7 + $0xf8c] ss:$16 sps:$4 sm:$0xff]  }
 0x3ea   :  { %6940 = vmatpush3.bf16.msra.mxu0 %v8074_v45 }
 0x3eb   :  { %4748 = vmatpush1.bf16.msra.mxu1 %v7970_v1  ;;  %6941 = vmatprep.subr.bf16.mxu0 %v8076_v47  ;;  %v8044_v1 = vld [vmem:[#allocation7 + $0xfac] ss:$16 sps:$4 sm:$0xff]  }
 0x3ec   :  { %4749 = vmatprep.subr.bf16.mxu1 %v7975_v63  ;;  %v8047_v63 = vld [vmem:[#allocation7 + $0xfcc] ss:$16 sps:$4 sm:$0xff]  }
 0x3ed   :  { %v8085_v47 = vld [vmem:[#allocation8 + $0x348] sm:$0xff]  }
 0x3ee   :  { %6942 = vmatpush3.bf16.msra.mxu0 %v8078_v60  ;;  %v8100_v60 = vld [vmem:[#allocation8 + $0x80] sm:$0xff]  }
 0x3ef   :  { %4750 = vmatpush1.bf16.msra.mxu1 %v7973_v5  ;;  %6943 = vmatprep.subr.bf16.mxu0 %v8080_v48  ;;  %v8050_v5 = vld [vmem:[#allocation7 + $0xfec] ss:$16 sps:$4 sm:$0xff]  }
 0x3f0   :  { %4751 = vmatprep.subr.bf16.mxu1 %v7978_v6  ;;  %v8048_v6 = vld [vmem:[#allocation7 + $0xfe8] ss:$16 sps:$4 sm:$0xff]  }
 0x3f2   :  { %6944 = vmatpush3.bf16.msra.mxu0 %v8082_v50  ;;  %v8087_v50 = vld [vmem:[#allocation8 + $0x350] sm:$0xff]  }
 0x3f3   :  { %4752 = vmatpush1.bf16.msra.mxu1 %v7976_v34  ;;  %v8051_v34 = vld [vmem:[#allocation8 + $0x240] sm:$0xff]  }
 0x3f4   :  { %4753 = vmatprep.subr.bf16.mxu1 %v7981_v8  ;;  %v8053_v8 = vld [vmem:[#allocation8 + $0x200] sm:$0xff]  }
 0x3f7   :  { %4754 = vmatpush1.bf16.msra.mxu1 %v7979_v61  ;;  %v8099_v61 = vld [vmem:[#allocation8 + $0xc0] sm:$0xff]  }
 0x3f8   :  { %4755 = vmatprep.subr.bf16.mxu1 %v7984_v9  ;;  %v8055_v9 = vld [vmem:[#allocation8 + $0x248] sm:$0xff]   ;;  %6951 = vmatprep.subr.bf16.mxu0 %v8099_v61  ;;  %v8111_v61 = vld [vmem:[#allocation8 + $0xf0] sm:$0xff]  }
 0x3fb   :  { %4756 = vmatpush1.bf16.msra.mxu1 %v7982_v36  ;;  %v8057_v36 = vld [vmem:[#allocation8 + $0x208] sm:$0xff]  }
 0x3fc   :  { %4757 = vmatprep.subr.bf16.mxu1 %v7987_v12  ;;  %v8059_v12 = vld [vmem:[#allocation8 + $0x250] sm:$0xff]  }
 0x3ff   :  { %4758 = vmatpush1.bf16.msra.mxu1 %v7985_v13  ;;  %v8061_v13 = vld [vmem:[#allocation8 + $0x210] sm:$0xff]  }
 0x400   :  { %4759 = vmatprep.subr.bf16.mxu1 %v7990_v2  ;;  %v8063_v2 = vld [vmem:[#allocation8 + $0x258] sm:$0xff]  }
 0x403   :  { %4760 = vmatpush1.bf16.msra.mxu1 %v7988_v11  ;;  %v8065_v11 = vld [vmem:[#allocation8 + $0x218] sm:$0xff]  }
 0x404   :  { %4761 = vmatprep.subr.bf16.mxu1 %v7993_v15  ;;  %v8067_v15 = vld [vmem:[#allocation8 + $0x260] sm:$0xff]  }
 0x407   :  { %4762 = vmatpush1.bf16.msra.mxu1 %v7991_v16  ;;  %v8069_v16 = vld [vmem:[#allocation8 + $0x220] sm:$0xff]  }
 0x408   :  { %4763 = vmatprep.subr.bf16.mxu1 %v7996_v17  ;;  %v8071_v17 = vld [vmem:[#allocation8 + $0x268] sm:$0xff]  }
 0x40b   :  { %4764 = vmatpush1.bf16.msra.mxu1 %v7994_v18  ;;  %v8073_v18 = vld [vmem:[#allocation8 + $0x228] sm:$0xff]  }
 0x40c   :  { %4765 = vmatprep.subr.bf16.mxu1 %v7999_v14  ;;  %v8077_v14 = vld [vmem:[#allocation8 + $0x230] sm:$0xff]  }
 0x40f   :  { %4766 = vmatpush1.bf16.msra.mxu1 %v7997_v21  ;;  %v8079_v21 = vld [vmem:[#allocation8 + $0x278] sm:$0xff]  }
 0x410   :  { %4767 = vmatprep.subr.bf16.mxu1 %v8002_v27  ;;  %v8081_v27 = vld [vmem:[#allocation8 + $0x238] sm:$0xff]  }
 0x413   :  { %4768 = vmatpush1.bf16.msra.mxu1 %v8000_v59  ;;  %v8083_v59 = vld [vmem:[#allocation8 + $0x340] sm:$0xff]  }
 0x414   :  { %4778 = vmatprep.subr.bf16.mxu1 %v8005_v32 }
 0x416   :  { %4770 = vmatmul.mubr.bf16.vlgmr.msra.gmra.mrb[16].mxu1 %v8594_v20  ;;  %v8018_v20 = vld [vmem:[#allocation7 + $0xea8] ss:$16 sps:$4 sm:$0xff]  }
 0x417   :  { %4779 = vmatpush1.bf16.msra.mxu1 %v8003_v0  ;;  %4810 = vmatprep.mubr.bf16.mxu1 %v8597_v31  ;;  %v8021_v31 = vld [vmem:[#allocation7 + $0xec8] ss:$16 sps:$4 sm:$0xff]  }
 0x418   :  { %4780 = vmatprep.subr.bf16.mxu1 %v8008_v33 }
 0x41b   :  { %4781 = vmatpush1.bf16.msra.mxu1 %v8006_v39 }
 0x41c   :  { %4782 = vmatprep.subr.bf16.mxu1 %v8011_v40 }
 0x41f   :  { %4783 = vmatpush1.bf16.msra.mxu1 %v8009_v42 }
 0x420   :  { %4784 = vmatprep.subr.bf16.mxu1 %v8014_v19 }
 0x423   :  { %4785 = vmatpush1.bf16.msra.mxu1 %v8012_v26 }
 0x424   :  { %4786 = vmatprep.subr.bf16.mxu1 %v8017_v35 }
 0x427   :  { %4787 = vmatpush1.bf16.msra.mxu1 %v8015_v44 }
 0x428   :  { %4788 = vmatprep.subr.bf16.mxu1 %v8020_v37 }
 0x42b   :  { %4789 = vmatpush1.bf16.msra.mxu1 %v8018_v20 }
 0x42c   :  { %4790 = vmatprep.subr.bf16.mxu1 %v8023_v30 }
 0x42f   :  { %4791 = vmatpush1.bf16.msra.mxu1 %v8021_v31  ;;  %v8084_v31 = vld [vmem:[#allocation8 + $0x300] sm:$0xff]  }
 0x430   :  { %4792 = vmatprep.subr.bf16.mxu1 %v8026_v46 }
 0x433   :  { %4793 = vmatpush1.bf16.msra.mxu1 %v8024_v43  ;;  %v8101_v43 = vld [vmem:[#allocation8 + $0xc8] sm:$0xff]  }
 0x434   :  { %4794 = vmatprep.subr.bf16.mxu1 %v8029_v49  ;;  %v8086_v49 = vld [vmem:[#allocation8 + $0x308] sm:$0xff]  }
 0x437   :  { %4795 = vmatpush1.bf16.msra.mxu1 %v8027_v51  ;;  %v8102_v51 = vld [vmem:[#allocation8 + $0x88] sm:$0xff]  }
 0x438   :  { %4796 = vmatprep.subr.bf16.mxu1 %v8032_v7  ;;  %v8103_v7 = vld [vmem:[#allocation8 + $0xd0] sm:$0xff]  }
 0x43b   :  { %4797 = vmatpush1.bf16.msra.mxu1 %v8030_v10  ;;  %v8088_v10 = vld [vmem:[#allocation8 + $0x310] sm:$0xff]  }
 0x43c   :  { %4798 = vmatprep.subr.bf16.mxu1 %v8035_v62  ;;  %v8089_v62 = vld [vmem:[#allocation8 + $0x358] sm:$0xff]  }
 0x43f   :  { %4799 = vmatpush1.bf16.msra.mxu1 %v8033_v52  ;;  %v8104_v52 = vld [vmem:[#allocation8 + $0x90] sm:$0xff]  }
 0x440   :  { %4800 = vmatprep.subr.bf16.mxu1 %v8038_v53  ;;  %v8105_v53 = vld [vmem:[#allocation8 + $0xd8] sm:$0xff]  }
 0x443   :  { %4801 = vmatpush1.bf16.msra.mxu1 %v8036_v54  ;;  %v8090_v54 = vld [vmem:[#allocation8 + $0x318] sm:$0xff]  }
 0x444   :  { %4802 = vmatprep.subr.bf16.mxu1 %v8041_v56  ;;  %v8091_v56 = vld [vmem:[#allocation8 + $0x360] sm:$0xff]  }
 0x447   :  { %4803 = vmatpush1.bf16.msra.mxu1 %v8039_v58  ;;  %v8106_v58 = vld [vmem:[#allocation8 + $0x98] sm:$0xff]  }
 0x448   :  { %4804 = vmatprep.subr.bf16.mxu1 %v8044_v1  ;;  %v8107_v1 = vld [vmem:[#allocation8 + $0xe0] sm:$0xff]  }
 0x44b   :  { %4805 = vmatpush1.bf16.msra.mxu1 %v8042_v3  ;;  %v8092_v3 = vld [vmem:[#allocation8 + $0x320] sm:$0xff]  }
 0x44c   :  { %4806 = vmatprep.subr.bf16.mxu1 %v8047_v63  ;;  %v8093_v63 = vld [vmem:[#allocation8 + $0x368] sm:$0xff]  }
 0x44f   :  { %4807 = vmatpush1.bf16.msra.mxu1 %v8045_v4  ;;  %v8108_v4 = vld [vmem:[#allocation8 + $0xa0] sm:$0xff]  }
 0x450   :  { %4808 = vmatprep.subr.bf16.mxu1 %v8050_v5  ;;  %v8109_v5 = vld [vmem:[#allocation8 + $0xe8] sm:$0xff]  }
 0x453   :  { %4809 = vmatpush1.bf16.msra.mxu1 %v8048_v6  ;;  %v8094_v6 = vld [vmem:[#allocation8 + $0x328] sm:$0xff]  }
 0x454   :  { %7017 = vmatprep.subr.bf16.mxu1 %v8051_v34  ;;  %v8095_v34 = vld [vmem:[#allocation8 + $0x370] sm:$0xff]  }
 0x456   :  { %4811 = vmatmul.mubr.bf16.vlgmr.msra.gmra.mrb[16].mxu1 %v8604_v41  ;;  %v8075_v41 = vld [vmem:[#allocation8 + $0x270] sm:$0xff]  }
 0x457   :  { %7018 = vmatpush3.bf16.msra.mxu1 %v8053_v8  ;;  %v8110_v8 = vld [vmem:[#allocation8 + $0xa8] sm:$0xff]  }
 0x458   :  { %7019 = vmatprep.subr.bf16.mxu1 %v8055_v9  ;;  %v8096_v9 = vld [vmem:[#allocation8 + $0x330] sm:$0xff]  }
 0x45b   :  { %7020 = vmatpush3.bf16.msra.mxu1 %v8057_v36  ;;  %v8097_v36 = vld [vmem:[#allocation8 + $0x378] sm:$0xff]  }
 0x45c   :  { %7021 = vmatprep.subr.bf16.mxu1 %v8059_v12  ;;  %v8112_v12 = vld [vmem:[#allocation8 + $0xb0] sm:$0xff]  }
 0x45f   :  { %7022 = vmatpush3.bf16.msra.mxu1 %v8061_v13  ;;  %v8113_v13 = vld [vmem:[#allocation8 + $0xf8] sm:$0xff]  }
 0x460   :  { %7023 = vmatprep.subr.bf16.mxu1 %v8063_v2  ;;  %v8098_v2 = vld [vmem:[#allocation8 + $0x338] sm:$0xff]  }
 0x463   :  { %7024 = vmatpush3.bf16.msra.mxu1 %v8065_v11 }
 0x464   :  { %7025 = vmatprep.subr.bf16.mxu1 %v8067_v15  ;;  %v8114_v15 = vld [vmem:[#allocation8 + $0xb8] sm:$0xff]  }
 0x467   :  { %7026 = vmatpush3.bf16.msra.mxu1 %v8069_v16  ;;  %v8115_v16 = vld [vmem:[#allocation8 + $0x140] sm:$0xff]  }
 0x468   :  { %7027 = vmatprep.subr.bf16.mxu1 %v8071_v17 }
 0x46b   :  { %7028 = vmatpush3.bf16.msra.mxu1 %v8073_v18 }
 0x46c   :  { %7029 = vmatprep.subr.bf16.mxu1 %v8075_v41 }
 0x46f   :  { %7030 = vmatpush3.bf16.msra.mxu1 %v8077_v14 }
 0x470   :  { %7031 = vmatprep.subr.bf16.mxu1 %v8079_v21 }
 0x473   :  { %7032 = vmatpush3.bf16.msra.mxu1 %v8081_v27 }
 0x474   :  { %7061 = vmatprep.subr.bf16.mxu1 %v8083_v59 }
 0x4a8   :  { %v4484_v32 = vpop.f32.mrb[12].mxu0 }
 0x4a9   :  { %v7110_v0 = vadd.f32 %v4484_v32, %v8567_v55  ;;  %v4486_v33 = vpop.f32.mrb[13].mxu0 }
 0x4aa   :  { %v7111_v39 = vadd.f32 %v4486_v33, %v8570_v57  ;;  %v4488_v40 = vpop.f32.mrb[14].mxu0 }
 0x4ab   :  { %v8614_v42 = vmax.f32 %v7110_v0, 0.0  ;;  %v4489_v19 = vpop.f32.mrb[15].mxu0 }
 0x4ac   :  { %v8616_v26 = vmax.f32 %v7111_v39, 0.0 }
 0x4ad   :  { %v4823_v35 = vmul.f32 %v8614_v42, %v8484_v25  ;;  %v4831_v44 = vmul.f32 %v8614_v42, %v8482_v23  ;;  %v4835_v11 = vmul.f32 %v8614_v42, %v8472_v24 }
 0x4ae   :  { %v4824_v37 = vmul.f32 %v8616_v26, %v8484_v25  ;;  %v4832_v55 = vmul.f32 %v8616_v26, %v8482_v23  ;;  %v4836_v57 = vmul.f32 %v8616_v26, %v8472_v24  ;;  %v4828_v40 = vmul.f32 %v8616_v26, %v8477_v29  ;;  %v8123_v26 = vld [vmem:[#allocation8 + $0x160] sm:$0xff]  }
 0x4af   :  { %v4839_v45 = vpack.c.bf16 %v4823_v35, %v4823_v35  ;;  %v4847_v46 = vpack.c.bf16 %v4831_v44, %v4831_v44  ;;  %v4851_v17 = vpack.c.bf16 %v4835_v11, %v4835_v11  ;;  %v8117_v44 = vld [vmem:[#allocation8 + $0x148] sm:$0xff]  }
 0x4b0   :  { %v4840_v20 = vpack.c.bf16 %v4824_v37, %v4824_v37  ;;  %v4848_v30 = vpack.c.bf16 %v4832_v55, %v4832_v55  ;;  %v4852_v48 = vpack.c.bf16 %v4836_v57, %v4836_v57  ;;  %v8118_v37 = vld [vmem:[#allocation8 + $0x108] sm:$0xff]   ;;  %v8119_v55 = vld [vmem:[#allocation8 + $0x150] sm:$0xff]  }
 0x4b1   :  { %v8120_v57 = vld [vmem:[#allocation8 + $0x110] sm:$0xff]   ;;  %v8150_v11 = vld [vmem:[#allocation8 + $0x288] sm:$0xff]  }
 0x4b2   :  { %5911 = vmatprep.mubr.bf16.mxu0 %v4840_v20  ;;  %6071 = vmatprep.mubr.bf16.mxu1 %v4848_v30  ;;  %v8121_v20 = vld [vmem:[#allocation8 + $0x158] sm:$0xff]   ;;  %v8124_v30 = vld [vmem:[#allocation8 + $0x120] sm:$0xff]  }
 0x4b3   :  { %5912 = vmatmul.mubr.bf16.vlgmr.msra.gmra.mrb[16].mxu0 %v4839_v45  ;;  %6072 = vmatmul.mubr.bf16.vlgmr.msra.gmra.mrb[20].mxu1 %v4847_v46  ;;  %v8126_v45 = vld [vmem:[#allocation8 + $0x128] sm:$0xff]   ;;  %v8127_v46 = vld [vmem:[#allocation8 + $0x170] sm:$0xff]  }
 0x4b4   :  { %7062 = vmatpush3.bf16.msra.mxu1 %v8084_v31  ;;  %6151 = vmatprep.mubr.bf16.mxu1 %v4852_v48  ;;  %v8125_v31 = vld [vmem:[#allocation8 + $0x168] sm:$0xff]   ;;  %v8130_v48 = vld [vmem:[#allocation8 + $0x138] sm:$0xff]  }
 0x4b5   :  { %7063 = vmatprep.subr.bf16.mxu1 %v8085_v47  ;;  %6952 = vmatpush3.bf16.msra.mxu0 %v8100_v60  ;;  %v8128_v47 = vld [vmem:[#allocation8 + $0x130] sm:$0xff]   ;;  %v8129_v60 = vld [vmem:[#allocation8 + $0x178] sm:$0xff]  }
 0x4b6   :  { %6953 = vmatprep.subr.bf16.mxu0 %v8101_v43  ;;  %v4827_v43 = vmul.f32 %v8614_v42, %v8477_v29  ;;  %v8137_v42 = vld [vmem:[#allocation8 + $0x1d8] sm:$0xff]  }
 0x4b8   :  { %7064 = vmatpush3.bf16.msra.mxu1 %v8086_v49  ;;  %v8131_v49 = vld [vmem:[#allocation8 + $0x1c0] sm:$0xff]  }
 0x4b9   :  { %7065 = vmatprep.subr.bf16.mxu1 %v8087_v50  ;;  %6954 = vmatpush3.bf16.msra.mxu0 %v8102_v51  ;;  %v8132_v51 = vld [vmem:[#allocation8 + $0x180] sm:$0xff]  }
 0x4ba   :  { %6955 = vmatprep.subr.bf16.mxu0 %v8103_v7  ;;  %v4843_v7 = vpack.c.bf16 %v4827_v43, %v4827_v43  ;;  %v8168_v43 = vld [vmem:[#allocation8 + $0x390] sm:$0xff]  }
 0x4bc   :  { %7066 = vmatpush3.bf16.msra.mxu1 %v8088_v10  ;;  %v8133_v10 = vld [vmem:[#allocation8 + $0x1c8] sm:$0xff]  }
 0x4bd   :  { %7067 = vmatprep.subr.bf16.mxu1 %v8089_v62  ;;  %6956 = vmatpush3.bf16.msra.mxu0 %v8104_v52  ;;  %v8134_v52 = vld [vmem:[#allocation8 + $0x188] sm:$0xff]  }
 0x4be   :  { %6957 = vmatprep.subr.bf16.mxu0 %v8105_v53  ;;  %v8135_v53 = vld [vmem:[#allocation8 + $0x1d0] sm:$0xff]  }
 0x4c0   :  { %7068 = vmatpush3.bf16.msra.mxu1 %v8090_v54  ;;  %v8136_v54 = vld [vmem:[#allocation8 + $0x190] sm:$0xff]  }
 0x4c1   :  { %7069 = vmatprep.subr.bf16.mxu1 %v8091_v56  ;;  %6958 = vmatpush3.bf16.msra.mxu0 %v8106_v58  ;;  %v8138_v56 = vld [vmem:[#allocation8 + $0x198] sm:$0xff]   ;;  %v8139_v58 = vld [vmem:[#allocation8 + $0x1e0] sm:$0xff]  }
 0x4c2   :  { %6959 = vmatprep.subr.bf16.mxu0 %v8107_v1  ;;  %v8140_v1 = vld [vmem:[#allocation8 + $0x1a0] sm:$0xff]  }
 0x4c4   :  { %7070 = vmatpush3.bf16.msra.mxu1 %v8092_v3  ;;  %v8141_v3 = vld [vmem:[#allocation8 + $0x1e8] sm:$0xff]  }
 0x4c5   :  { %7071 = vmatprep.subr.bf16.mxu1 %v8093_v63  ;;  %6960 = vmatpush3.bf16.msra.mxu0 %v8108_v4  ;;  %v8142_v63 = vld [vmem:[#allocation8 + $0x1a8] sm:$0xff]   ;;  %v8143_v4 = vld [vmem:[#allocation8 + $0x1f0] sm:$0xff]  }
 0x4c6   :  { %6961 = vmatprep.subr.bf16.mxu0 %v8109_v5  ;;  %v8144_v5 = vld [vmem:[#allocation8 + $0x1b0] sm:$0xff]  }
 0x4c8   :  { %7072 = vmatpush3.bf16.msra.mxu1 %v8094_v6  ;;  %v8145_v6 = vld [vmem:[#allocation8 + $0x1f8] sm:$0xff]  }
 0x4c9   :  { %7073 = vmatprep.subr.bf16.mxu1 %v8095_v34  ;;  %6962 = vmatpush3.bf16.msra.mxu0 %v8110_v8  ;;  %v8146_v34 = vld [vmem:[#allocation8 + $0x1b8] sm:$0xff]  }
 0x4ca   :  { %6963 = vmatprep.subr.bf16.mxu0 %v8111_v61  ;;  %v8147_v61 = vld [vmem:[#allocation8 + $0x2c0] sm:$0xff]  }
 0x4cc   :  { %7074 = vmatpush3.bf16.msra.mxu1 %v8096_v9 }
 0x4cd   :  { %7075 = vmatprep.subr.bf16.mxu1 %v8097_v36  ;;  %6964 = vmatpush3.bf16.msra.mxu0 %v8112_v12  ;;  %v8148_v36 = vld [vmem:[#allocation8 + $0x280] sm:$0xff]  }
 0x4ce   :  { %6965 = vmatprep.subr.bf16.mxu0 %v8113_v13  ;;  %v8149_v13 = vld [vmem:[#allocation8 + $0x2c8] sm:$0xff]  }
 0x4d0   :  { %7076 = vmatpush3.bf16.msra.mxu1 %v8098_v2 }
 0x4d1   :  { %6966 = vmatpush3.bf16.msra.mxu0 %v8114_v15  ;;  %v8151_v15 = vld [vmem:[#allocation8 + $0x2d0] sm:$0xff]  }
 0x4d2   :  { %6973 = vmatprep.subr.bf16.mxu0 %v8115_v16  ;;  %v8152_v16 = vld [vmem:[#allocation8 + $0x290] sm:$0xff]  }
 0x4d3   :  { %6152 = vmatmul.mubr.bf16.vlgmr.msra.gmra.mrb[24].mxu1 %v4851_v17  ;;  %v8154_v17 = vld [vmem:[#allocation8 + $0x298] sm:$0xff]  }
 0x529   :  { %v4812_v18 = vpop.f32.mrb[16].mxu1 }
 0x52a   :  { %v7112_v41 = vadd.f32 %v4812_v18, %v8585_v22  ;;  %v4814_v14 = vpop.f32.mrb[17].mxu1  ;;  %v8116_v22 = vld [vmem:[#allocation8 + $0x100] sm:$0xff]  }
 0x52b   :  { %v7113_v21 = vadd.f32 %v4814_v14, %v8588_v28  ;;  %v4816_v27 = vpop.f32.mrb[18].mxu1  ;;  %v4844_v28 = vpack.c.bf16 %v4828_v40, %v4828_v40  ;;  %v8155_v18 = vld [vmem:[#allocation8 + $0x2e0] sm:$0xff]   ;;  %v8157_v14 = vld [vmem:[#allocation8 + $0x2e8] sm:$0xff]  }
 0x52c   :  { %v8632_v59 = vmax.f32 %v7112_v41, 0.0  ;;  %v4817_v32 = vpop.f32.mrb[19].mxu1  ;;  %v8156_v41 = vld [vmem:[#allocation8 + $0x2a0] sm:$0xff]  }
 0x52d   :  { %v8634_v0 = vmax.f32 %v7113_v21, 0.0  ;;  %v8158_v21 = vld [vmem:[#allocation8 + $0x2a8] sm:$0xff]  }
 0x52e   :  { %v4825_v33 = vmul.f32 %v8632_v59, %v8484_v25  ;;  %v4829_v8 = vmul.f32 %v8632_v59, %v8477_v29 }
 0x52f   :  { %v4826_v39 = vmul.f32 %v8634_v0, %v8484_v25  ;;  %v8122_v25 = vld [vmem:[#allocation8 + $0x118] sm:$0xff]   ;;  %v4830_v50 = vmul.f32 %v8634_v0, %v8477_v29  ;;  %v4834_v9 = vmul.f32 %v8634_v0, %v8482_v23 }
 0x530   :  { %v4841_v35 = vpack.c.bf16 %v4825_v33, %v4825_v33  ;;  %v4845_v12 = vpack.c.bf16 %v4829_v8, %v4829_v8  ;;  %v8153_v29 = vld [vmem:[#allocation8 + $0x2d8] sm:$0xff]   ;;  %v8159_v33 = vld [vmem:[#allocation8 + $0x2f0] sm:$0xff]  }
 0x531   :  { %v4842_v19 = vpack.c.bf16 %v4826_v39, %v4826_v39  ;;  %v4846_v62 = vpack.c.bf16 %v4830_v50, %v4830_v50  ;;  %v4850_v2 = vpack.c.bf16 %v4834_v9, %v4834_v9  ;;  %v8172_v50 = vld [vmem:[#allocation8 + $0x3a0] sm:$0xff]  }
 0x533   :  { %5951 = vmatprep.mubr.bf16.mxu0 %v4842_v19 }
 0x534   :  { %5952 = vmatmul.mubr.bf16.vlgmr.msra.gmra.mrb[20].mxu0 %v4841_v35 }
 0x535   :  { %6974 = vmatpush3.bf16.msra.mxu0 %v8116_v22  ;;  %5991 = vmatprep.mubr.bf16.mxu0 %v4844_v28 }
 0x536   :  { %6975 = vmatprep.subr.bf16.mxu0 %v8117_v44 }
 0x539   :  { %6976 = vmatpush3.bf16.msra.mxu0 %v8118_v37 }
 0x53a   :  { %6977 = vmatprep.subr.bf16.mxu0 %v8119_v55  ;;  %v8160_v55 = vld [vmem:[#allocation8 + $0x2b0] sm:$0xff]  }
 0x53d   :  { %6978 = vmatpush3.bf16.msra.mxu0 %v8120_v57 }
 0x53e   :  { %6979 = vmatprep.subr.bf16.mxu0 %v8121_v20  ;;  %v8161_v20 = vld [vmem:[#allocation8 + $0x2f8] sm:$0xff]  }
 0x541   :  { %6980 = vmatpush3.bf16.msra.mxu0 %v8122_v25  ;;  %v8162_v25 = vld [vmem:[#allocation8 + $0x2b8] sm:$0xff]  }
 0x542   :  { %6981 = vmatprep.subr.bf16.mxu0 %v8123_v26  ;;  %v4833_v26 = vmul.f32 %v8632_v59, %v8482_v23  ;;  %v8169_v23 = vld [vmem:[#allocation8 + $0x3d8] sm:$0xff]  }
 0x545   :  { %6982 = vmatpush3.bf16.msra.mxu0 %v8124_v30  ;;  %v8163_v30 = vld [vmem:[#allocation8 + $0x3c0] sm:$0xff]  }
 0x546   :  { %6983 = vmatprep.subr.bf16.mxu0 %v8125_v31  ;;  %v4838_v31 = vmul.f32 %v8634_v0, %v8472_v24  ;;  %v8171_v0 = vld [vmem:[#allocation8 + $0x3e0] sm:$0xff]  }
 0x549   :  { %6984 = vmatpush3.bf16.msra.mxu0 %v8126_v45  ;;  %v8164_v45 = vld [vmem:[#allocation8 + $0x380] sm:$0xff]  }
 0x54a   :  { %6985 = vmatprep.subr.bf16.mxu0 %v8127_v46  ;;  %v4849_v46 = vpack.c.bf16 %v4833_v26, %v4833_v26 }
 0x54d   :  { %6986 = vmatpush3.bf16.msra.mxu0 %v8128_v47  ;;  %v8165_v47 = vld [vmem:[#allocation8 + $0x3c8] sm:$0xff]  }
 0x54e   :  { %6987 = vmatprep.subr.bf16.mxu0 %v8129_v60  ;;  %v4854_v60 = vpack.c.bf16 %v4838_v31, %v4838_v31 }
 0x551   :  { %6988 = vmatpush3.bf16.msra.mxu0 %v8130_v48  ;;  %v8167_v48 = vld [vmem:[#allocation8 + $0x3d0] sm:$0xff]  }
 0x552   :  { %6995 = vmatprep.subr.bf16.mxu0 %v8131_v49  ;;  %v8170_v49 = vld [vmem:[#allocation8 + $0x398] sm:$0xff]  }
 0x554   :  { %5992 = vmatmul.mubr.bf16.vlgmr.msra.gmra.mrb[24].mxu0 %v4843_v7  ;;  %v8174_v7 = vld [vmem:[#allocation8 + $0x3a8] sm:$0xff]  }
 0x555   :  { %6996 = vmatpush3.bf16.msra.mxu0 %v8132_v51  ;;  %6031 = vmatprep.mubr.bf16.mxu0 %v4846_v62  ;;  %v8173_v51 = vld [vmem:[#allocation8 + $0x3e8] sm:$0xff]   ;;  %v8175_v62 = vld [vmem:[#allocation8 + $0x3f0] sm:$0xff]  }
 0x556   :  { %6997 = vmatprep.subr.bf16.mxu0 %v8133_v10 }
 0x559   :  { %6998 = vmatpush3.bf16.msra.mxu0 %v8134_v52 }
 0x55a   :  { %6999 = vmatprep.subr.bf16.mxu0 %v8135_v53 }
 0x55d   :  { %7000 = vmatpush3.bf16.msra.mxu0 %v8136_v54 }
 0x55e   :  { %7001 = vmatprep.subr.bf16.mxu0 %v8137_v42 }
 0x561   :  { %7002 = vmatpush3.bf16.msra.mxu0 %v8138_v56  ;;  %v8176_v56 = vld [vmem:[#allocation8 + $0x3b0] sm:$0xff]  }
 0x562   :  { %7003 = vmatprep.subr.bf16.mxu0 %v8139_v58  ;;  %v8177_v58 = vld [vmem:[#allocation8 + $0x3f8] sm:$0xff]  }
 0x565   :  { %7004 = vmatpush3.bf16.msra.mxu0 %v8140_v1  ;;  %v8178_v1 = vld [vmem:[#allocation8 + $0x3b8] sm:$0xff]  }
 0x566   :  { %7005 = vmatprep.subr.bf16.mxu0 %v8141_v3  ;;  %v4837_v3 = vmul.f32 %v8632_v59, %v8472_v24 }
 0x569   :  { %7006 = vmatpush3.bf16.msra.mxu0 %v8142_v63  ;;  %v4853_v63 = vpack.c.bf16 %v4837_v3, %v4837_v3 }
 0x56a   :  { %7007 = vmatprep.subr.bf16.mxu0 %v8143_v4 }
 0x56d   :  { %7008 = vmatpush3.bf16.msra.mxu0 %v8144_v5 }
 0x56e   :  { %7009 = vmatprep.subr.bf16.mxu0 %v8145_v6 }
 0x571   :  { %7010 = vmatpush3.bf16.msra.mxu0 %v8146_v34 }
 0x572   :  { %7039 = vmatprep.subr.bf16.mxu0 %v8147_v61 }
 0x574   :  { %6032 = vmatmul.mubr.bf16.vlgmr.msra.gmra.mrb[28].mxu0 %v4845_v12 }
 0x575   :  { %7040 = vmatpush3.bf16.msra.mxu0 %v8148_v36  ;;  %6111 = vmatprep.mubr.bf16.mxu0 %v4850_v2 }
 0x576   :  { %7041 = vmatprep.subr.bf16.mxu0 %v8149_v13 }
 0x579   :  { %7042 = vmatpush3.bf16.msra.mxu0 %v8150_v11 }
 0x57a   :  { %7043 = vmatprep.subr.bf16.mxu0 %v8151_v15 }
 0x57d   :  { %7044 = vmatpush3.bf16.msra.mxu0 %v8152_v16 }
 0x57e   :  { %7045 = vmatprep.subr.bf16.mxu0 %v8153_v29 }
 0x581   :  { %7046 = vmatpush3.bf16.msra.mxu0 %v8154_v17 }
 0x582   :  { %7047 = vmatprep.subr.bf16.mxu0 %v8155_v18 }
 0x585   :  { %7048 = vmatpush3.bf16.msra.mxu0 %v8156_v41 }
 0x586   :  { %v6945_v27 = vpop.f32.mrb[16].mxu0  ;;  %v7033_v32 = vpop.f32.mrb[20].mxu1  ;;  %7049 = vmatprep.subr.bf16.mxu0 %v8157_v14 }
 0x587   :  { %v6946_v39 = vpop.f32.mrb[17].mxu0  ;;  %v7034_v40 = vpop.f32.mrb[21].mxu1 }
 0x588   :  { %v6947_v19 = vadd.f32 %v6946_v39, %v6945_v27  ;;  %v8650_v22 = vadd.f32 %v7034_v40, %v7033_v32  ;;  %v6948_v35 = vpop.f32.mrb[18].mxu0  ;;  %v7036_v44 = vpop.f32.mrb[22].mxu1 }
 0x589   :  { %7050 = vmatpush3.bf16.msra.mxu0 %v8158_v21  ;;  %v6949_v28 = vpop.f32.mrb[19].mxu0  ;;  %v7037_v37 = vpop.f32.mrb[23].mxu1 }
 0x58a   :  { %v5914_v57 = vadd.f32 %v6947_v19, %v8498_v38  ;;  %7051 = vmatprep.subr.bf16.mxu0 %v8159_v33  ;;  %v8166_v38 = vld [vmem:[#allocation8 + $0x388] sm:$0xff]  }
 0x58d   :  { %7052 = vmatpush3.bf16.msra.mxu0 %v8160_v55 }
 0x58e   :  { %7053 = vmatprep.subr.bf16.mxu0 %v8161_v20 }
 0x591   :  { %7054 = vmatpush3.bf16.msra.mxu0 %v8162_v25 }
 0x592   :  { %7083 = vmatprep.subr.bf16.mxu0 %v8163_v30 }
 0x594   :  { %6112 = vmatmul.mubr.bf16.vlgmr.msra.gmra.mrb[32].mxu0 %v4849_v46 }
 0x595   :  { %7084 = vmatpush3.bf16.msra.mxu0 %v8164_v45  ;;  %6191 = vmatprep.mubr.bf16.mxu0 %v4854_v60 }
 0x596   :  { %7085 = vmatprep.subr.bf16.mxu0 %v8165_v47 }
 0x599   :  { %7086 = vmatpush3.bf16.msra.mxu0 %v8166_v38 }
 0x59a   :  { %7087 = vmatprep.subr.bf16.mxu0 %v8167_v48 }
 0x59d   :  { %7088 = vmatpush3.bf16.msra.mxu0 %v8168_v43 }
 0x59e   :  { %7089 = vmatprep.subr.bf16.mxu0 %v8169_v23 }
 0x5a1   :  { %7090 = vmatpush3.bf16.msra.mxu0 %v8170_v49 }
 0x5a2   :  { %7091 = vmatprep.subr.bf16.mxu0 %v8171_v0 }
 0x5a5   :  { %7092 = vmatpush3.bf16.msra.mxu0 %v8172_v50 }
 0x5a6   :  { %v7077_v10 = vpop.f32.mrb[24].mxu1  ;;  %7093 = vmatprep.subr.bf16.mxu0 %v8173_v51 }
 0x5a7   :  { %v7078_v52 = vpop.f32.mrb[25].mxu1 }
 0x5a8   :  { %v7079_v53 = vadd.f32 %v7078_v52, %v7077_v10  ;;  %v7080_v54 = vpop.f32.mrb[26].mxu1 }
 0x5a9   :  { %7094 = vmatpush3.bf16.msra.mxu0 %v8174_v7  ;;  %v7081_v42 = vpop.f32.mrb[27].mxu1 }
 0x5aa   :  { %7095 = vmatprep.subr.bf16.mxu0 %v8175_v62 }
 0x5ad   :  { %7096 = vmatpush3.bf16.msra.mxu0 %v8176_v56 }
 0x5ae   :  { %7097 = vmatprep.subr.bf16.mxu0 %v8177_v58 }
 0x5b1   :  { %7098 = vmatpush3.bf16.msra.mxu0 %v8178_v1 }
 0x5b4   :  { %6192 = vmatmul.mubr.bf16.vlgmr.msra.gmra.mrb[36].mxu0 %v4853_v63 }
 0x607   :  { %v6967_v4 = vpop.f32.mrb[20].mxu0 }
 0x608   :  { %v6968_v5 = vpop.f32.mrb[21].mxu0 }
 0x609   :  { %v6969_v6 = vadd.f32 %v6968_v5, %v6967_v4  ;;  %v6970_v34 = vpop.f32.mrb[22].mxu0 }
 0x60a   :  { %v6971_v8 = vpop.f32.mrb[23].mxu0 }
 0x60b   :  { %v5954_v61 = vadd.f32 %v6969_v6, %v5914_v57 }
 0x627   :  { %v6989_v9 = vpop.f32.mrb[24].mxu0 }
 0x628   :  { %v6990_v36 = vpop.f32.mrb[25].mxu0 }
 0x629   :  { %v6991_v12 = vadd.f32 %v6990_v36, %v6989_v9  ;;  %v6992_v13 = vpop.f32.mrb[26].mxu0 }
 0x62a   :  { %v6993_v2 = vpop.f32.mrb[27].mxu0 }
 0x62b   :  { %v5994_v11 = vadd.f32 %v6991_v12, %v5954_v61 }
 0x647   :  { %v7011_v15 = vpop.f32.mrb[28].mxu0 }
 0x648   :  { %v7012_v16 = vpop.f32.mrb[29].mxu0 }
 0x649   :  { %v7013_v29 = vadd.f32 %v7012_v16, %v7011_v15  ;;  %v7014_v17 = vpop.f32.mrb[30].mxu0 }
 0x64a   :  { %v7015_v24 = vpop.f32.mrb[31].mxu0 }
 0x64b   :  { %v6034_v59 = vadd.f32 %v7013_v29, %v5994_v11 }
 0x64d   :  { %v6074_v18 = vadd.f32 %v8650_v22, %v6034_v59 }
 0x667   :  { %v7055_v41 = vpop.f32.mrb[32].mxu0 }
 0x668   :  { %v7056_v14 = vpop.f32.mrb[33].mxu0 }
 0x669   :  { %v7057_v21 = vadd.f32 %v7056_v14, %v7055_v41  ;;  %v7058_v27 = vpop.f32.mrb[34].mxu0 }
 0x66a   :  { %v7059_v32 = vpop.f32.mrb[35].mxu0 }
 0x66b   :  { %v6114_v33 = vadd.f32 %v7057_v21, %v6074_v18 }
 0x66d   :  { %v6154_v39 = vadd.f32 %v7079_v53, %v6114_v33 }
 0x687   :  { %v7099_v40 = vpop.f32.mrb[36].mxu0 }
 0x688   :  { %v7100_v19 = vpop.f32.mrb[37].mxu0 }
 0x689   :  { %v7101_v35 = vadd.f32 %v7100_v19, %v7099_v40  ;;  %v7102_v44 = vpop.f32.mrb[38].mxu0 }
 0x68a   :  { %v7103_v28 = vpop.f32.mrb[39].mxu0 }
 0x68b   :  { %v6194_v37 = vadd.f32 %v7101_v35, %v6154_v39 }
 0x68d   :  { %6199 = vst [vmem:[#allocation11] sm:$0xff] %v6194_v37 }
 0x68e   :  { %8300 = shalt.err (!%p8297_p2)
}
 0x68f   :  { %s8301_s17 = scalar_lea.hbm %s8678_s6, 128 }
 0x690   :  { %p8302_p3 = scmp.ne.s32.totalorder %s8678_s6, %s8301_s17  ;;  %p8305_p4 = scmp.lt.u32.totalorder %s8301_s17, %s8678_s6 }
 0x692   :  { %p8307_p5 = pnand %p8305_p4, %p8302_p3 }
 0x694   :  { %8310 = shalt.err (!%p8307_p5)
}
 0x695   :  { %6209 = dma.vmem_to_hbm [thread:$0]  %s6207_s12, 128, %s8678_s6, [#allocation4]  }
 0x696   :  { %8317 = dma.done.wait [#allocation4], 128  }
 0x697   :  { %8318 = vsyncadd [#allocation4], 4294967168 }
 0x698   :  { %6213 = vsyncpa [#allocation3], 1 }
 0x699   :  { %6214 = vsyncpa [#allocation6], 1 }
 0x69a   :  { %6215 = vsyncpa [#allocation9], 1 }
 0x69b   :  { %6216 = vsyncpa [#allocation4], 1 }

</bundles_post_ra>
